<compile_context>
chip_gen: v7x
topology: tpu7x:2x2x1
jax: 0.10.0
libtpu: 0.0.40
codegen_flags: <defaults>
</compile_context>

<pallas_src>
import functools

import jax
import jax.numpy as jnp
from jax.experimental import pallas as pl
from jax.experimental.pallas import tpu as pltpu


# ----------------------------- kernel helpers ------------------------------

def _layernorm(x, w, b, eps=1e-5):
    # x: (N, C) f32, w/b: (1, C) f32
    mu = jnp.mean(x, axis=-1, keepdims=True)
    var = jnp.mean((x - mu) ** 2, axis=-1, keepdims=True)
    return (x - mu) * jax.lax.rsqrt(var + eps) * w + b


# --------------------------- fused decoder kernel ---------------------------
# grid = (B, depth): one batch element per outer step, all layers fused on the
# inner ("arbitrary") axis.  Residual stream lives in a VMEM scratch.

def decoder_blocks_kernel(x_ref, pos_ref,
                          ln1_w_ref, ln1_b_ref,
                          wqkv_ref,
                          wproj_ref, bproj_ref,
                          ln2_w_ref, ln2_b_ref,
                          w1_ref, b1_ref,
                          w2_ref, b2_ref,
                          out_ref, res_ref, *, num_heads, scale):
    d = pl.program_id(1)

    # layer 0: seed the resident residual stream from the input activations.
    @pl.when(d == 0)
    def _():
        res_ref[...] = x_ref[...].astype(jnp.float32)

    x = res_ref[0]                           # (N, C) f32 residual, resident across depth
    pos = pos_ref[0].astype(jnp.float32)     # (N, C)
    h = x + pos                              # pos added before every block (matches torch)

    N, C = h.shape
    hd = C // num_heads

    # ---------------- attention ----------------
    ln1 = _layernorm(h, ln1_w_ref[0], ln1_b_ref[0])
    qkv = jnp.dot(ln1.astype(jnp.bfloat16), wqkv_ref[0],
                  preferred_element_type=jnp.float32)                     # (N, 3C), no bias

    # fold softmax scale into q; reshape to heads-batched (H, N, hd)
    q = (qkv[:, :C] * scale).reshape(N, num_heads, hd).transpose(1, 0, 2)
    k = qkv[:, C:2 * C].reshape(N, num_heads, hd).transpose(1, 0, 2)
    v = qkv[:, 2 * C:].reshape(N, num_heads, hd).transpose(1, 0, 2)

    att = jnp.einsum('hqd,hkd->hqk',
                     q.astype(jnp.bfloat16), k.astype(jnp.bfloat16),
                     preferred_element_type=jnp.float32)                  # (H, N, N)

    att_max = jnp.max(att, axis=-1, keepdims=True)
    p = jnp.exp(att - att_max)
    denom = jnp.sum(p, axis=-1, keepdims=True)
    p = p * pl.reciprocal(denom, approx=True)                             # divide on EUP

    o = jnp.einsum('hqk,hkd->hqd',
                   p.astype(jnp.bfloat16), v.astype(jnp.bfloat16),
                   preferred_element_type=jnp.float32)                    # (H, N, hd)
    attn_out = o.transpose(1, 0, 2).reshape(N, C)

    proj = jnp.dot(attn_out.astype(jnp.bfloat16), wproj_ref[0],
                   preferred_element_type=jnp.float32) + bproj_ref[0]
    x1 = h + proj

    # ------------------ mlp --------------------
    ln2 = _layernorm(x1, ln2_w_ref[0], ln2_b_ref[0])
    hid = jnp.dot(ln2.astype(jnp.bfloat16), w1_ref[0],
                  preferred_element_type=jnp.float32) + b1_ref[0]
    hid = jax.nn.gelu(hid, approximate=True)   # tanh GELU (EUP); torch erf GELU differs ~1e-3
    mlp = jnp.dot(hid.astype(jnp.bfloat16), w2_ref[0],
                  preferred_element_type=jnp.float32) + b2_ref[0]

    new_x = x1 + mlp
    res_ref[0] = new_x

    @pl.when(d == pl.num_programs(1) - 1)
    def _():
        out_ref[0] = new_x.astype(out_ref.dtype)


def final_norm_kernel(x_ref, w_ref, b_ref, out_ref):
    out_ref[0] = _layernorm(x_ref[0].astype(jnp.float32),
                            w_ref[...], b_ref[...]).astype(out_ref.dtype)


# ------------------------------ wrappers -------------------------------------

def run_decoder_blocks(x, pos, stacked, num_heads):
    B, N, C = x.shape
    depth = stacked["wqkv"].shape[0]
    scale = (C // num_heads) ** (-0.5)
    kernel = functools.partial(decoder_blocks_kernel,
                               num_heads=num_heads, scale=scale)

    def wspec(arr):
        # one layer's slab, indexed by the depth grid coordinate
        return pl.BlockSpec((1,) + arr.shape[1:], lambda b, d: (d, 0, 0))

    act_spec = pl.BlockSpec((1, N, C), lambda b, d: (b, 0, 0))

    return pl.pallas_call(
        kernel,
        out_shape=jax.ShapeDtypeStruct((B, N, C), jnp.float32),
        grid=(B, depth),
        in_specs=[
            act_spec,                                     # x
            act_spec,                                     # pos
            wspec(stacked["ln1_w"]), wspec(stacked["ln1_b"]),
            wspec(stacked["wqkv"]),
            wspec(stacked["wproj"]), wspec(stacked["bproj"]),
            wspec(stacked["ln2_w"]), wspec(stacked["ln2_b"]),
            wspec(stacked["w1"]), wspec(stacked["b1"]),
            wspec(stacked["w2"]), wspec(stacked["b2"]),
        ],
        out_specs=pl.BlockSpec((1, N, C), lambda b, d: (b, 0, 0)),
        scratch_shapes=[pltpu.VMEM((1, N, C), jnp.float32)],   # resident residual
        compiler_params=pltpu.CompilerParams(
            dimension_semantics=("parallel", "arbitrary"),
            vmem_limit_bytes=32 * 1024 * 1024),
    )(x, pos,
      stacked["ln1_w"], stacked["ln1_b"],
      stacked["wqkv"],
      stacked["wproj"], stacked["bproj"],
      stacked["ln2_w"], stacked["ln2_b"],
      stacked["w1"], stacked["b1"],
      stacked["w2"], stacked["b2"])


def run_final_norm(x, w, b):
    B, Nt, C = x.shape
    return pl.pallas_call(
        final_norm_kernel,
        out_shape=jax.ShapeDtypeStruct((B, Nt, C), x.dtype),
        grid=(B,),
        in_specs=[
            pl.BlockSpec((1, Nt, C), lambda i: (i, 0, 0)),
            pl.BlockSpec((1, C), lambda i: (0, 0)),
            pl.BlockSpec((1, C), lambda i: (0, 0)),
        ],
        out_specs=pl.BlockSpec((1, Nt, C), lambda i: (i, 0, 0)),
        compiler_params=pltpu.CompilerParams(dimension_semantics=("parallel",)),
    )(x, w, b)


def transformer_decoder_forward(x, pos, params, return_token_num, num_heads):
    x = run_decoder_blocks(x, pos, params["blocks"], num_heads)
    x_tail = x[:, -return_token_num:]
    return run_final_norm(x_tail, params["norm_w"], params["norm_b"])


# --------------------------- parameter construction --------------------------

def make_params(key, embed_dim, depth, mlp_ratio):
    C = embed_dim
    H = int(embed_dim * mlp_ratio)

    def xavier(k, fan_in, fan_out):
        # [in, out] layout; symmetric distribution == transposed torch xavier
        bound = (6.0 / (fan_in + fan_out)) ** 0.5
        return jax.random.uniform(k, (depth, fan_in, fan_out), jnp.float32,
                                  -bound, bound)

    key, k_qkv, k_proj, k_fc1, k_fc2 = jax.random.split(key, 5)
    stacked = dict(
        ln1_w=jnp.ones((depth, 1, C), jnp.float32),
        ln1_b=jnp.zeros((depth, 1, C), jnp.float32),
        wqkv=xavier(k_qkv, C, 3 * C).astype(jnp.bfloat16),
        wproj=xavier(k_proj, C, C).astype(jnp.bfloat16),
        bproj=jnp.zeros((depth, 1, C), jnp.float32),
        ln2_w=jnp.ones((depth, 1, C), jnp.float32),
        ln2_b=jnp.zeros((depth, 1, C), jnp.float32),
        w1=xavier(k_fc1, C, H).astype(jnp.bfloat16),
        b1=jnp.zeros((depth, 1, H), jnp.float32),
        w2=xavier(k_fc2, H, C).astype(jnp.bfloat16),
        b2=jnp.zeros((depth, 1, C), jnp.float32),
    )
    return dict(
        blocks=stacked,
        norm_w=jnp.ones((1, C), jnp.float32),
        norm_b=jnp.zeros((1, C), jnp.float32),
    )


# ----------------------------------- main ------------------------------------

if __name__ == "__main__":
    B, N, C = 2, 16, 256          # batch, tokens, embed dim (lane-aligned)
    num_heads = 2                 # head_dim = 128 -> lane-aligned head batching
    depth = 2
    mlp_ratio = 4.0
    return_token_num = 8

    root = jax.random.PRNGKey(0)
    k_params, k_x, k_pos = jax.random.split(root, 3)

    params = make_params(k_params, C, depth, mlp_ratio)
    x = jax.random.normal(k_x, (B, N, C), jnp.float32)
    pos = jax.random.normal(k_pos, (B, N, C), jnp.float32)

    out = transformer_decoder_forward(x, pos, params, return_token_num, num_heads)
    out = jax.block_until_ready(out)

    assert out.shape == (B, return_token_num, C), out.shape
    assert jnp.all(jnp.isfinite(out))
    print("KERNEL_OK")
</pallas_src>

<mosaic_0001>
module attributes {stable_mosaic.version = 11 : i64} {
  func.func @decoder_blocks_kernel(%arg0: i32, %arg1: i32, %arg2: memref<1x16x256xf32, #tpu.memory_space<vmem>>, %arg3: memref<1x16x256xf32, #tpu.memory_space<vmem>>, %arg4: memref<1x1x256xf32, #tpu.memory_space<vmem>>, %arg5: memref<1x1x256xf32, #tpu.memory_space<vmem>>, %arg6: memref<1x256x768xbf16, #tpu.memory_space<vmem>>, %arg7: memref<1x256x256xbf16, #tpu.memory_space<vmem>>, %arg8: memref<1x1x256xf32, #tpu.memory_space<vmem>>, %arg9: memref<1x1x256xf32, #tpu.memory_space<vmem>>, %arg10: memref<1x1x256xf32, #tpu.memory_space<vmem>>, %arg11: memref<1x256x1024xbf16, #tpu.memory_space<vmem>>, %arg12: memref<1x1x1024xf32, #tpu.memory_space<vmem>>, %arg13: memref<1x1024x256xbf16, #tpu.memory_space<vmem>>, %arg14: memref<1x1x256xf32, #tpu.memory_space<vmem>>, %arg15: memref<1x16x256xf32, #tpu.memory_space<vmem>>, %arg16: memref<1x16x256xf32, #tpu.memory_space<vmem>>) attributes {dimension_semantics = [#tpu.dimension_semantics<parallel>, #tpu.dimension_semantics<arbitrary>], iteration_bounds = array<i64: 2, 2>, scalar_prefetch = 0 : i64, scratch_operands = 1 : i64, tpu.core_type = #tpu.core_type<tc>, window_params = [{transform_indices = @transform_0, window_bounds = array<i64: 1, 16, 256>}, {transform_indices = @transform_1, window_bounds = array<i64: 1, 16, 256>}, {transform_indices = @transform_2, window_bounds = array<i64: 1, 1, 256>}, {transform_indices = @transform_3, window_bounds = array<i64: 1, 1, 256>}, {transform_indices = @transform_4, window_bounds = array<i64: 1, 256, 768>}, {transform_indices = @transform_5, window_bounds = array<i64: 1, 256, 256>}, {transform_indices = @transform_6, window_bounds = array<i64: 1, 1, 256>}, {transform_indices = @transform_7, window_bounds = array<i64: 1, 1, 256>}, {transform_indices = @transform_8, window_bounds = array<i64: 1, 1, 256>}, {transform_indices = @transform_9, window_bounds = array<i64: 1, 256, 1024>}, {transform_indices = @transform_10, window_bounds = array<i64: 1, 1, 1024>}, {transform_indices = @transform_11, window_bounds = array<i64: 1, 1024, 256>}, {transform_indices = @transform_12, window_bounds = array<i64: 1, 1, 256>}, {transform_indices = @transform_13, window_bounds = array<i64: 1, 16, 256>}]} {
    %c0_i32 = arith.constant 0 : i32
    %0 = arith.cmpi eq, %arg1, %c0_i32 : i32
    %1 = arith.extui %0 : i1 to i32
    %c0_i32_0 = arith.constant 0 : i32
    %2 = arith.cmpi ne, %1, %c0_i32_0 : i32
    scf.if %2 {
      %c0_65 = arith.constant 0 : index
      %c0_66 = arith.constant 0 : index
      %c0_67 = arith.constant 0 : index
      %138 = vector.load %arg2[%c0_65, %c0_66, %c0_67] : memref<1x16x256xf32, #tpu.memory_space<vmem>>, vector<1x16x256xf32>
      %c0_68 = arith.constant 0 : index
      %c0_69 = arith.constant 0 : index
      %c0_70 = arith.constant 0 : index
      %139 = vector.load %arg16[%c0_68, %c0_69, %c0_70] : memref<1x16x256xf32, #tpu.memory_space<vmem>>, vector<1x16x256xf32>
      tpu.vector_store %arg16[%c0_68, %c0_69, %c0_70], %138 {strides = array<i32>} : memref<1x16x256xf32, #tpu.memory_space<vmem>>, vector<1x16x256xf32>,
    } else {
    }
    %c0 = arith.constant 0 : index
    %c0_1 = arith.constant 0 : index
    %c0_2 = arith.constant 0 : index
    %3 = vector.load %arg16[%c0, %c0_1, %c0_2] : memref<1x16x256xf32, #tpu.memory_space<vmem>>, vector<1x16x256xf32>
    %4 = vector.shape_cast %3 : vector<1x16x256xf32> to vector<16x256xf32>
    %c0_3 = arith.constant 0 : index
    %c0_4 = arith.constant 0 : index
    %c0_5 = arith.constant 0 : index
    %5 = vector.load %arg3[%c0_3, %c0_4, %c0_5] : memref<1x16x256xf32, #tpu.memory_space<vmem>>, vector<1x16x256xf32>
    %6 = vector.shape_cast %5 : vector<1x16x256xf32> to vector<16x256xf32>
    %7 = arith.addf %4, %6 : vector<16x256xf32>
    %c0_6 = arith.constant 0 : index
    %c0_7 = arith.constant 0 : index
    %c0_8 = arith.constant 0 : index
    %8 = vector.load %arg4[%c0_6, %c0_7, %c0_8] : memref<1x1x256xf32, #tpu.memory_space<vmem>>, vector<1x1x256xf32>
    %9 = vector.shape_cast %8 : vector<1x1x256xf32> to vector<1x256xf32>
    %c0_9 = arith.constant 0 : index
    %c0_10 = arith.constant 0 : index
    %c0_11 = arith.constant 0 : index
    %10 = vector.load %arg5[%c0_9, %c0_10, %c0_11] : memref<1x1x256xf32, #tpu.memory_space<vmem>>, vector<1x1x256xf32>
    %11 = vector.shape_cast %10 : vector<1x1x256xf32> to vector<1x256xf32>
    %cst = arith.constant dense<0.000000e+00> : vector<16xf32>
    %12 = vector.multi_reduction <add>, %7, %cst [1] : vector<16x256xf32> to vector<16xf32>
    %13 = vector.shape_cast %12 : vector<16xf32> to vector<16x1xf32>
    %cst_12 = arith.constant 2.560000e+02 : f32
    %14 = vector.broadcast %cst_12 : f32 to vector<16x1xf32>
    %15 = arith.divf %13, %14 : vector<16x1xf32>
    %16 = vector.broadcast %15 : vector<16x1xf32> to vector<16x256xf32>
    %17 = arith.subf %7, %16 : vector<16x256xf32>
    %18 = arith.mulf %17, %17 : vector<16x256xf32>
    %cst_13 = arith.constant dense<0.000000e+00> : vector<16xf32>
    %19 = vector.multi_reduction <add>, %18, %cst_13 [1] : vector<16x256xf32> to vector<16xf32>
    %20 = vector.shape_cast %19 : vector<16xf32> to vector<16x1xf32>
    %cst_14 = arith.constant 2.560000e+02 : f32
    %21 = vector.broadcast %cst_14 : f32 to vector<16x1xf32>
    %22 = arith.divf %20, %21 : vector<16x1xf32>
    %23 = vector.broadcast %15 : vector<16x1xf32> to vector<16x256xf32>
    %24 = arith.subf %7, %23 : vector<16x256xf32>
    %cst_15 = arith.constant 9.99999974E-6 : f32
    %25 = vector.broadcast %cst_15 : f32 to vector<16x1xf32>
    %26 = arith.addf %22, %25 : vector<16x1xf32>
    %27 = math.rsqrt %26 : vector<16x1xf32>
    %28 = vector.broadcast %27 : vector<16x1xf32> to vector<16x256xf32>
    %29 = arith.mulf %24, %28 : vector<16x256xf32>
    %30 = vector.broadcast %9 : vector<1x256xf32> to vector<16x256xf32>
    %31 = arith.mulf %29, %30 : vector<16x256xf32>
    %32 = vector.broadcast %11 : vector<1x256xf32> to vector<16x256xf32>
    %33 = arith.addf %31, %32 : vector<16x256xf32>
    %34 = arith.truncf %33 : vector<16x256xf32> to vector<16x256xbf16>
    %c0_16 = arith.constant 0 : index
    %c0_17 = arith.constant 0 : index
    %c0_18 = arith.constant 0 : index
    %35 = vector.load %arg6[%c0_16, %c0_17, %c0_18] : memref<1x256x768xbf16, #tpu.memory_space<vmem>>, vector<1x256x768xbf16>
    %36 = vector.shape_cast %35 : vector<1x256x768xbf16> to vector<256x768xbf16>
    %cst_19 = arith.constant dense<0.000000e+00> : vector<16x768xf32>
    %37 = tpu.matmul %34, %36, %cst_19 {dimension_numbers = #tpu.dot_dimension_numbers<[1], [0], [0], [1], [0, 0, 1, 1], [], []>} : vector<16x256xbf16>, vector<256x768xbf16>, vector<16x768xf32> -> vector<16x768xf32>
    %38 = vector.extract_strided_slice %37 {offsets = [0, 0], sizes = [16, 256], strides = [1, 1]} : vector<16x768xf32> to vector<16x256xf32>
    %cst_20 = arith.constant 0.0883883461 : f32
    %39 = vector.broadcast %cst_20 : f32 to vector<16x256xf32>
    %40 = arith.mulf %38, %39 : vector<16x256xf32>
    %41 = vector.shape_cast %40 : vector<16x256xf32> to vector<16x2x128xf32>
    %42 = tpu.transpose %41, [1, 0, 2] : vector<16x2x128xf32> -> vector<2x16x128xf32>
    %43 = vector.extract_strided_slice %37 {offsets = [0, 256], sizes = [16, 256], strides = [1, 1]} : vector<16x768xf32> to vector<16x256xf32>
    %44 = vector.shape_cast %43 : vector<16x256xf32> to vector<16x2x128xf32>
    %45 = tpu.transpose %44, [1, 0, 2] : vector<16x2x128xf32> -> vector<2x16x128xf32>
    %46 = vector.extract_strided_slice %37 {offsets = [0, 512], sizes = [16, 256], strides = [1, 1]} : vector<16x768xf32> to vector<16x256xf32>
    %47 = vector.shape_cast %46 : vector<16x256xf32> to vector<16x2x128xf32>
    %48 = tpu.transpose %47, [1, 0, 2] : vector<16x2x128xf32> -> vector<2x16x128xf32>
    %49 = arith.truncf %42 : vector<2x16x128xf32> to vector<2x16x128xbf16>
    %50 = arith.truncf %45 : vector<2x16x128xf32> to vector<2x16x128xbf16>
    "tpu.trace_start"() <{level = 10 : i32, message = "hqd,hkd->hqk"}> : () -> ()
    %cst_21 = arith.constant dense<0.000000e+00> : vector<2x16x16xf32>
    %51 = tpu.matmul %49, %50, %cst_21 {dimension_numbers = #tpu.dot_dimension_numbers<[2], [2], [1], [1], [0, 0, 0, 1, 1, 1], [0], [0]>} : vector<2x16x128xbf16>, vector<2x16x128xbf16>, vector<2x16x16xf32> -> vector<2x16x16xf32>
    "tpu.trace_stop"() : () -> ()
    %cst_22 = arith.constant dense<0xFF800000> : vector<2x16xf32>
    %52 = vector.multi_reduction <maximumf>, %51, %cst_22 [2] : vector<2x16x16xf32> to vector<2x16xf32>
    %53 = vector.shape_cast %52 : vector<2x16xf32> to vector<2x16x1xf32>
    %54 = vector.broadcast %53 : vector<2x16x1xf32> to vector<2x16x16xf32>
    %55 = arith.subf %51, %54 : vector<2x16x16xf32>
    %56 = math.exp %55 : vector<2x16x16xf32>
    %cst_23 = arith.constant dense<0.000000e+00> : vector<2x16xf32>
    %57 = vector.multi_reduction <add>, %56, %cst_23 [2] : vector<2x16x16xf32> to vector<2x16xf32>
    %58 = vector.shape_cast %57 : vector<2x16xf32> to vector<2x16x1xf32>
    %59 = tpu.reciprocal %58 {approx = true} : vector<2x16x1xf32> -> vector<2x16x1xf32>
    %60 = vector.broadcast %59 : vector<2x16x1xf32> to vector<2x16x16xf32>
    %61 = arith.mulf %56, %60 : vector<2x16x16xf32>
    %62 = arith.truncf %61 : vector<2x16x16xf32> to vector<2x16x16xbf16>
    %63 = arith.truncf %48 : vector<2x16x128xf32> to vector<2x16x128xbf16>
    "tpu.trace_start"() <{level = 10 : i32, message = "hqk,hkd->hqd"}> : () -> ()
    %cst_24 = arith.constant dense<0.000000e+00> : vector<2x16x128xf32>
    %64 = tpu.matmul %62, %63, %cst_24 {dimension_numbers = #tpu.dot_dimension_numbers<[2], [1], [1], [2], [0, 0, 0, 1, 1, 2], [0], [0]>} : vector<2x16x16xbf16>, vector<2x16x128xbf16>, vector<2x16x128xf32> -> vector<2x16x128xf32>
    "tpu.trace_stop"() : () -> ()
    %65 = tpu.transpose %64, [1, 0, 2] : vector<2x16x128xf32> -> vector<16x2x128xf32>
    %66 = vector.shape_cast %65 : vector<16x2x128xf32> to vector<16x256xf32>
    %67 = arith.truncf %66 : vector<16x256xf32> to vector<16x256xbf16>
    %c0_25 = arith.constant 0 : index
    %c0_26 = arith.constant 0 : index
    %c0_27 = arith.constant 0 : index
    %68 = vector.load %arg7[%c0_25, %c0_26, %c0_27] : memref<1x256x256xbf16, #tpu.memory_space<vmem>>, vector<1x256x256xbf16>
    %69 = vector.shape_cast %68 : vector<1x256x256xbf16> to vector<256x256xbf16>
    %cst_28 = arith.constant dense<0.000000e+00> : vector<16x256xf32>
    %70 = tpu.matmul %67, %69, %cst_28 {dimension_numbers = #tpu.dot_dimension_numbers<[1], [0], [0], [1], [0, 0, 1, 1], [], []>} : vector<16x256xbf16>, vector<256x256xbf16>, vector<16x256xf32> -> vector<16x256xf32>
    %c0_29 = arith.constant 0 : index
    %c0_30 = arith.constant 0 : index
    %c0_31 = arith.constant 0 : index
    %71 = vector.load %arg8[%c0_29, %c0_30, %c0_31] : memref<1x1x256xf32, #tpu.memory_space<vmem>>, vector<1x1x256xf32>
    %72 = vector.shape_cast %71 : vector<1x1x256xf32> to vector<1x256xf32>
    %73 = vector.broadcast %72 : vector<1x256xf32> to vector<16x256xf32>
    %74 = arith.addf %70, %73 : vector<16x256xf32>
    %75 = arith.addf %7, %74 : vector<16x256xf32>
    %c0_32 = arith.constant 0 : index
    %c0_33 = arith.constant 0 : index
    %c0_34 = arith.constant 0 : index
    %76 = vector.load %arg9[%c0_32, %c0_33, %c0_34] : memref<1x1x256xf32, #tpu.memory_space<vmem>>, vector<1x1x256xf32>
    %77 = vector.shape_cast %76 : vector<1x1x256xf32> to vector<1x256xf32>
    %c0_35 = arith.constant 0 : index
    %c0_36 = arith.constant 0 : index
    %c0_37 = arith.constant 0 : index
    %78 = vector.load %arg10[%c0_35, %c0_36, %c0_37] : memref<1x1x256xf32, #tpu.memory_space<vmem>>, vector<1x1x256xf32>
    %79 = vector.shape_cast %78 : vector<1x1x256xf32> to vector<1x256xf32>
    %cst_38 = arith.constant dense<0.000000e+00> : vector<16xf32>
    %80 = vector.multi_reduction <add>, %75, %cst_38 [1] : vector<16x256xf32> to vector<16xf32>
    %81 = vector.shape_cast %80 : vector<16xf32> to vector<16x1xf32>
    %cst_39 = arith.constant 2.560000e+02 : f32
    %82 = vector.broadcast %cst_39 : f32 to vector<16x1xf32>
    %83 = arith.divf %81, %82 : vector<16x1xf32>
    %84 = vector.broadcast %83 : vector<16x1xf32> to vector<16x256xf32>
    %85 = arith.subf %75, %84 : vector<16x256xf32>
    %86 = arith.mulf %85, %85 : vector<16x256xf32>
    %cst_40 = arith.constant dense<0.000000e+00> : vector<16xf32>
    %87 = vector.multi_reduction <add>, %86, %cst_40 [1] : vector<16x256xf32> to vector<16xf32>
    %88 = vector.shape_cast %87 : vector<16xf32> to vector<16x1xf32>
    %cst_41 = arith.constant 2.560000e+02 : f32
    %89 = vector.broadcast %cst_41 : f32 to vector<16x1xf32>
    %90 = arith.divf %88, %89 : vector<16x1xf32>
    %91 = vector.broadcast %83 : vector<16x1xf32> to vector<16x256xf32>
    %92 = arith.subf %75, %91 : vector<16x256xf32>
    %cst_42 = arith.constant 9.99999974E-6 : f32
    %93 = vector.broadcast %cst_42 : f32 to vector<16x1xf32>
    %94 = arith.addf %90, %93 : vector<16x1xf32>
    %95 = math.rsqrt %94 : vector<16x1xf32>
    %96 = vector.broadcast %95 : vector<16x1xf32> to vector<16x256xf32>
    %97 = arith.mulf %92, %96 : vector<16x256xf32>
    %98 = vector.broadcast %77 : vector<1x256xf32> to vector<16x256xf32>
    %99 = arith.mulf %97, %98 : vector<16x256xf32>
    %100 = vector.broadcast %79 : vector<1x256xf32> to vector<16x256xf32>
    %101 = arith.addf %99, %100 : vector<16x256xf32>
    %102 = arith.truncf %101 : vector<16x256xf32> to vector<16x256xbf16>
    %c0_43 = arith.constant 0 : index
    %c0_44 = arith.constant 0 : index
    %c0_45 = arith.constant 0 : index
    %103 = vector.load %arg11[%c0_43, %c0_44, %c0_45] : memref<1x256x1024xbf16, #tpu.memory_space<vmem>>, vector<1x256x1024xbf16>
    %104 = vector.shape_cast %103 : vector<1x256x1024xbf16> to vector<256x1024xbf16>
    %cst_46 = arith.constant dense<0.000000e+00> : vector<16x1024xf32>
    %105 = tpu.matmul %102, %104, %cst_46 {dimension_numbers = #tpu.dot_dimension_numbers<[1], [0], [0], [1], [0, 0, 1, 1], [], []>} : vector<16x256xbf16>, vector<256x1024xbf16>, vector<16x1024xf32> -> vector<16x1024xf32>
    %c0_47 = arith.constant 0 : index
    %c0_48 = arith.constant 0 : index
    %c0_49 = arith.constant 0 : index
    %106 = vector.load %arg12[%c0_47, %c0_48, %c0_49] : memref<1x1x1024xf32, #tpu.memory_space<vmem>>, vector<1x1x1024xf32>
    %107 = vector.shape_cast %106 : vector<1x1x1024xf32> to vector<1x1024xf32>
    %108 = vector.broadcast %107 : vector<1x1024xf32> to vector<16x1024xf32>
    %109 = arith.addf %105, %108 : vector<16x1024xf32>
    %110 = arith.mulf %109, %109 : vector<16x1024xf32>
    %111 = arith.mulf %109, %110 : vector<16x1024xf32>
    %cst_50 = arith.constant 4.471500e-02 : f32
    %112 = vector.broadcast %cst_50 : f32 to vector<16x1024xf32>
    %113 = arith.mulf %112, %111 : vector<16x1024xf32>
    %114 = arith.addf %109, %113 : vector<16x1024xf32>
    %cst_51 = arith.constant 0.797884583 : f32
    %115 = vector.broadcast %cst_51 : f32 to vector<16x1024xf32>
    %116 = arith.mulf %115, %114 : vector<16x1024xf32>
    %117 = math.tanh %116 : vector<16x1024xf32>
    %cst_52 = arith.constant 1.000000e+00 : f32
    %118 = vector.broadcast %cst_52 : f32 to vector<16x1024xf32>
    %119 = arith.addf %118, %117 : vector<16x1024xf32>
    %cst_53 = arith.constant 5.000000e-01 : f32
    %120 = vector.broadcast %cst_53 : f32 to vector<16x1024xf32>
    %121 = arith.mulf %120, %119 : vector<16x1024xf32>
    %122 = arith.mulf %109, %121 : vector<16x1024xf32>
    %123 = arith.truncf %122 : vector<16x1024xf32> to vector<16x1024xbf16>
    %c0_54 = arith.constant 0 : index
    %c0_55 = arith.constant 0 : index
    %c0_56 = arith.constant 0 : index
    %124 = vector.load %arg13[%c0_54, %c0_55, %c0_56] : memref<1x1024x256xbf16, #tpu.memory_space<vmem>>, vector<1x1024x256xbf16>
    %125 = vector.shape_cast %124 : vector<1x1024x256xbf16> to vector<1024x256xbf16>
    %cst_57 = arith.constant dense<0.000000e+00> : vector<16x256xf32>
    %126 = tpu.matmul %123, %125, %cst_57 {dimension_numbers = #tpu.dot_dimension_numbers<[1], [0], [0], [1], [0, 0, 1, 1], [], []>} : vector<16x1024xbf16>, vector<1024x256xbf16>, vector<16x256xf32> -> vector<16x256xf32>
    %c0_58 = arith.constant 0 : index
    %c0_59 = arith.constant 0 : index
    %c0_60 = arith.constant 0 : index
    %127 = vector.load %arg14[%c0_58, %c0_59, %c0_60] : memref<1x1x256xf32, #tpu.memory_space<vmem>>, vector<1x1x256xf32>
    %128 = vector.shape_cast %127 : vector<1x1x256xf32> to vector<1x256xf32>
    %129 = vector.broadcast %128 : vector<1x256xf32> to vector<16x256xf32>
    %130 = arith.addf %126, %129 : vector<16x256xf32>
    %131 = arith.addf %75, %130 : vector<16x256xf32>
    %c0_61 = arith.constant 0 : index
    %c0_62 = arith.constant 0 : index
    %c0_63 = arith.constant 0 : index
    %132 = vector.load %arg16[%c0_61, %c0_62, %c0_63] : memref<1x16x256xf32, #tpu.memory_space<vmem>>, vector<1x16x256xf32>
    %133 = vector.shape_cast %132 : vector<1x16x256xf32> to vector<16x256xf32>
    %134 = vector.shape_cast %131 : vector<16x256xf32> to vector<1x16x256xf32>
    tpu.vector_store %arg16[%c0_61, %c0_62, %c0_63], %134 {strides = array<i32>} : memref<1x16x256xf32, #tpu.memory_space<vmem>>, vector<1x16x256xf32>,
    %c1_i32 = arith.constant 1 : i32
    %135 = arith.cmpi eq, %arg1, %c1_i32 : i32
    %136 = arith.extui %135 : i1 to i32
    %c0_i32_64 = arith.constant 0 : i32
    %137 = arith.cmpi ne, %136, %c0_i32_64 : i32
    scf.if %137 {
      %c0_65 = arith.constant 0 : index
      %c0_66 = arith.constant 0 : index
      %c0_67 = arith.constant 0 : index
      %138 = vector.load %arg15[%c0_65, %c0_66, %c0_67] : memref<1x16x256xf32, #tpu.memory_space<vmem>>, vector<1x16x256xf32>
      %139 = vector.shape_cast %138 : vector<1x16x256xf32> to vector<16x256xf32>
      %140 = vector.shape_cast %131 : vector<16x256xf32> to vector<1x16x256xf32>
      tpu.vector_store %arg15[%c0_65, %c0_66, %c0_67], %140 {strides = array<i32>} : memref<1x16x256xf32, #tpu.memory_space<vmem>>, vector<1x16x256xf32>,
    } else {
    }
    return
  }
  func.func @transform_0(%arg0: i32, %arg1: i32) -> (i32, i32, i32) {
    %c0_i32 = arith.constant 0 : i32
    %c0_i32_0 = arith.constant 0 : i32
    %c0_i32_1 = arith.constant 0 : i32
    return %arg0, %c0_i32, %c0_i32_0 : i32, i32, i32
  }
  func.func @transform_1(%arg0: i32, %arg1: i32) -> (i32, i32, i32) {
    %c0_i32 = arith.constant 0 : i32
    %c0_i32_0 = arith.constant 0 : i32
    %c0_i32_1 = arith.constant 0 : i32
    return %arg0, %c0_i32, %c0_i32_0 : i32, i32, i32
  }
  func.func @transform_2(%arg0: i32, %arg1: i32) -> (i32, i32, i32) {
    %c0_i32 = arith.constant 0 : i32
    %c0_i32_0 = arith.constant 0 : i32
    %c0_i32_1 = arith.constant 0 : i32
    return %arg1, %c0_i32, %c0_i32_0 : i32, i32, i32
  }
  func.func @transform_3(%arg0: i32, %arg1: i32) -> (i32, i32, i32) {
    %c0_i32 = arith.constant 0 : i32
    %c0_i32_0 = arith.constant 0 : i32
    %c0_i32_1 = arith.constant 0 : i32
    return %arg1, %c0_i32, %c0_i32_0 : i32, i32, i32
  }
  func.func @transform_4(%arg0: i32, %arg1: i32) -> (i32, i32, i32) {
    %c0_i32 = arith.constant 0 : i32
    %c0_i32_0 = arith.constant 0 : i32
    %c0_i32_1 = arith.constant 0 : i32
    return %arg1, %c0_i32, %c0_i32_0 : i32, i32, i32
  }
  func.func @transform_5(%arg0: i32, %arg1: i32) -> (i32, i32, i32) {
    %c0_i32 = arith.constant 0 : i32
    %c0_i32_0 = arith.constant 0 : i32
    %c0_i32_1 = arith.constant 0 : i32
    return %arg1, %c0_i32, %c0_i32_0 : i32, i32, i32
  }
  func.func @transform_6(%arg0: i32, %arg1: i32) -> (i32, i32, i32) {
    %c0_i32 = arith.constant 0 : i32
    %c0_i32_0 = arith.constant 0 : i32
    %c0_i32_1 = arith.constant 0 : i32
    return %arg1, %c0_i32, %c0_i32_0 : i32, i32, i32
  }
  func.func @transform_7(%arg0: i32, %arg1: i32) -> (i32, i32, i32) {
    %c0_i32 = arith.constant 0 : i32
    %c0_i32_0 = arith.constant 0 : i32
    %c0_i32_1 = arith.constant 0 : i32
    return %arg1, %c0_i32, %c0_i32_0 : i32, i32, i32
  }
  func.func @transform_8(%arg0: i32, %arg1: i32) -> (i32, i32, i32) {
    %c0_i32 = arith.constant 0 : i32
    %c0_i32_0 = arith.constant 0 : i32
    %c0_i32_1 = arith.constant 0 : i32
    return %arg1, %c0_i32, %c0_i32_0 : i32, i32, i32
  }
  func.func @transform_9(%arg0: i32, %arg1: i32) -> (i32, i32, i32) {
    %c0_i32 = arith.constant 0 : i32
    %c0_i32_0 = arith.constant 0 : i32
    %c0_i32_1 = arith.constant 0 : i32
    return %arg1, %c0_i32, %c0_i32_0 : i32, i32, i32
  }
  func.func @transform_10(%arg0: i32, %arg1: i32) -> (i32, i32, i32) {
    %c0_i32 = arith.constant 0 : i32
    %c0_i32_0 = arith.constant 0 : i32
    %c0_i32_1 = arith.constant 0 : i32
    return %arg1, %c0_i32, %c0_i32_0 : i32, i32, i32
  }
  func.func @transform_11(%arg0: i32, %arg1: i32) -> (i32, i32, i32) {
    %c0_i32 = arith.constant 0 : i32
    %c0_i32_0 = arith.constant 0 : i32
    %c0_i32_1 = arith.constant 0 : i32
    return %arg1, %c0_i32, %c0_i32_0 : i32, i32, i32
  }
  func.func @transform_12(%arg0: i32, %arg1: i32) -> (i32, i32, i32) {
    %c0_i32 = arith.constant 0 : i32
    %c0_i32_0 = arith.constant 0 : i32
    %c0_i32_1 = arith.constant 0 : i32
    return %arg1, %c0_i32, %c0_i32_0 : i32, i32, i32
  }
  func.func @transform_13(%arg0: i32, %arg1: i32) -> (i32, i32, i32) {
    %c0_i32 = arith.constant 0 : i32
    %c0_i32_0 = arith.constant 0 : i32
    %c0_i32_1 = arith.constant 0 : i32
    return %arg0, %c0_i32, %c0_i32_0 : i32, i32, i32
  }
}

</mosaic_0001>

<bundles_post_ra>
// kernel: tpu_custom_call.1
= control target key start
LH: loop header
LB: loop body
LE: loop exit
PB: predicated region body
PF: predicated region fallthrough
CT: control target
= control target key end

     0   :  { %s8542_s0 = inlined_call_operand.hbm [shape: f32[2,16,256], index: 0, kind: input, shape index: {}]   ;;  %s8543_s1 = inlined_call_operand.hbm [shape: f32[2,16,256], index: 1, kind: input, shape index: {}]   ;;  %s8544_s2 = inlined_call_operand.vmem [shape: f32[2,1,256], index: 2, kind: input, shape index: {}]   ;;  %s8545_s3 = inlined_call_operand.vmem [shape: f32[2,1,256], index: 3, kind: input, shape index: {}]   ;;  %s8546_s4 = inlined_call_operand.hbm [shape: bf16[2,256,768], index: 4, kind: input, shape index: {}]   ;;  %s8547_s5 = inlined_call_operand.hbm [shape: bf16[2,256,256], index: 5, kind: input, shape index: {}]   ;;  %s8548_s6 = inlined_call_operand.vmem [shape: f32[2,1,256], index: 6, kind: input, shape index: {}]   ;;  %s8549_s7 = inlined_call_operand.hbm [shape: f32[2,1,256], index: 7, kind: input, shape index: {}]   ;;  %s8550_s8 = inlined_call_operand.hbm [shape: f32[2,1,256], index: 8, kind: input, shape index: {}]   ;;  %s8551_s9 = inlined_call_operand.hbm [shape: bf16[2,256,1024], index: 9, kind: input, shape index: {}]   ;;  %s8552_s10 = inlined_call_operand.vmem [shape: f32[2,1,1024], index: 10, kind: input, shape index: {}]   ;;  %s8553_s11 = inlined_call_operand.hbm [shape: bf16[2,1024,256], index: 11, kind: input, shape index: {}]   ;;  %s8554_s12 = inlined_call_operand.vmem [shape: f32[2,1,256], index: 12, kind: input, shape index: {}]   ;;  %s8555_s13 = inlined_call_operand.hbm [shape: f32[2,16,256], index: 13, kind: output, shape index: {}]  }
   0x1   :  { %8598 = sst [smem:[#allocation47_spill]] %s8542_s0 }
   0x2   :  { %8599 = sst [smem:[#allocation48_spill]] %s8543_s1 }
   0x3   :  { %8600 = sst [smem:[#allocation49_spill]] %s8544_s2 }
   0x4   :  { %8601 = sst [smem:[#allocation50_spill]] %s8545_s3 }
   0x5   :  { %8602 = sst [smem:[#allocation51_spill]] %s8546_s4 }
   0x6   :  { %8603 = sst [smem:[#allocation52_spill]] %s8547_s5 }
   0x7   :  { %8604 = sst [smem:[#allocation53_spill]] %s8548_s6 }
   0x8   :  { %8605 = sst [smem:[#allocation54_spill]] %s8549_s7 }
   0x9   :  { %8606 = sst [smem:[#allocation55_spill]] %s8550_s8 }
   0xa   :  { %8607 = sst [smem:[#allocation56_spill]] %s8551_s9 }
   0xb   :  { %8608 = sst [smem:[#allocation57_spill]] %s8552_s10 }
   0xc   :  { %8609 = sst [smem:[#allocation58_spill]] %s8553_s11 }
   0xd   :  { %8610 = sst [smem:[#allocation59_spill]] %s8554_s12 }
   0xe   :  { %8611 = sst [smem:[#allocation60_spill]] %s8555_s13 }
   0xf   :  { %18 = vsyncpa [#allocation4], 0 }
  0x10   :  { %20 = vsyncpa [#allocation4 + $0x1], 0 }
  0x11   :  { %21 = vsyncpa [#allocation7], 0 }
  0x12   :  { %23 = vsyncpa [#allocation7 + $0x1], 0 }
  0x13   :  { %24 = vsyncpa [#allocation10], 0 }
  0x14   :  { %26 = vsyncpa [#allocation10 + $0x1], 0 }
  0x15   :  { %27 = vsyncpa [#allocation13], 0 }
  0x16   :  { %29 = vsyncpa [#allocation13 + $0x1], 0 }
  0x17   :  { %30 = vsyncpa [#allocation16], 0 }
  0x18   :  { %32 = vsyncpa [#allocation16 + $0x1], 0 }
  0x19   :  { %33 = vsyncpa [#allocation5], 0 }
  0x1a   :  { %35 = vsyncpa [#allocation5 + $0x1], 0  ;;  %s7082_s25 = smov 0   ;;  %s7084_s26 = smov 0  }
  0x1b   :  { %s7086_s27 = smov 0   ;;  %s7088_s28 = smov 0  }
  0x1c   :  { %s7090_s29 = smov 0   ;;  %s7092_s30 = smov 0  }
  0x1d   :  { %s7094_s14 = smov 0   ;;  %s7096_s15 = smov 0  }
  0x1e   :  { %s7098_s16 = smov 0   ;;  %s7100_s17 = smov 0  }
  0x1f   :  { %s7102_s18 = smov 0  }
  0x20 LB: > { %8612 = sst [smem:[#allocation25_spill]] %s6951_s26  ;;  %s7138_s19 = sadd.s32 4294967295, %s6987_s18   ;;  %s6987_s18 = sphi %s7102_s18, %s41_s18   ;;  %s6983_s17 = sphi %s7100_s17, %s8712_s17   ;;  %s6979_s16 = sphi %s7098_s16, %s8711_s16   ;;  %s6975_s15 = sphi %s7096_s15, %s8710_s15   ;;  %s6971_s14 = sphi %s7094_s14, %s8709_s14   ;;  %s6967_s30 = sphi %s7092_s30, %s8708_s30   ;;  %s6963_s29 = sphi %s7090_s29, %s8707_s29   ;;  %s6959_s28 = sphi %s7088_s28, %s8706_s28   ;;  %s6955_s27 = sphi %s7086_s27, %s8705_s27   ;;  %s6951_s26 = sphi %s7084_s26, %s8704_s26   ;;  %s6947_s25 = sphi %s7082_s25, %s8703_s25  }
  0x21   : > { %8613 = sst [smem:[#allocation26_spill]] %s6955_s27  ;;  %s5507_s20 = sadd.s32 4294967294, %s6987_s18  }
  0x22   : > { %8614 = sst [smem:[#allocation27_spill]] %s6959_s28  ;;  %s50_s21 = sadd.s32 1, %s6979_s16 }
  0x23   : > { %8615 = sst [smem:[#allocation28_spill]] %s6963_s29  ;;  %s53_s22 = sadd.s32 1, %s6983_s17 }
  0x24   : > { %8616 = sst [smem:[#allocation29_spill]] %s6967_s30  ;;  %p51_p0 = scmp.ge.s32.totalorder %s50_s21, 2 }
  0x25   : > { %8617 = sst [smem:[#allocation30_spill]] %s6971_s14  ;;  %s60_s23 = sadd.s32 1, %s6967_s30 }
  0x26   : > { %8618 = sst [smem:[#allocation31_spill]] %s6975_s15  ;;  %p67_p1 = scmp.ne.s32.totalorder %s6967_s30, %s6963_s29 }
  0x27   : > { %8619 = sst [smem:[#allocation32_spill]] %s6979_s16  ;;  %p8570_p2 = scmp.eq.s32.totalorder %s6987_s18, 0 }
  0x28   : > { %8620 = sst [smem:[#allocation33_spill]] %s6983_s17  ;;  %s8714_s21 = smov (%p51_p0, %s50_s21), 0 }
  0x29   : > { %8621 = sst [smem:[#allocation34_spill]] %s6987_s18  ;;  %s8716_s22 = smov (!%p51_p0, %s53_s22), %s6983_s17 }
  0x2a   : > { %8622 = sst [smem:[#allocation35_spill]] %s7138_s19  ;;  %p7155_p3 = por %p8570_p2, %p67_p1 }
  0x2b   : > { %8623 = sst [smem:[#allocation36_spill]] %s8714_s21  ;;  %p73_p4 = scmp.ne.s32.totalorder %s6963_s29, %s6959_s28 }
  0x2c   : > { %p55_p5 = scmp.ge.s32.totalorder %s8716_s22, 2  ;;  %p8569_p6 = scmp.eq.s32.totalorder %s7138_s19, 0 }
  0x2d   : > { %s161_s13 = ssub.s32 %s6979_s16, %s8714_s21  ;;  %p409_p7 = scmp.eq.s32.totalorder %s7138_s19, 3 }
  0x2e   : > { %s8718_s22 = smov (%p55_p5, %s8716_s22), 0  ;;  %p7172_p8 = por %p8569_p6, %p73_p4 }
  0x2f   : > { %8625 = sst [smem:[#allocation37_spill]] %s8718_s22  ;;  %p7176_p9 = scmp.eq.s32.totalorder %s161_s13, 0 }
  0x30   : > { %s8626_s15 = scalar_select %p7172_p8, 1, 0 }
  0x31   : > { %s57_s10 = ssub.s32 %s6983_s17, %s8718_s22  ;;  %p7185_p10 = por %p409_p7, %p67_p1 }
  0x32   : > { %8627 = sst [smem:[#allocation38_spill]] %s8626_s15  ;;  %p58_p11 = scmp.eq.s32.totalorder %s57_s10, 0 }
  0x33   : > { %s8629_s21 = scalar_select %p7185_p10, 1, 0 }
  0x34   : > { %p415_p12 = scmp.eq.s32.totalorder %s5507_s20, 3  ;;  %p8568_p13 = scmp.lt.s32.totalorder %s6987_s18, 4 }
  0x35   : > { %8630 = sst [smem:[#allocation39_spill]] %s8629_s21  ;;  %s8561_s13 = sand.u32 1, %s6967_s30  }
  0x36   : > { %s7191_s6 = scalar_select %p58_p11, %s6967_s30, %s60_s23  }
  0x37   : > { %p7196_p0 = por %p415_p12, %p73_p4  ;;  %s7203_s2 = sshll.u32 %s8561_s13, 5 }
  0x38   : > { %8631 = sst [smem:[#allocation40_spill]] %s7191_s6  ;;  %s8564_s22 = sshll.u32 %s6983_s17, 9 }
  0x39   : > { %s8632_s3 = scalar_select %p7196_p0, 1, 0 }
  0x3a   : > { %p7210_p1 = pnand %p8568_p13, %p7155_p3  ;;  %s7215_s10 = sand.u32 1, %s6987_s18  }
  0x3b   : > { %8633 = sst [smem:[#allocation41_spill]] %s8632_s3  ;;  %s8635_s1 = sld [smem:[#allocation48_spill]] }
  0x3c   : > { %s8634_s21 = scalar_select %p7210_p1, 1, 0 }
  0x3d   : > { %s460_s24 = scalar_lea.vmem [#allocation6], %s7203_s2  ;;  %s8573_s3 = scalar_lea.sflag [#allocation7], %s7215_s10 }
  0x3e   : > { %s467_s13 = sshll.u32 %s460_s24, 4  ;;  %p8577_p7 = pneg %p7210_p1  ;;  %s7226_s13 = int_to_ptr.vmem [resolvable:$true] %s467_s13 }
  0x41   : > { %s7222_s6 = scalar_lea.hbm %s8635_s1, %s8564_s22  ;;  %s6610_s22 = scalar_lea.hbm %s8635_s1, 1024 }
  0x42   : > { %s6605_s28 = scalar_lea.hbm %s7222_s6, 512  ;;  %p6611_p13 = scmp.lt.u32.totalorder %s7222_s6, %s8635_s1 }
  0x43   : > { %p6606_p5 = scmp.ne.s32.totalorder %s7222_s6, %s6605_s28  ;;  %p6612_p6 = scmp.lt.u32.totalorder %s6610_s22, %s6605_s28 }
  0x44   : > { %p6614_p3 = scmp.lt.u32.totalorder %s6605_s28, %s7222_s6 }
  0x45   : > { %p6608_p11 = pnand %p8577_p7, %p6606_p5  ;;  %p6613_p2 = por %p6612_p6, %p6611_p13 }
  0x47   : > { %p6609_p12 = pneg %p6608_p11  ;;  %p6615_p4 = por %p6614_p3, %p6613_p2 }
  0x49   : > { %p6616_p0 = pnand %p6615_p4, %p6609_p12 }
  0x4b   : > { %6619 = shalt.err (!%p6616_p0)
}
  0x4c   : > { %s6620_s24 = scalar_lea.vmem %s7226_s13, 512  ;;  %s6989_s20 = smov [#allocation6]  }
  0x4d   : > { %p6621_p5 = scmp.ne.s32.totalorder %s7226_s13, %s6620_s24  ;;  %s6625_s23 = sshll.u32 %s6989_s20, 4  ;;  %s6626_s23 = int_to_ptr.vmem [resolvable:$false] %s6625_s23 }
  0x4e   : > { %s6627_s14 = scalar_lea.vmem %s6626_s23, 1024  ;;  %p6628_p8 = scmp.lt.s32.totalorder %s7226_s13, %s6626_s23 }
  0x4f   : > { %p6623_p11 = pnand %p6621_p5, %p8577_p7  ;;  %p6629_p6 = scmp.lt.s32.totalorder %s6627_s14, %s6620_s24 }
  0x51   : > { %p6624_p10 = pneg %p6623_p11  ;;  %p6630_p13 = por %p6629_p6, %p6628_p8 }
  0x53   : > { %p6631_p2 = pnand %p6630_p13, %p6624_p10 }
  0x55   : > { %6634 = shalt.err (!%p6631_p2)
}
  0x56   : > { %s8574_s28 = smov 256   ;;  %s8575_s15 = smov 16  }
  0x57   : > { %6038 = dma.hbm_to_vmem [thread:$0]  (!%p7210_p1), %s7222_s6, 512, %s7226_s13, %s8573_s3, %s8574_s28, %s8574_s28, %s8575_s15  }
  0x58   : > { %p8636_p8 = scmp.lt.s32.totalorder %s6987_s18, 5  ;;  %p8637_p10 = scmp.ge.s32.totalorder %s6987_s18, 1 }
  0x59   : > { %s164_s24 = sadd.s32 1, %s6955_s27  ;;  %p171_p3 = scmp.ne.s32.totalorder %s6955_s27, %s6951_s26 }
  0x5a   : > { %p7264_p0 = pnand %p8637_p10, %p8636_p8  ;;  %p177_p4 = scmp.ne.s32.totalorder %s6951_s26, %s6947_s25 }
  0x5b   : > { %s7272_s20 = scalar_select %p7176_p9, %s6955_s27, %s164_s24  }
  0x5c   : > { %s8638_s22 = scalar_select %p7264_p0, 1, 0 }
  0x5d   : > { %8639 = sst [smem:[#allocation42_spill]] %s7272_s20  ;;  %s7279_s23 = sand.u32 1, %s6955_s27  }
  0x5e   : > { %p8640_p12 = scmp.eq.s32.totalorder %s6987_s18, 0  ;;  %p8641_p11 = scmp.eq.s32.totalorder %s7138_s19, 0 }
  0x5f   : > { %s5517_s13 = sshll.u32 %s7279_s23, 8  ;;  %s5957_s14 = sshll.u32 %s6979_s16, 12 }
  0x60   : > { %p173_p5 = por %p171_p3, %p8640_p12  ;;  %p7285_p6 = por %p177_p4, %p8641_p11 }
  0x61   : > { %p8644_p13 = scmp.lt.s32.totalorder %s6987_s18, 4  ;;  %s8646_s5 = sld [smem:[#allocation52_spill]] }
  0x62   : > { %s8642_s6 = scalar_select %p7285_p6, 1, 0 }
  0x63   : > { %p7293_p2 = pnand %p8644_p13, %p173_p5  ;;  %s516_s28 = scalar_lea.vmem [#allocation9], %s5517_s13 }
  0x64   : > { %8643 = sst [smem:[#allocation43_spill]] %s8642_s6  ;;  %s523_s15 = sshll.u32 %s516_s28, 4  ;;  %s7302_s15 = int_to_ptr.vmem [resolvable:$true] %s523_s15 }
  0x65   : > { %s8645_s3 = scalar_select %p7293_p2, 1, 0 }
  0x66   : > { %p7309_p8 = pneg %p7293_p2 }
  0x67   : > { %s7300_s25 = scalar_lea.hbm %s8646_s5, %s5957_s14  ;;  %s6640_s24 = scalar_lea.hbm %s8646_s5, 8192 }
  0x68   : > { %s6635_s20 = scalar_lea.hbm %s7300_s25, 4096  ;;  %p6641_p4 = scmp.lt.u32.totalorder %s7300_s25, %s8646_s5 }
  0x69   : > { %p6636_p9 = scmp.ne.s32.totalorder %s7300_s25, %s6635_s20  ;;  %p6642_p12 = scmp.lt.u32.totalorder %s6640_s24, %s6635_s20 }
  0x6a   : > { %p6644_p11 = scmp.lt.u32.totalorder %s6635_s20, %s7300_s25 }
  0x6b   : > { %p6638_p10 = pnand %p7309_p8, %p6636_p9  ;;  %p6643_p5 = por %p6642_p12, %p6641_p4 }
  0x6d   : > { %p6639_p3 = pneg %p6638_p10  ;;  %p6645_p13 = por %p6644_p11, %p6643_p5 }
  0x6f   : > { %p6646_p7 = pnand %p6645_p13, %p6639_p3 }
  0x71   : > { %6649 = shalt.err (!%p6646_p7)
}
  0x72   : > { %s6650_s1 = scalar_lea.vmem %s7302_s15, 4096  ;;  %s6992_s14 = smov [#allocation9]  }
  0x73   : > { %p6651_p9 = scmp.ne.s32.totalorder %s7302_s15, %s6650_s1  ;;  %s6655_s12 = sshll.u32 %s6992_s14, 4  ;;  %s6656_s12 = int_to_ptr.vmem [resolvable:$false] %s6655_s12 }
  0x74   : > { %s6657_s13 = scalar_lea.vmem %s6656_s12, 8192  ;;  %p6658_p0 = scmp.lt.s32.totalorder %s7302_s15, %s6656_s12 }
  0x75   : > { %p6653_p10 = pnand %p6651_p9, %p7309_p8  ;;  %p6659_p1 = scmp.lt.s32.totalorder %s6657_s13, %s6650_s1 }
  0x77   : > { %p6654_p6 = pneg %p6653_p10  ;;  %p6660_p4 = por %p6659_p1, %p6658_p0 }
  0x79   : > { %p6661_p12 = pnand %p6660_p4, %p6654_p6 }
  0x7b   : > { %6664 = shalt.err (!%p6661_p12)
}
  0x7c   : > { %s8588_s20 = smov 128   ;;  %s8591_s24 = smov 8  }
  0x7d   : > { %s8648_s28 = scalar_lea.sflag [#allocation10], %s7215_s10  ;;  %s5520_s1 = sshll.u32 %s7279_s23, 1 }
  0x7e   : > { %6044 = dma.hbm_to_vmem [thread:$0]  (!%p7293_p2), %s7300_s25, 4096, %s7302_s15, %s8648_s28, %s8588_s20, %s8588_s20, %s8591_s24  }
  0x7f   : > { %s5958_s14 = sshll.u32 %s6979_s16, 5  ;;  %s8649_s7 = sld [smem:[#allocation54_spill]] }
  0x80   : > { %s8650_s8 = sld [smem:[#allocation55_spill]]  ;;  %s563_s19 = scalar_lea.vmem [#allocation12], %s5520_s1 }
  0x81   : > { %s571_s29 = sshll.u32 %s563_s19, 4  ;;  %s560_s15 = scalar_lea.sflag [#allocation13], %s7215_s10  ;;  %s572_s29 = int_to_ptr.vmem [resolvable:$true] %s571_s29 }
  0x85   : > { %s7342_s5 = scalar_lea.hbm %s8649_s7, %s5958_s14 }
  0x86   : > { %s7347_s26 = scalar_lea.hbm %s8650_s8, %s5958_s14  ;;  %s6670_s18 = scalar_lea.hbm %s8650_s8, 64 }
  0x87   : > { %s6665_s25 = scalar_lea.hbm %s7347_s26, 32  ;;  %p6671_p6 = scmp.lt.u32.totalorder %s7347_s26, %s8650_s8 }
  0x88   : > { %p6666_p1 = scmp.ne.s32.totalorder %s7347_s26, %s6665_s25  ;;  %p6672_p3 = scmp.lt.u32.totalorder %s6670_s18, %s6665_s25 }
  0x89   : > { %p6674_p11 = scmp.lt.u32.totalorder %s6665_s25, %s7347_s26 }
  0x8a   : > { %p6668_p7 = pnand %p6666_p1, %p7309_p8  ;;  %p6673_p5 = por %p6672_p3, %p6671_p6 }
  0x8c   : > { %p6669_p0 = pneg %p6668_p7  ;;  %p6675_p13 = por %p6674_p11, %p6673_p5 }
  0x8e   : > { %p6676_p9 = pnand %p6675_p13, %p6669_p0 }
  0x90   : > { %6679 = shalt.err (!%p6676_p9)
}
  0x91   : > { %s6680_s19 = scalar_lea.vmem %s572_s29, 32  ;;  %s6995_s13 = smov [#allocation12]  }
  0x92   : > { %p6681_p10 = scmp.ne.s32.totalorder %s572_s29, %s6680_s19  ;;  %s6685_s20 = sshll.u32 %s6995_s13, 4  ;;  %s6686_s20 = int_to_ptr.vmem [resolvable:$false] %s6685_s20 }
  0x93   : > { %s6687_s28 = scalar_lea.vmem %s6686_s20, 64  ;;  %p6688_p1 = scmp.lt.s32.totalorder %s572_s29, %s6686_s20 }
  0x94   : > { %p6683_p4 = pnand %p6681_p10, %p7309_p8  ;;  %p6689_p7 = scmp.lt.s32.totalorder %s6687_s28, %s6680_s19 }
  0x96   : > { %p6684_p12 = pneg %p6683_p4  ;;  %p6690_p2 = por %p6689_p7, %p6688_p1 }
  0x98   : > { %p6691_p3 = pnand %p6690_p2, %p6684_p12 }
  0x9a   : > { %6694 = shalt.err (!%p6691_p3)
}
  0x9b   : > { %p8651_p6 = scmp.ne.s32.totalorder %s8645_s3, 0  ;;  %s8652_s25 = sshll.u32 %s6983_s17, 9 }
  0x9c   : > { %s8653_s0 = sld [smem:[#allocation47_spill]]  ;;  %s439_s6 = scalar_lea.vmem [#allocation3], %s7203_s2 }
  0x9d   : > { %6050 = dma.hbm_to_vmem [thread:$0]  (!%p8651_p6), %s7347_s26, 32, %s572_s29, %s560_s15  }
  0x9e   : > { %s446_s14 = sshll.u32 %s439_s6, 4  ;;  %s6011_s19 = smul.u32 768, %s7279_s23  ;;  %s7380_s14 = int_to_ptr.vmem [resolvable:$true] %s446_s14 }
  0x9f   : > { %s6012_s13 = smul.u32 12288, %s6979_s16  ;;  %s8654_s28 = sand.u32 1, %s6967_s30  }
  0xa0   : > { %s7385_s24 = scalar_lea.sflag [#allocation4], %s8654_s28  ;;  %p8655_p0 = scmp.ne.s32.totalorder %s8634_s21, 0 }
  0xa2   : > { %s7376_s20 = scalar_lea.hbm %s8653_s0, %s8652_s25  ;;  %p8656_p5 = pneg %p8655_p0 }
  0xa3   : > { %s6695_s26 = scalar_lea.hbm %s7376_s20, 512  ;;  %s6700_s12 = scalar_lea.hbm %s8653_s0, 1024 }
  0xa4   : > { %p6696_p2 = scmp.ne.s32.totalorder %s7376_s20, %s6695_s26  ;;  %p6701_p9 = scmp.lt.u32.totalorder %s7376_s20, %s8653_s0 }
  0xa5   : > { %p6702_p10 = scmp.lt.u32.totalorder %s6700_s12, %s6695_s26  ;;  %p6704_p12 = scmp.lt.u32.totalorder %s6695_s26, %s7376_s20 }
  0xa6   : > { %p6698_p11 = pnand %p6696_p2, %p8656_p5 }
  0xa7   : > { %p6703_p4 = por %p6702_p10, %p6701_p9 }
  0xa8   : > { %p6699_p13 = pneg %p6698_p11 }
  0xa9   : > { %p6705_p1 = por %p6704_p12, %p6703_p4 }
  0xab   : > { %p6706_p7 = pnand %p6705_p1, %p6699_p13 }
  0xad   : > { %6709 = shalt.err (!%p6706_p7)
}
  0xae   : > { %s6710_s6 = scalar_lea.vmem %s7380_s14, 512  ;;  %p8657_p2 = pmov %p8656_p5 }
  0xaf   : > { %p6711_p3 = scmp.ne.s32.totalorder %s7380_s14, %s6710_s6  ;;  %s6996_s28 = smov [#allocation3]  }
  0xb0   : > { %s6715_s29 = sshll.u32 %s6996_s28, 4  ;;  %s6716_s29 = int_to_ptr.vmem [resolvable:$false] %s6715_s29 }
  0xb1   : > { %p6713_p5 = pnand %p6711_p3, %p8657_p2  ;;  %s6717_s25 = scalar_lea.vmem %s6716_s29, 1024 }
  0xb2   : > { %p6718_p6 = scmp.lt.s32.totalorder %s7380_s14, %s6716_s29  ;;  %p6719_p9 = scmp.lt.s32.totalorder %s6717_s25, %s6710_s6 }
  0xb3   : > { %p6714_p11 = pneg %p6713_p5 }
  0xb4   : > { %p6720_p10 = por %p6719_p9, %p6718_p6 }
  0xb6   : > { %p6721_p4 = pnand %p6720_p10, %p6714_p11 }
  0xb8   : > { %6724 = shalt.err (!%p6721_p4)
}
  0xb9   : > { %s8658_s26 = smov 16   ;;  %s8659_s12 = smov 256  }
  0xba   : > { %6035 = dma.hbm_to_vmem [thread:$0]  (!%p8655_p0), %s7376_s20, 512, %s7380_s14, %s7385_s24, %s8659_s12, %s8659_s12, %s8658_s26  }
  0xbb   : > { %s8660_s4 = sld [smem:[#allocation51_spill]]  ;;  %s495_s21 = scalar_lea.vmem [#allocation8], %s6011_s19 }
  0xbc   : > { %s502_s28 = sshll.u32 %s495_s21, 4  ;;  %s7423_s28 = int_to_ptr.vmem [resolvable:$true] %s502_s28 }
  0xc1   : > { %s7419_s6 = scalar_lea.hbm %s8660_s4, %s6012_s13  ;;  %s6730_s14 = scalar_lea.hbm %s8660_s4, 24576 }
  0xc2   : > { %s6725_s29 = scalar_lea.hbm %s7419_s6, 12288  ;;  %p6731_p12 = scmp.lt.u32.totalorder %s7419_s6, %s8660_s4 }
  0xc3   : > { %p6726_p6 = scmp.ne.s32.totalorder %s7419_s6, %s6725_s29  ;;  %p6732_p1 = scmp.lt.u32.totalorder %s6730_s14, %s6725_s29 }
  0xc4   : > { %p6734_p3 = scmp.lt.u32.totalorder %s6725_s29, %s7419_s6 }
  0xc5   : > { %p6728_p13 = pnand %p6726_p6, %p7309_p8  ;;  %p6733_p7 = por %p6732_p1, %p6731_p12 }
  0xc7   : > { %p6729_p0 = pneg %p6728_p13  ;;  %p6735_p2 = por %p6734_p3, %p6733_p7 }
  0xc9   : > { %p6736_p5 = pnand %p6735_p2, %p6729_p0 }
  0xcb   : > { %6739 = shalt.err (!%p6736_p5)
}
  0xcc   : > { %s6740_s19 = scalar_lea.vmem %s7423_s28, 12288  ;;  %s6997_s26 = smov [#allocation8]  }
  0xcd   : > { %p6741_p11 = scmp.ne.s32.totalorder %s7423_s28, %s6740_s19  ;;  %s6745_s12 = sshll.u32 %s6997_s26, 4  ;;  %s6746_s12 = int_to_ptr.vmem [resolvable:$false] %s6745_s12 }
  0xce   : > { %s6747_s18 = scalar_lea.vmem %s6746_s12, 24576  ;;  %p6748_p4 = scmp.lt.s32.totalorder %s7423_s28, %s6746_s12 }
  0xcf   : > { %p6743_p9 = pnand %p6741_p11, %p7309_p8  ;;  %p6749_p6 = scmp.lt.s32.totalorder %s6747_s18, %s6740_s19 }
  0xd1   : > { %p6744_p10 = pneg %p6743_p9  ;;  %p6750_p13 = por %p6749_p6, %p6748_p4 }
  0xd3   : > { %p6751_p12 = pnand %p6750_p13, %p6744_p10 }
  0xd5   : > { %6754 = shalt.err (!%p6751_p12)
}
  0xd6   : > { %s6998_s2 = smov 384   ;;  %s6999_s21 = smov 24  }
  0xd7   : > { %p8661_p0 = scmp.ne.s32.totalorder %s8645_s3, 0  ;;  %s8662_s29 = scalar_lea.sflag [#allocation7], %s7215_s10 }
  0xd8   : > { %s544_s24 = scalar_lea.vmem [#allocation11], %s5520_s1  ;;  %s5526_s14 = sshll.u32 %s7279_s23, 10 }
  0xd9   : > { %6041 = dma.hbm_to_vmem [thread:$0]  (!%p8661_p0), %s7419_s6, 12288, %s7423_s28, %s8662_s29, %s6998_s2, %s6998_s2, %s6999_s21  }
  0xda   : > { %s552_s20 = sshll.u32 %s544_s24, 4  ;;  %s6755_s13 = scalar_lea.hbm %s7342_s5, 32  ;;  %s553_s20 = int_to_ptr.vmem [resolvable:$true] %s552_s20 }
  0xdb   : > { %p6756_p1 = scmp.ne.s32.totalorder %s7342_s5, %s6755_s13  ;;  %s6760_s26 = scalar_lea.hbm %s8649_s7, 64 }
  0xdc   : > { %p6761_p2 = scmp.lt.u32.totalorder %s7342_s5, %s8649_s7  ;;  %p6762_p5 = scmp.lt.u32.totalorder %s6760_s26, %s6755_s13 }
  0xdd   : > { %p6758_p7 = pnand %p6756_p1, %p7309_p8  ;;  %p6764_p9 = scmp.lt.u32.totalorder %s6755_s13, %s7342_s5 }
  0xde   : > { %p6763_p11 = por %p6762_p5, %p6761_p2 }
  0xdf   : > { %p6759_p3 = pneg %p6758_p7 }
  0xe0   : > { %p6765_p10 = por %p6764_p9, %p6763_p11 }
  0xe2   : > { %p6766_p4 = pnand %p6765_p10, %p6759_p3 }
  0xe4   : > { %6769 = shalt.err (!%p6766_p4)
}
  0xe5   : > { %s6770_s1 = scalar_lea.vmem %s553_s20, 32  ;;  %s7000_s6 = smov [#allocation11]  }
  0xe6   : > { %p6771_p6 = scmp.ne.s32.totalorder %s553_s20, %s6770_s1  ;;  %s6775_s28 = sshll.u32 %s7000_s6, 4  ;;  %s6776_s28 = int_to_ptr.vmem [resolvable:$false] %s6775_s28 }
  0xe7   : > { %s6777_s2 = scalar_lea.vmem %s6776_s28, 64  ;;  %p6778_p1 = scmp.lt.s32.totalorder %s553_s20, %s6776_s28 }
  0xe8   : > { %p6773_p13 = pnand %p6771_p6, %p7309_p8  ;;  %p6779_p7 = scmp.lt.s32.totalorder %s6777_s2, %s6770_s1 }
  0xea   : > { %p6774_p12 = pneg %p6773_p13  ;;  %p6780_p0 = por %p6779_p7, %p6778_p1 }
  0xec   : > { %p6781_p2 = pnand %p6780_p0, %p6774_p12 }
  0xee   : > { %6784 = shalt.err (!%p6781_p2)
}
  0xef   : > { %p8663_p5 = scmp.ne.s32.totalorder %s8645_s3, 0  ;;  %s8664_s21 = scalar_lea.sflag [#allocation10], %s7215_s10 }
  0xf0   : > { %s5960_s29 = sshll.u32 %s6979_s16, 14  ;;  %s582_s24 = scalar_lea.vmem [#allocation14], %s5526_s14 }
  0xf1   : > { %6047 = dma.hbm_to_vmem [thread:$0]  (!%p8663_p5), %s7342_s5, 32, %s553_s20, %s8664_s21  }
  0xf2   : > { %s589_s13 = sshll.u32 %s582_s24, 4  ;;  %s8665_s9 = sld [smem:[#allocation56_spill]]  ;;  %s7480_s13 = int_to_ptr.vmem [resolvable:$true] %s589_s13 }
  0xf8   : > { %s7478_s26 = scalar_lea.hbm %s8665_s9, %s5960_s29  ;;  %s6790_s18 = scalar_lea.hbm %s8665_s9, 32768 }
  0xf9   : > { %s6785_s12 = scalar_lea.hbm %s7478_s26, 16384  ;;  %p6791_p9 = scmp.lt.u32.totalorder %s7478_s26, %s8665_s9 }
  0xfa   : > { %p6786_p0 = scmp.ne.s32.totalorder %s7478_s26, %s6785_s12  ;;  %p6792_p10 = scmp.lt.u32.totalorder %s6790_s18, %s6785_s12 }
  0xfb   : > { %p6794_p6 = scmp.lt.u32.totalorder %s6785_s12, %s7478_s26 }
  0xfc   : > { %p6788_p3 = pnand %p6786_p0, %p7309_p8  ;;  %p6793_p4 = por %p6792_p10, %p6791_p9 }
  0xfe   : > { %p6789_p11 = pneg %p6788_p3  ;;  %p6795_p13 = por %p6794_p6, %p6793_p4 }
 0x100   : > { %p6796_p12 = pnand %p6795_p13, %p6789_p11 }
 0x102   : > { %6799 = shalt.err (!%p6796_p12)
}
 0x103   : > { %s6800_s28 = scalar_lea.vmem %s7480_s13, 16384  ;;  %s7001_s2 = smov [#allocation14]  }
 0x104   : > { %p6801_p1 = scmp.ne.s32.totalorder %s7480_s13, %s6800_s28  ;;  %s6805_s21 = sshll.u32 %s7001_s2, 4  ;;  %s6806_s21 = int_to_ptr.vmem [resolvable:$false] %s6805_s21 }
 0x105   : > { %s6807_s24 = scalar_lea.vmem %s6806_s21, 32768  ;;  %p6808_p0 = scmp.lt.s32.totalorder %s7480_s13, %s6806_s21 }
 0x106   : > { %p6803_p7 = pnand %p6801_p1, %p7309_p8  ;;  %p6809_p3 = scmp.lt.s32.totalorder %s6807_s24, %s6800_s28 }
 0x108   : > { %p6804_p2 = pneg %p6803_p7  ;;  %p6810_p9 = por %p6809_p3, %p6808_p0 }
 0x10a   : > { %p6811_p10 = pnand %p6810_p9, %p6804_p2 }
 0x10c   : > { %6814 = shalt.err (!%p6811_p10)
}
 0x10d   : > { %s7002_s25 = smov 512   ;;  %s7003_s19 = smov 32  }
 0x10e   : > { %6053 = dma.hbm_to_vmem [thread:$0]  (!%p8663_p5), %s7478_s26, 16384, %s7480_s13, %s560_s15, %s7002_s25, %s7002_s25, %s7003_s19  }
 0x10f   : > { %s8666_s11 = sld [smem:[#allocation58_spill]]  ;;  %s610_s18 = scalar_lea.vmem [#allocation15], %s5526_s14 }
 0x110   : > { %s617_s1 = sshll.u32 %s610_s18, 4  ;;  %s607_s6 = scalar_lea.sflag [#allocation16], %s7279_s23  ;;  %s7514_s1 = int_to_ptr.vmem [resolvable:$true] %s617_s1 }
 0x115   : > { %s7510_s20 = scalar_lea.hbm %s8666_s11, %s5960_s29  ;;  %s6820_s29 = scalar_lea.hbm %s8666_s11, 32768 }
 0x116   : > { %s6815_s28 = scalar_lea.hbm %s7510_s20, 16384  ;;  %p6821_p13 = scmp.lt.u32.totalorder %s7510_s20, %s8666_s11 }
 0x117   : > { %p6816_p11 = scmp.ne.s32.totalorder %s7510_s20, %s6815_s28  ;;  %p6822_p12 = scmp.lt.u32.totalorder %s6820_s29, %s6815_s28 }
 0x118   : > { %p6824_p7 = scmp.lt.u32.totalorder %s6815_s28, %s7510_s20 }
 0x119   : > { %p6818_p4 = pnand %p6816_p11, %p7309_p8  ;;  %p6823_p1 = por %p6822_p12, %p6821_p13 }
 0x11b   : > { %p6819_p6 = pneg %p6818_p4  ;;  %p6825_p2 = por %p6824_p7, %p6823_p1 }
 0x11d   : > { %p6826_p0 = pnand %p6825_p2, %p6819_p6 }
 0x11f   : > { %6829 = shalt.err (!%p6826_p0)
}
 0x120   : > { %s6830_s14 = scalar_lea.vmem %s7514_s1, 16384  ;;  %s7004_s2 = smov [#allocation15]  }
 0x121   : > { %p6831_p3 = scmp.ne.s32.totalorder %s7514_s1, %s6830_s14  ;;  %s6835_s21 = sshll.u32 %s7004_s2, 4  ;;  %s6836_s21 = int_to_ptr.vmem [resolvable:$false] %s6835_s21 }
 0x122   : > { %s6837_s24 = scalar_lea.vmem %s6836_s21, 32768  ;;  %p6838_p11 = scmp.lt.s32.totalorder %s7514_s1, %s6836_s21 }
 0x123   : > { %p6833_p9 = pnand %p6831_p3, %p7309_p8  ;;  %p6839_p4 = scmp.lt.s32.totalorder %s6837_s24, %s6830_s14 }
 0x125   : > { %p6834_p10 = pneg %p6833_p9  ;;  %p6840_p13 = por %p6839_p4, %p6838_p11 }
 0x127   : > { %p6841_p12 = pnand %p6840_p13, %p6834_p10 }
 0x129   : > { %6844 = shalt.err (!%p6841_p12)
}
 0x12a   : > { %s8667_s25 = smov 8   ;;  %s8668_s19 = smov 128  }
 0x12b   : > { %6056 = dma.hbm_to_vmem [thread:$0]  (!%p8663_p5), %s7510_s20, 16384, %s7514_s1, %s607_s6, %s8668_s19, %s8668_s19, %s8667_s25  }
 0x12c   : > { %p8669_p8 = scmp.ne.s32.totalorder %s8638_s22, 0 }
 0x12e   : > { %636 = sbr.rel (%p8669_p8) target bundleno = 3006 (0xbbe), region = 72 }
 0x135   : > { %s8670_s27 = sld [smem:[#allocation28_spill]]  ;;  %s8671_s12 = sld [smem:[#allocation38_spill]] }
 0x13b   : > { %s7546_s5 = sand.u32 1, %s8670_s27   ;;  %p8673_p6 = scmp.ne.s32.totalorder %s8671_s12, 0 }
 0x13c   : > { %8672 = sst [smem:[#allocation44_spill]] %s7546_s5  ;;  %s7549_s18 = sshll.u32 %s7546_s5, 5 }
 0x13d   : > { %s639_s3 = scalar_lea.sflag [#allocation4], %s7546_s5  ;;  %s7553_s28 = scalar_lea.vmem [#allocation3], %s7549_s18 }
 0x13e   : > { %6918 = dma.done.wait (%p8673_p6), %s639_s3, 512  }
 0x13f   : > { %6920 = vsyncadd (%p8673_p6), %s639_s3, 4294966784  ;;  %s8674_s23 = sld [smem:[#allocation35_spill]]  ;;  %s7561_s1 = scalar_lea.vmem [#allocation6], %s7549_s18 }
 0x145   : > { %s647_s22 = sand.u32 1, %s8674_s23  }
 0x146   : > { %s648_s20 = scalar_lea.sflag [#allocation7], %s647_s22 }
 0x147   : > { %6922 = dma.done.wait (%p8673_p6), %s648_s20, 512  }
 0x148   : > { %6924 = vsyncadd (%p8673_p6), %s648_s20, 4294966784  ;;  %s8675_s6 = sld [smem:[#allocation25_spill]]  ;;  %s8676_s10 = sld [smem:[#allocation43_spill]] }
 0x14e   : > { %s658_s15 = sand.u32 1, %s8675_s6   ;;  %p8677_p5 = scmp.ne.s32.totalorder %s8676_s10, 0 }
 0x14f   : > { %s6013_s29 = smul.u32 768, %s658_s15 }
 0x151   : > { %s7568_s13 = scalar_lea.vmem [#allocation8], %s6013_s29 }
 0x152   : > { %6926 = dma.done.wait (%p8677_p5), %s648_s20, 12288  }
 0x153   : > { %6928 = vsyncadd (%p8677_p5), %s648_s20, 4294955008  ;;  %s5535_s26 = sshll.u32 %s658_s15, 8  ;;  %s666_s14 = scalar_lea.sflag [#allocation10], %s647_s22 }
 0x154   : > { %s7574_s2 = scalar_lea.vmem [#allocation9], %s5535_s26 }
 0x155   : > { %6930 = dma.done.wait (%p8677_p5), %s666_s14, 4128  }
 0x156   : > { %6932 = vsyncadd (%p8677_p5), %s666_s14, 4294963168  ;;  %s5536_s21 = sshll.u32 %s658_s15, 1  ;;  %s684_s25 = scalar_lea.sflag [#allocation13], %s647_s22 }
 0x157   : > { %s7580_s24 = scalar_lea.vmem [#allocation11], %s5536_s21  ;;  %s7582_s19 = scalar_lea.vmem [#allocation12], %s5536_s21 }
 0x158   : > { %8678 = sst [smem:[#allocation45_spill]] %s7582_s19 }
 0x159   : > { %6934 = dma.done.wait (%p8677_p5), %s684_s25, 16416  }
 0x15a   : > { %6936 = vsyncadd (%p8677_p5), %s684_s25, 4294950880  ;;  %s5538_s27 = sshll.u32 %s658_s15, 10  ;;  %s702_s3 = scalar_lea.sflag [#allocation16], %s658_s15 }
 0x15b   : > { %s7588_s12 = scalar_lea.vmem [#allocation14], %s5538_s27  ;;  %s7590_s23 = scalar_lea.vmem [#allocation15], %s5538_s27 }
 0x15c   : > { %8679 = sst [smem:[#allocation46_spill]] %s7590_s23 }
 0x15d   : > { %6938 = dma.done.wait (%p8677_p5), %s702_s3, 16384  }
 0x15e   : > { %6940 = vsyncadd (%p8677_p5), %s702_s3, 4294950912  ;;  %s8680_s22 = sld [smem:[#allocation30_spill]]  ;;  %s8681_s14 = sld [smem:[#allocation49_spill]] }
 0x15f   : > { %s8682_s10 = sld [smem:[#allocation50_spill]]  ;;  %s8683_s7 = sld [smem:[#allocation53_spill]] }
 0x160   : > { %s8684_s17 = sld [smem:[#allocation57_spill]]  ;;  %s7622_s19 = scalar_lea.vmem [#allocation17], %s7549_s18 }
 0x164   : > { %p803_p1 = scmp.lt.s32.totalorder %s8680_s22, 1  ;;  %p5546_p7 = scmp.ne.s32.totalorder %s8680_s22, 0 }
 0x165   : > { %v828_v0 = vld [vmem:[%s7553_s28] sm:$0xff] (!%p5546_p7)  ;;  %v829_v1 = vld [vmem:[%s7553_s28 + $0x8] sm:$0xff] (!%p5546_p7)  ;;  %v830_v2 = vld [vmem:[%s7553_s28 + $0x10] sm:$0xff] (!%p5546_p7) }
 0x166   : > { %s804_s20 = scalar_select %p803_p1, %s8680_s22, 1 }
 0x167   : > { %832 = vst [vmem:[#allocation2] sm:$0xff] (!%p5546_p7), %v828_v0  ;;  %833 = vst [vmem:[#allocation2 + $0x8] sm:$0xff] (!%p5546_p7), %v829_v1  ;;  %v831_v3 = vld [vmem:[%s7553_s28 + $0x18] sm:$0xff] (!%p5546_p7) }
 0x168   : > { %s7598_s6 = sshll.u32 %s804_s20, 1  ;;  %s5544_s29 = sshll.u32 %s804_s20, 3  ;;  %834 = vst [vmem:[#allocation2 + $0x10] sm:$0xff] (!%p5546_p7), %v830_v2  ;;  %835 = vst [vmem:[#allocation2 + $0x18] sm:$0xff] (!%p5546_p7), %v831_v3 }
 0x169   : > { %s806_s21 = scalar_lea.vmem %s8681_s14, %s7598_s6  ;;  %s810_s3 = scalar_lea.vmem %s8682_s10, %s7598_s6 }
 0x16a   : > { %s814_s8 = scalar_lea.vmem %s8683_s7, %s7598_s6  ;;  %s7615_s16 = scalar_lea.vmem %s8684_s17, %s5544_s29 }
 0x16b   : > { %s8685_s20 = sld [smem:[#allocation59_spill]]  ;;  %827 = sbr.rel (%p5546_p7) target bundleno = 370 (0x172), region = 108 }
 0x171   : > { %s822_s23 = scalar_lea.vmem %s8685_s20, %s7598_s6 }
 0x172 PF: > { %v836_v4 = vld [vmem:[#allocation2] sm:$0xff]  ;;  %v837_v5 = vld [vmem:[#allocation2 + $0x8] sm:$0xff]  ;;  %v838_v9 = vld [vmem:[#allocation2 + $0x10] sm:$0xff]  ;;  %vm7006_vm0 = vmmov 0   ;;  %vm2406_vm1 = vcmask 130048   ;;  %s8690_s28 = sld [smem:[#allocation46_spill]] }
 0x173   : > { %v840_v6 = vld [vmem:[%s7561_s1] sm:$0xff]  ;;  %v841_v7 = vld [vmem:[%s7561_s1 + $0x8] sm:$0xff]  ;;  %v839_v10 = vld [vmem:[#allocation2 + $0x18] sm:$0xff] }
 0x174   : > { %v7631_v8 = vadd.f32 %v840_v6, %v836_v4  ;;  %v7633_v11 = vadd.f32 %v841_v7, %v837_v5  ;;  %v842_v12 = vld [vmem:[%s7561_s1 + $0x10] sm:$0xff]  ;;  %v843_v13 = vld [vmem:[%s7561_s1 + $0x18] sm:$0xff]  ;;  %v6215_v0 = vld [vmem:[%s7568_s13 + $0xc] ss:$24 sps:$4 sm:$0xff]   ;;  %v884_v5 = vlaneseq }
 0x175   : > { %v7637_v14 = vadd.f32 %v842_v12, %v838_v9  ;;  %v7639_v15 = vadd.f32 %v843_v13, %v839_v10  ;;  %v6165_v18 = vld [vmem:[%s7568_s13 + $0x4] ss:$24 sps:$4 sm:$0xff]   ;;  %v6167_v19 = vld [vmem:[%s7568_s13] ss:$24 sps:$4 sm:$0xff]   ;;  %v6168_v20 = vld [vmem:[%s7568_s13 + $0x34] ss:$24 sps:$4 sm:$0xff]  }
 0x176   : > { %v850_v16 = vadd.f32 %v7633_v11, %v7631_v8  ;;  %1491 = vmatprep.subr.bf16.mxu1 %v6165_v18  ;;  %v6170_v21 = vld [vmem:[%s7568_s13 + $0x30] ss:$24 sps:$4 sm:$0xff]   ;;  %v6171_v22 = vld [vmem:[%s7568_s13 + $0x64] ss:$24 sps:$4 sm:$0xff]   ;;  %v6173_v23 = vld [vmem:[%s7568_s13 + $0x60] ss:$24 sps:$4 sm:$0xff]  }
 0x177   : > { %v853_v17 = vadd.f32 %v7639_v15, %v7637_v14  ;;  %1492 = vmatpush1.bf16.msra.mxu1 %v6167_v19  ;;  %v6174_v24 = vld [vmem:[%s7568_s13 + $0x94] ss:$24 sps:$4 sm:$0xff]   ;;  %v6176_v25 = vld [vmem:[%s7568_s13 + $0x90] ss:$24 sps:$4 sm:$0xff]   ;;  %v6177_v26 = vld [vmem:[%s7568_s13 + $0xc4] ss:$24 sps:$4 sm:$0xff]  }
 0x178   : > { %851 = vadd.xlane.f32.xlu0 %v850_v16  ;;  %1493 = vmatprep.subr.bf16.mxu1 %v6168_v20  ;;  %v6179_v27 = vld [vmem:[%s7568_s13 + $0xc0] ss:$24 sps:$4 sm:$0xff]   ;;  %v6180_v28 = vld [vmem:[%s7568_s13 + $0xf4] ss:$24 sps:$4 sm:$0xff]   ;;  %v6182_v29 = vld [vmem:[%s7568_s13 + $0xf0] ss:$24 sps:$4 sm:$0xff]  }
 0x179   : > { %v6183_v30 = vld [vmem:[%s7568_s13 + $0x124] ss:$24 sps:$4 sm:$0xff]   ;;  %v6185_v31 = vld [vmem:[%s7568_s13 + $0x120] ss:$24 sps:$4 sm:$0xff]   ;;  %v6186_v32 = vld [vmem:[%s7568_s13 + $0x154] ss:$24 sps:$4 sm:$0xff]  }
 0x17a   : > { %v6188_v33 = vld [vmem:[%s7568_s13 + $0x150] ss:$24 sps:$4 sm:$0xff]   ;;  %v6189_v34 = vld [vmem:[%s7568_s13 + $0x184] ss:$24 sps:$4 sm:$0xff]   ;;  %v6191_v35 = vld [vmem:[%s7568_s13 + $0x180] ss:$24 sps:$4 sm:$0xff]  }
 0x17b   : > { %1494 = vmatpush1.bf16.msra.mxu1 %v6170_v21  ;;  %v6192_v36 = vld [vmem:[%s7568_s13 + $0x1b4] ss:$24 sps:$4 sm:$0xff]   ;;  %v6194_v51 = vld [vmem:[%s7568_s13 + $0x1b0] ss:$24 sps:$4 sm:$0xff]   ;;  %v6195_v52 = vld [vmem:[%s7568_s13 + $0x1e4] ss:$24 sps:$4 sm:$0xff]  }
 0x17c   : > { %854 = vadd.xlane.f32.xlu0 %v853_v17  ;;  %1495 = vmatprep.subr.bf16.mxu1 %v6171_v22  ;;  %v6197_v53 = vld [vmem:[%s7568_s13 + $0x1e0] ss:$24 sps:$4 sm:$0xff]   ;;  %v6198_v54 = vld [vmem:[%s7568_s13 + $0x214] ss:$24 sps:$4 sm:$0xff]   ;;  %v6200_v55 = vld [vmem:[%s7568_s13 + $0x210] ss:$24 sps:$4 sm:$0xff]  }
 0x17d   : > { %v6201_v56 = vld [vmem:[%s7568_s13 + $0x244] ss:$24 sps:$4 sm:$0xff]   ;;  %v6203_v57 = vld [vmem:[%s7568_s13 + $0x240] ss:$24 sps:$4 sm:$0xff]   ;;  %v6204_v58 = vld [vmem:[%s7568_s13 + $0x274] ss:$24 sps:$4 sm:$0xff]  }
 0x17e   : > { %v6206_v59 = vld [vmem:[%s7568_s13 + $0x270] ss:$24 sps:$4 sm:$0xff]   ;;  %v6207_v60 = vld [vmem:[%s7568_s13 + $0x2a4] ss:$24 sps:$4 sm:$0xff]   ;;  %v6209_v61 = vld [vmem:[%s7568_s13 + $0x2a0] ss:$24 sps:$4 sm:$0xff]  }
 0x17f   : > { %1496 = vmatpush1.bf16.msra.mxu1 %v6173_v23  ;;  %v6210_v62 = vld [vmem:[%s7568_s13 + $0x2d4] ss:$24 sps:$4 sm:$0xff]   ;;  %v6212_v63 = vld [vmem:[%s7568_s13 + $0x2d0] ss:$24 sps:$4 sm:$0xff]   ;;  %v7682_v9 = vshrl.u32 %v884_v5, 7 }
 0x180   : > { %1497 = vmatprep.subr.bf16.mxu1 %v6174_v24  ;;  %v848_v13 = vld [vmem:[%s806_s21] sm:$0x3]  ;;  %v6261_v5 = vld [vmem:[%s7568_s13 + $0x10] ss:$24 sps:$4 sm:$0xff]  }
 0x181   : > { %v7685_v10 = vsub.s32 1, %v7682_v9  ;;  %v7688_v12 = vsub.s32 0, %v7682_v9  ;;  %v849_v17 = vld [vmem:[%s810_s3] sm:$0x3] }
 0x183   : > { %1498 = vmatpush1.bf16.msra.mxu1 %v6176_v25  ;;  %v891_v19 = vrot.slane %v848_v13, %v7685_v10  ;;  %v887_v21 = vrot.slane %v848_v13, %v7688_v12  ;;  %v906_v23 = vrot.slane %v849_v17, %v7685_v10  ;;  %v902_v24 = vrot.slane %v849_v17, %v7688_v12  ;;  %v6269_v13 = vld [vmem:[%s7568_s13 + $0x74] ss:$24 sps:$4 sm:$0xff]   ;;  %v6272_v17 = vld [vmem:[%s7568_s13 + $0xa4] ss:$24 sps:$4 sm:$0xff]  }
 0x184   : > { %1499 = vmatprep.subr.bf16.mxu1 %v6177_v26 }
 0x187   : > { %1500 = vmatpush1.bf16.msra.mxu1 %v6179_v27 }
 0x188   : > { %1501 = vmatprep.subr.bf16.mxu1 %v6180_v28 }
 0x18b   : > { %1502 = vmatpush1.bf16.msra.mxu1 %v6182_v29 }
 0x18c   : > { %1503 = vmatprep.subr.bf16.mxu1 %v6183_v30 }
 0x18f   : > { %1504 = vmatpush1.bf16.msra.mxu1 %v6185_v31 }
 0x190   : > { %1505 = vmatprep.subr.bf16.mxu1 %v6186_v32 }
 0x193   : > { %1506 = vmatpush1.bf16.msra.mxu1 %v6188_v33 }
 0x194   : > { %1507 = vmatprep.subr.bf16.mxu1 %v6189_v34 }
 0x197   : > { %1508 = vmatpush1.bf16.msra.mxu1 %v6191_v35 }
 0x198   : > { %1509 = vmatprep.subr.bf16.mxu1 %v6192_v36  ;;  %v6213_v36 = vld [vmem:[%s7568_s13 + $0x8] ss:$24 sps:$4 sm:$0xff]  }
 0x19b   : > { %1510 = vmatpush1.bf16.msra.mxu1 %v6194_v51  ;;  %v6234_v51 = vld [vmem:[%s7568_s13 + $0x158] ss:$24 sps:$4 sm:$0xff]  }
 0x19c   : > { %1511 = vmatprep.subr.bf16.mxu1 %v6195_v52  ;;  %v6239_v52 = vld [vmem:[%s7568_s13 + $0x18c] ss:$24 sps:$4 sm:$0xff]  }
 0x19f   : > { %1512 = vmatpush1.bf16.msra.mxu1 %v6197_v53  ;;  %v6237_v53 = vld [vmem:[%s7568_s13 + $0x188] ss:$24 sps:$4 sm:$0xff]  }
 0x1a0   : > { %1513 = vmatprep.subr.bf16.mxu1 %v6198_v54  ;;  %v6242_v54 = vld [vmem:[%s7568_s13 + $0x1bc] ss:$24 sps:$4 sm:$0xff]  }
 0x1a3   : > { %1514 = vmatpush1.bf16.msra.mxu1 %v6200_v55  ;;  %v6240_v55 = vld [vmem:[%s7568_s13 + $0x1b8] ss:$24 sps:$4 sm:$0xff]  }
 0x1a4   : > { %1515 = vmatprep.subr.bf16.mxu1 %v6201_v56  ;;  %v6245_v56 = vld [vmem:[%s7568_s13 + $0x1ec] ss:$24 sps:$4 sm:$0xff]  }
 0x1a7   : > { %1516 = vmatpush1.bf16.msra.mxu1 %v6203_v57  ;;  %v6243_v57 = vld [vmem:[%s7568_s13 + $0x1e8] ss:$24 sps:$4 sm:$0xff]  }
 0x1a8   : > { %1517 = vmatprep.subr.bf16.mxu1 %v6204_v58  ;;  %v6248_v58 = vld [vmem:[%s7568_s13 + $0x21c] ss:$24 sps:$4 sm:$0xff]  }
 0x1ab   : > { %1518 = vmatpush1.bf16.msra.mxu1 %v6206_v59  ;;  %v6246_v59 = vld [vmem:[%s7568_s13 + $0x218] ss:$24 sps:$4 sm:$0xff]  }
 0x1ac   : > { %1519 = vmatprep.subr.bf16.mxu1 %v6207_v60  ;;  %v6251_v60 = vld [vmem:[%s7568_s13 + $0x24c] ss:$24 sps:$4 sm:$0xff]  }
 0x1af   : > { %1520 = vmatpush1.bf16.msra.mxu1 %v6209_v61  ;;  %v6249_v61 = vld [vmem:[%s7568_s13 + $0x248] ss:$24 sps:$4 sm:$0xff]  }
 0x1b0   : > { %1521 = vmatprep.subr.bf16.mxu1 %v6210_v62  ;;  %v6254_v62 = vld [vmem:[%s7568_s13 + $0x27c] ss:$24 sps:$4 sm:$0xff]  }
 0x1b3   : > { %1522 = vmatpush1.bf16.msra.mxu1 %v6212_v63  ;;  %v6252_v63 = vld [vmem:[%s7568_s13 + $0x278] ss:$24 sps:$4 sm:$0xff]  }
 0x1b4   : > { %1534 = vmatprep.subr.bf16.mxu1 %v6215_v0  ;;  %v6257_v0 = vld [vmem:[%s7568_s13 + $0x2ac] ss:$24 sps:$4 sm:$0xff]  }
 0x205   : > { %v852_v37 = vpop.xlane.xlu0 %851 }
 0x206   : > { %v857_v38 = vmul.f32 0.00390625, %v852_v37 }
 0x208   : > { %v859_v39 = vsub.f32 %v7631_v8, %v857_v38  ;;  %v860_v40 = vsub.f32 %v7633_v11, %v857_v38  ;;  %v6218_v38 = vld [vmem:[%s7568_s13 + $0x3c] ss:$24 sps:$4 sm:$0xff]  }
 0x209   : > { %v855_v41 = vpop.xlane.xlu0 %854 }
 0x20a   : > { %v858_v42 = vmul.f32 0.00390625, %v855_v41  ;;  %v863_v43 = vmul.f32 %v859_v39, %v859_v39  ;;  %v864_v44 = vmul.f32 %v860_v40, %v860_v40  ;;  %v6219_v41 = vld [vmem:[%s7568_s13 + $0x68] ss:$24 sps:$4 sm:$0xff]  }
 0x20c   : > { %v861_v45 = vsub.f32 %v7637_v14, %v858_v42  ;;  %v862_v46 = vsub.f32 %v7639_v15, %v858_v42  ;;  %v867_v47 = vadd.f32 %v864_v44, %v863_v43  ;;  %v6224_v42 = vld [vmem:[%s7568_s13 + $0x9c] ss:$24 sps:$4 sm:$0xff]   ;;  %v6222_v43 = vld [vmem:[%s7568_s13 + $0x98] ss:$24 sps:$4 sm:$0xff]   ;;  %v6227_v44 = vld [vmem:[%s7568_s13 + $0xcc] ss:$24 sps:$4 sm:$0xff]  }
 0x20e   : > { %868 = vadd.xlane.f32.xlu1 %v867_v47  ;;  %v865_v48 = vmul.f32 %v861_v45, %v861_v45  ;;  %v866_v49 = vmul.f32 %v862_v46, %v862_v46  ;;  %v6228_v47 = vld [vmem:[%s7568_s13 + $0xf8] ss:$24 sps:$4 sm:$0xff]  }
 0x210   : > { %v870_v50 = vadd.f32 %v866_v49, %v865_v48  ;;  %v6233_v48 = vld [vmem:[%s7568_s13 + $0x12c] ss:$24 sps:$4 sm:$0xff]   ;;  %v6231_v49 = vld [vmem:[%s7568_s13 + $0x128] ss:$24 sps:$4 sm:$0xff]  }
 0x212   : > { %871 = vadd.xlane.f32.xlu1 %v870_v50  ;;  %v6236_v50 = vld [vmem:[%s7568_s13 + $0x15c] ss:$24 sps:$4 sm:$0xff]  }
 0x29b   : > { %v869_v1 = vpop.xlane.xlu1 %868 }
 0x29c   : > { %v873_v2 = vmul.f32 0.00390625, %v869_v1  ;;  %v6255_v1 = vld [vmem:[%s7568_s13 + $0x2a8] ss:$24 sps:$4 sm:$0xff]  }
 0x29e   : > { %v875_v3 = vadd.f32 1e-05, %v873_v2  ;;  %v6260_v2 = vld [vmem:[%s7568_s13 + $0x2dc] ss:$24 sps:$4 sm:$0xff]  }
 0x29f   : > { %v872_v4 = vpop.xlane.xlu1 %871 }
 0x2a0   : > { %6549 = vrsqrt.f32 %v875_v3  ;;  %v874_v6 = vmul.f32 0.00390625, %v872_v4  ;;  %v6258_v3 = vld [vmem:[%s7568_s13 + $0x2d8] ss:$24 sps:$4 sm:$0xff]   ;;  %v6263_v4 = vld [vmem:[%s7568_s13 + $0x14] ss:$24 sps:$4 sm:$0xff]  }
 0x2a2   : > { %v876_v7 = vadd.f32 1e-05, %v874_v6  ;;  %v6266_v6 = vld [vmem:[%s7568_s13 + $0x44] ss:$24 sps:$4 sm:$0xff]  }
 0x2a4   : > { %6551 = vrsqrt.f32 %v876_v7  ;;  %v6264_v7 = vld [vmem:[%s7568_s13 + $0x40] ss:$24 sps:$4 sm:$0xff]  }
 0x2aa   : > { %v6550_v16 = vpop.eup %6549 }
 0x2ab   : > { %v880_v18 = vmul.f32 %v6550_v16, %v860_v40  ;;  %v879_v20 = vmul.f32 %v6550_v16, %v859_v39  ;;  %v6216_v39 = vld [vmem:[%s7568_s13 + $0x38] ss:$24 sps:$4 sm:$0xff]   ;;  %v6221_v40 = vld [vmem:[%s7568_s13 + $0x6c] ss:$24 sps:$4 sm:$0xff]  }
 0x2ac   : > { %v6267_v16 = vld [vmem:[%s7568_s13 + $0x70] ss:$24 sps:$4 sm:$0xff]  }
 0x2ad   : > { %v895_v26 = vmul.f32 %v891_v19, %v880_v18  ;;  %v894_v28 = vmul.f32 %v887_v21, %v879_v20  ;;  %v6270_v18 = vld [vmem:[%s7568_s13 + $0xa0] ss:$24 sps:$4 sm:$0xff]   ;;  %v6273_v20 = vld [vmem:[%s7568_s13 + $0xd0] ss:$24 sps:$4 sm:$0xff]  }
 0x2ae   : > { %v6552_v22 = vpop.eup %6551 }
 0x2af   : > { %v882_v25 = vmul.f32 %v6552_v22, %v862_v46  ;;  %v881_v27 = vmul.f32 %v6552_v22, %v861_v45  ;;  %v910_v31 = vadd.f32 %v906_v23, %v895_v26  ;;  %v909_v33 = vadd.f32 %v902_v24, %v894_v28  ;;  %v6225_v45 = vld [vmem:[%s7568_s13 + $0xc8] ss:$24 sps:$4 sm:$0xff]   ;;  %v6230_v46 = vld [vmem:[%s7568_s13 + $0xfc] ss:$24 sps:$4 sm:$0xff]  }
 0x2b0   : > { %v6276_v22 = vld [vmem:[%s7568_s13 + $0x100] ss:$24 sps:$4 sm:$0xff]   ;;  %v6284_v26 = vld [vmem:[%s7568_s13 + $0x164] ss:$24 sps:$4 sm:$0xff]   ;;  %v6287_v28 = vld [vmem:[%s7568_s13 + $0x194] ss:$24 sps:$4 sm:$0xff]  }
 0x2b1   : > { %v897_v29 = vmul.f32 %v891_v19, %v882_v25  ;;  %v896_v30 = vmul.f32 %v887_v21, %v881_v27  ;;  %v6275_v19 = vld [vmem:[%s7568_s13 + $0xd4] ss:$24 sps:$4 sm:$0xff]   ;;  %v6278_v21 = vld [vmem:[%s7568_s13 + $0x104] ss:$24 sps:$4 sm:$0xff]   ;;  %v7005_v25 = vmov 0.0  }
 0x2b2   : > { %5971 = vmatprep.subr.bf16.mxu0 %v7005_v25  ;;  %v6282_v27 = vld [vmem:[%s7568_s13 + $0x160] ss:$24 sps:$4 sm:$0xff]   ;;  %5973 = vmatprep.mubr.msk.bf16.mxu0 %vm7006_vm0, %v7005_v25 }
 0x2b3   : > { %v912_v32 = vadd.f32 %v906_v23, %v897_v29  ;;  %v911_v34 = vadd.f32 %v902_v24, %v896_v30  ;;  %v6281_v23 = vld [vmem:[%s7568_s13 + $0x134] ss:$24 sps:$4 sm:$0xff]   ;;  %v6279_v24 = vld [vmem:[%s7568_s13 + $0x130] ss:$24 sps:$4 sm:$0xff]   ;;  %v6290_v30 = vld [vmem:[%s7568_s13 + $0x1c4] ss:$24 sps:$4 sm:$0xff]  }
 0x2b4   : > { %v6285_v29 = vld [vmem:[%s7568_s13 + $0x190] ss:$24 sps:$4 sm:$0xff]  }
 0x2b5   : > { %v7704_v35 = vpack.c.bf16 %v912_v32, %v910_v31  ;;  %v7707_v37 = vpack.c.bf16 %v911_v34, %v909_v33  ;;  %v6288_v31 = vld [vmem:[%s7568_s13 + $0x1c0] ss:$24 sps:$4 sm:$0xff]   ;;  %v6293_v32 = vld [vmem:[%s7568_s13 + $0x1f4] ss:$24 sps:$4 sm:$0xff]   ;;  %v6291_v33 = vld [vmem:[%s7568_s13 + $0x1f0] ss:$24 sps:$4 sm:$0xff]  }
 0x2b6   : > { %v6296_v34 = vld [vmem:[%s7568_s13 + $0x224] ss:$24 sps:$4 sm:$0xff]  }
 0x2b7   : > { %1523 = vmatprep.mubr.bf16.mxu1 %v7704_v35 }
 0x2b8   : > { %1524 = vmatmul.mubr.bf16.vlgmr.msra.gmra.mrb[0].mxu1 %v7707_v37 }
 0x2b9   : > { %1535 = vmatpush1.bf16.msra.mxu1 %v6213_v36  ;;  %1566 = vmatprep.mubr.bf16.mxu1 %v7704_v35  ;;  %v6299_v36 = vld [vmem:[%s7568_s13 + $0x254] ss:$24 sps:$4 sm:$0xff]  }
 0x2ba   : > { %1536 = vmatprep.subr.bf16.mxu1 %v6218_v38  ;;  %v6297_v38 = vld [vmem:[%s7568_s13 + $0x250] ss:$24 sps:$4 sm:$0xff]  }
 0x2bd   : > { %1537 = vmatpush1.bf16.msra.mxu1 %v6216_v39  ;;  %v6302_v39 = vld [vmem:[%s7568_s13 + $0x284] ss:$24 sps:$4 sm:$0xff]  }
 0x2be   : > { %1538 = vmatprep.subr.bf16.mxu1 %v6221_v40  ;;  %v6300_v40 = vld [vmem:[%s7568_s13 + $0x280] ss:$24 sps:$4 sm:$0xff]  }
 0x2c1   : > { %1539 = vmatpush1.bf16.msra.mxu1 %v6219_v41  ;;  %v6305_v41 = vld [vmem:[%s7568_s13 + $0x2b4] ss:$24 sps:$4 sm:$0xff]  }
 0x2c2   : > { %1540 = vmatprep.subr.bf16.mxu1 %v6224_v42  ;;  %v6303_v42 = vld [vmem:[%s7568_s13 + $0x2b0] ss:$24 sps:$4 sm:$0xff]  }
 0x2c5   : > { %1541 = vmatpush1.bf16.msra.mxu1 %v6222_v43  ;;  %v6308_v43 = vld [vmem:[%s7568_s13 + $0x2e4] ss:$24 sps:$4 sm:$0xff]  }
 0x2c6   : > { %1542 = vmatprep.subr.bf16.mxu1 %v6227_v44  ;;  %v6306_v44 = vld [vmem:[%s7568_s13 + $0x2e0] ss:$24 sps:$4 sm:$0xff]  }
 0x2c9   : > { %1543 = vmatpush1.bf16.msra.mxu1 %v6225_v45  ;;  %v7007_v45 = vmov 1983009808  }
 0x2ca   : > { %1544 = vmatprep.subr.bf16.mxu1 %v6230_v46  ;;  %v1626_v46 = vunpack.c.l.s4 %v7007_v45 }
 0x2cd   : > { %1545 = vmatpush1.bf16.msra.mxu1 %v6228_v47  ;;  %v1627_v47 = vunpack.c.0.s8 %v1626_v46 }
 0x2ce   : > { %1546 = vmatprep.subr.bf16.mxu1 %v6233_v48  ;;  %v7008_v48 = vmov 1934713408  }
 0x2d1   : > { %1547 = vmatpush1.bf16.msra.mxu1 %v6231_v49  ;;  %v1657_v49 = vunpack.c.l.s4 %v7008_v48 }
 0x2d2   : > { %1548 = vmatprep.subr.bf16.mxu1 %v6236_v50  ;;  %v7784_v50 = vsub.s32 %v1627_v47, %v7682_v9 }
 0x2d5   : > { %1549 = vmatpush1.bf16.msra.mxu1 %v6234_v51  ;;  %v1658_v51 = vunpack.c.0.s8 %v1657_v49 }
 0x2d6   : > { %1550 = vmatprep.subr.bf16.mxu1 %v6239_v52 }
 0x2d9   : > { %1551 = vmatpush1.bf16.msra.mxu1 %v6237_v53 }
 0x2da   : > { %1552 = vmatprep.subr.bf16.mxu1 %v6242_v54 }
 0x2dd   : > { %1553 = vmatpush1.bf16.msra.mxu1 %v6240_v55 }
 0x2de   : > { %1554 = vmatprep.subr.bf16.mxu1 %v6245_v56 }
 0x2e1   : > { %1555 = vmatpush1.bf16.msra.mxu1 %v6243_v57 }
 0x2e2   : > { %1556 = vmatprep.subr.bf16.mxu1 %v6248_v58 }
 0x2e5   : > { %1557 = vmatpush1.bf16.msra.mxu1 %v6246_v59 }
 0x2e6   : > { %1558 = vmatprep.subr.bf16.mxu1 %v6251_v60  ;;  %v7789_v60 = vsub.s32 %v1658_v51, %v7682_v9 }
 0x2e9   : > { %1559 = vmatpush1.bf16.msra.mxu1 %v6249_v61 }
 0x2ea   : > { %1560 = vmatprep.subr.bf16.mxu1 %v6254_v62 }
 0x2ed   : > { %1561 = vmatpush1.bf16.msra.mxu1 %v6252_v63 }
 0x2ee   : > { %1562 = vmatprep.subr.bf16.mxu1 %v6257_v0 }
 0x2f1   : > { %1563 = vmatpush1.bf16.msra.mxu1 %v6255_v1 }
 0x2f2   : > { %1564 = vmatprep.subr.bf16.mxu1 %v6260_v2 }
 0x2f5   : > { %1565 = vmatpush1.bf16.msra.mxu1 %v6258_v3 }
 0x2f6   : > { %1577 = vmatprep.subr.bf16.mxu1 %v6263_v4 }
 0x2f8   : > { %1567 = vmatmul.mubr.bf16.vlgmr.msra.gmra.mrb[4].mxu1 %v7707_v37 }
 0x2f9   : > { %1578 = vmatpush1.bf16.msra.mxu1 %v6261_v5  ;;  %1609 = vmatprep.mubr.bf16.mxu1 %v7704_v35  ;;  %v6294_v35 = vld [vmem:[%s7568_s13 + $0x220] ss:$24 sps:$4 sm:$0xff]  }
 0x2fa   : > { %1579 = vmatprep.subr.bf16.mxu1 %v6266_v6 }
 0x2fd   : > { %1580 = vmatpush1.bf16.msra.mxu1 %v6264_v7 }
 0x2fe   : > { %1581 = vmatprep.subr.bf16.mxu1 %v6269_v13 }
 0x301   : > { %1582 = vmatpush1.bf16.msra.mxu1 %v6267_v16 }
 0x302   : > { %1583 = vmatprep.subr.bf16.mxu1 %v6272_v17 }
 0x305   : > { %1584 = vmatpush1.bf16.msra.mxu1 %v6270_v18 }
 0x306   : > { %1585 = vmatprep.subr.bf16.mxu1 %v6275_v19 }
 0x309   : > { %1586 = vmatpush1.bf16.msra.mxu1 %v6273_v20 }
 0x30a   : > { %1587 = vmatprep.subr.bf16.mxu1 %v6278_v21 }
 0x30d   : > { %1588 = vmatpush1.bf16.msra.mxu1 %v6276_v22 }
 0x30e   : > { %1589 = vmatprep.subr.bf16.mxu1 %v6281_v23 }
 0x311   : > { %1590 = vmatpush1.bf16.msra.mxu1 %v6279_v24 }
 0x312   : > { %1591 = vmatprep.subr.bf16.mxu1 %v6284_v26 }
 0x315   : > { %1592 = vmatpush1.bf16.msra.mxu1 %v6282_v27 }
 0x316   : > { %1593 = vmatprep.subr.bf16.mxu1 %v6287_v28 }
 0x319   : > { %1594 = vmatpush1.bf16.msra.mxu1 %v6285_v29 }
 0x31a   : > { %1595 = vmatprep.subr.bf16.mxu1 %v6290_v30 }
 0x31d   : > { %1596 = vmatpush1.bf16.msra.mxu1 %v6288_v31 }
 0x31e   : > { %1597 = vmatprep.subr.bf16.mxu1 %v6293_v32 }
 0x321   : > { %1598 = vmatpush1.bf16.msra.mxu1 %v6291_v33 }
 0x322   : > { %1599 = vmatprep.subr.bf16.mxu1 %v6296_v34 }
 0x325   : > { %1600 = vmatpush1.bf16.msra.mxu1 %v6294_v35 }
 0x326   : > { %1601 = vmatprep.subr.bf16.mxu1 %v6299_v36 }
 0x329   : > { %1602 = vmatpush1.bf16.msra.mxu1 %v6297_v38 }
 0x32a   : > { %1603 = vmatprep.subr.bf16.mxu1 %v6302_v39 }
 0x32d   : > { %1604 = vmatpush1.bf16.msra.mxu1 %v6300_v40 }
 0x32e   : > { %1605 = vmatprep.subr.bf16.mxu1 %v6305_v41 }
 0x331   : > { %1606 = vmatpush1.bf16.msra.mxu1 %v6303_v42 }
 0x332   : > { %1607 = vmatprep.subr.bf16.mxu1 %v6308_v43 }
 0x335   : > { %1608 = vmatpush1.bf16.msra.mxu1 %v6306_v44 }
 0x336   : > { %5983 = vmatprep.subr.bf16.mxu1 %v7005_v25 }
 0x338   : > { %1610 = vmatmul.mubr.bf16.vlgmr.msra.gmra.mrb[8].mxu1 %v7707_v37 }
 0x339   : > { %5985 = vmatprep.mubr.msk.bf16.mxu1 %vm7006_vm0, %v7005_v25 }
 0x38b   : > { %v1525_v52 = vpop.f32.mrb[0].mxu1 }
 0x38c   : > { %v1620_v53 = vmul.f32 0.088388346, %v1525_v52  ;;  %v1527_v54 = vpop.f32.mrb[1].mxu1 }
 0x38d   : > { %v1621_v37 = vmul.f32 0.088388346, %v1527_v54  ;;  %v1529_v55 = vpop.f32.mrb[2].mxu1 }
 0x38e   : > { %v1624_v56 = vcombine.high %v1620_v53, %v7005_v25  ;;  %v1631_v57 = vrot.slane %v1620_v53, %v7784_v50  ;;  %v1622_v58 = vmul.f32 0.088388346, %v1529_v55  ;;  %v1531_v59 = vpop.f32.mrb[3].mxu1 }
 0x38f   : > { %v1639_v61 = vcombine.high %v1621_v37, %v7005_v25  ;;  %v1646_v62 = vrot.slane %v1621_v37, %v7784_v50  ;;  %v1623_v63 = vmul.f32 0.088388346, %v1531_v59 }
 0x390   : > { %v1638_v0 = vrot.slane %v1624_v56, %v7784_v50  ;;  %v1690_v1 = vcombine.high %v1622_v58, %v7005_v25  ;;  %v1697_v2 = vrot.slane %v1622_v58, %v7784_v50 }
 0x391   : > { %v1653_v3 = vrot.slane %v1639_v61, %v7784_v50  ;;  %v1654_v4 = vcombine.low %v1631_v57, %v1646_v62  ;;  %v1655_v5 = vcombine.high %v1631_v57, %v1646_v62  ;;  %v1705_v6 = vcombine.high %v1623_v63, %v7005_v25 }
 0x392   : > { %v1704_v7 = vrot.slane %v1690_v1, %v7784_v50  ;;  %v1712_v13 = vrot.slane %v1623_v63, %v7784_v50 }
 0x393   : > { %v1662_v16 = vrot.slane %v1654_v4, %v7789_v60  ;;  %v1669_v17 = vrot.slane %v1655_v5, %v7789_v60  ;;  %v1670_v18 = vcombine.low %v1638_v0, %v1653_v3  ;;  %v1671_v19 = vcombine.high %v1638_v0, %v1653_v3 }
 0x394   : > { %v1719_v20 = vrot.slane %v1705_v6, %v7784_v50  ;;  %v1720_v21 = vcombine.low %v1697_v2, %v1712_v13  ;;  %v1721_v22 = vcombine.high %v1697_v2, %v1712_v13 }
 0x395   : > { %v1678_v23 = vrot.slane %v1670_v18, %v7789_v60  ;;  %v1685_v24 = vrot.slane %v1671_v19, %v7789_v60  ;;  %v1756_v26 = vcombine.low %v1662_v16, %v1669_v17  ;;  %v5643_v27 = vcombine.high %v1662_v16, %v1669_v17 }
 0x396   : > { %v1728_v28 = vrot.slane %v1720_v21, %v7789_v60  ;;  %v1735_v29 = vrot.slane %v1721_v22, %v7789_v60  ;;  %v1736_v30 = vcombine.low %v1704_v7, %v1719_v20  ;;  %v1737_v31 = vcombine.high %v1704_v7, %v1719_v20 }
 0x397   : > { %v1763_v32 = vrot.slane %v1756_v26, %v7784_v50  ;;  %v1771_v33 = vrot.slane %v5643_v27, %v7784_v50  ;;  %v1772_v34 = vcombine.low %v1678_v23, %v1685_v24  ;;  %v5644_v35 = vcombine.high %v1678_v23, %v1685_v24 }
 0x398   : > { %v1744_v36 = vrot.slane %v1736_v30, %v7789_v60  ;;  %v1751_v38 = vrot.slane %v1737_v31, %v7789_v60  ;;  %v1806_v39 = vcombine.low %v1728_v28, %v1735_v29  ;;  %v5645_v40 = vcombine.high %v1728_v28, %v1735_v29 }
 0x399   : > { %v1779_v41 = vrot.slane %v1772_v34, %v7784_v50  ;;  %v1787_v42 = vrot.slane %v5644_v35, %v7784_v50  ;;  %v1788_v43 = vcombine.low %v1763_v32, %v1771_v33 }
 0x39a   : > { %v1813_v44 = vrot.slane %v1806_v39, %v7784_v50  ;;  %v1821_v45 = vrot.slane %v5645_v40, %v7784_v50  ;;  %v1822_v46 = vcombine.low %v1744_v36, %v1751_v38  ;;  %v5646_v47 = vcombine.high %v1744_v36, %v1751_v38 }
 0x39b   : > { %v1796_v48 = vcombine.low %v1779_v41, %v1787_v42  ;;  %v1795_v53 = vrot.slane %v1788_v43, %v7789_v60 }
 0x39c   : > { %v1829_v49 = vrot.slane %v1822_v46, %v7784_v50  ;;  %v1837_v51 = vrot.slane %v5646_v47, %v7784_v50  ;;  %v1838_v52 = vcombine.low %v1813_v44, %v1821_v45 }
 0x39d   : > { %v1803_v54 = vrot.slane %v1796_v48, %v7789_v60 }
 0x39e   : > { %v1846_v37 = vcombine.low %v1829_v49, %v1837_v51  ;;  %v1845_v57 = vrot.slane %v1838_v52, %v7789_v60 }
 0x39f   : > { %v1804_v55 = vcombine.low %v1795_v53, %v1803_v54  ;;  %v1805_v56 = vcombine.high %v1795_v53, %v1803_v54 }
 0x3a0   : > { %v1853_v58 = vrot.slane %v1846_v37, %v7789_v60 }
 0x3a2   : > { %v1854_v59 = vcombine.low %v1845_v57, %v1853_v58  ;;  %v1855_v61 = vcombine.high %v1845_v57, %v1853_v58 }
 0x3a4   : > { %v7821_v62 = vpack.c.bf16 %v1854_v59, %v1804_v55  ;;  %v7823_v63 = vpack.c.bf16 %v1855_v61, %v1805_v56 }
 0x3cb   : > { %v1568_v0 = vpop.f32.mrb[4].mxu1 }
 0x3cc   : > { %v1856_v1 = vcombine.high %v1568_v0, %v7005_v25  ;;  %v1863_v2 = vrot.slane %v1568_v0, %v7784_v50  ;;  %v1570_v3 = vpop.f32.mrb[5].mxu1 }
 0x3cd   : > { %v1871_v4 = vcombine.high %v1570_v3, %v7005_v25  ;;  %v1878_v5 = vrot.slane %v1570_v3, %v7784_v50  ;;  %v1572_v6 = vpop.f32.mrb[6].mxu1 }
 0x3ce   : > { %v1870_v7 = vrot.slane %v1856_v1, %v7784_v50  ;;  %v1922_v13 = vcombine.high %v1572_v6, %v7005_v25  ;;  %v1929_v16 = vrot.slane %v1572_v6, %v7784_v50  ;;  %v1574_v17 = vpop.f32.mrb[7].mxu1 }
 0x3cf   : > { %v1885_v18 = vrot.slane %v1871_v4, %v7784_v50  ;;  %v1886_v19 = vcombine.low %v1863_v2, %v1878_v5  ;;  %v1887_v20 = vcombine.high %v1863_v2, %v1878_v5  ;;  %v1937_v21 = vcombine.high %v1574_v17, %v7005_v25 }
 0x3d0   : > { %v1936_v22 = vrot.slane %v1922_v13, %v7784_v50  ;;  %v1944_v23 = vrot.slane %v1574_v17, %v7784_v50 }
 0x3d1   : > { %v1894_v24 = vrot.slane %v1886_v19, %v7789_v60  ;;  %v1901_v26 = vrot.slane %v1887_v20, %v7789_v60  ;;  %v1902_v27 = vcombine.low %v1870_v7, %v1885_v18  ;;  %v1903_v28 = vcombine.high %v1870_v7, %v1885_v18 }
 0x3d2   : > { %v1951_v29 = vrot.slane %v1937_v21, %v7784_v50  ;;  %v1952_v30 = vcombine.low %v1929_v16, %v1944_v23  ;;  %v1953_v31 = vcombine.high %v1929_v16, %v1944_v23 }
 0x3d3   : > { %v1910_v32 = vrot.slane %v1902_v27, %v7789_v60  ;;  %v1917_v33 = vrot.slane %v1903_v28, %v7789_v60  ;;  %v1988_v34 = vcombine.low %v1894_v24, %v1901_v26  ;;  %v5647_v35 = vcombine.high %v1894_v24, %v1901_v26 }
 0x3d4   : > { %v1960_v36 = vrot.slane %v1952_v30, %v7789_v60  ;;  %v1967_v38 = vrot.slane %v1953_v31, %v7789_v60  ;;  %v1968_v39 = vcombine.low %v1936_v22, %v1951_v29  ;;  %v1969_v40 = vcombine.high %v1936_v22, %v1951_v29 }
 0x3d5   : > { %v2004_v41 = vcombine.low %v1910_v32, %v1917_v33  ;;  %v5648_v42 = vcombine.high %v1910_v32, %v1917_v33  ;;  %v1995_v43 = vrot.slane %v1988_v34, %v7784_v50  ;;  %v2003_v44 = vrot.slane %v5647_v35, %v7784_v50 }
 0x3d6   : > { %v1976_v45 = vrot.slane %v1968_v39, %v7789_v60  ;;  %v1983_v46 = vrot.slane %v1969_v40, %v7789_v60  ;;  %v2038_v47 = vcombine.low %v1960_v36, %v1967_v38  ;;  %v5649_v48 = vcombine.high %v1960_v36, %v1967_v38 }
 0x3d7   : > { %v2011_v49 = vrot.slane %v2004_v41, %v7784_v50  ;;  %v2019_v51 = vrot.slane %v5648_v42, %v7784_v50  ;;  %v2020_v52 = vcombine.low %v1995_v43, %v2003_v44 }
 0x3d8   : > { %v2054_v53 = vcombine.low %v1976_v45, %v1983_v46  ;;  %v5650_v54 = vcombine.high %v1976_v45, %v1983_v46  ;;  %v2045_v37 = vrot.slane %v2038_v47, %v7784_v50  ;;  %v2053_v55 = vrot.slane %v5649_v48, %v7784_v50 }
 0x3d9   : > { %v2028_v56 = vcombine.low %v2011_v49, %v2019_v51  ;;  %v2027_v61 = vrot.slane %v2020_v52, %v7789_v60 }
 0x3da   : > { %v2061_v57 = vrot.slane %v2054_v53, %v7784_v50  ;;  %v2069_v58 = vrot.slane %v5650_v54, %v7784_v50  ;;  %v2070_v59 = vcombine.low %v2045_v37, %v2053_v55 }
 0x3db   : > { %v2035_v0 = vrot.slane %v2028_v56, %v7789_v60 }
 0x3dc   : > { %v2078_v1 = vcombine.low %v2061_v57, %v2069_v58  ;;  %v2077_v4 = vrot.slane %v2070_v59, %v7789_v60 }
 0x3dd   : > { %v2036_v2 = vcombine.low %v2027_v61, %v2035_v0  ;;  %v2037_v3 = vcombine.high %v2027_v61, %v2035_v0 }
 0x3de   : > { %v2085_v5 = vrot.slane %v2078_v1, %v7789_v60 }
 0x3e0   : > { %v2086_v6 = vcombine.low %v2077_v4, %v2085_v5  ;;  %v2087_v7 = vcombine.high %v2077_v4, %v2085_v5 }
 0x3e2   : > { %v2322_v13 = vpack.c.bf16 %v2086_v6, %v2036_v2  ;;  %v2323_v16 = vpack.c.bf16 %v2087_v7, %v2037_v3 }
 0x3e4   : > { %5972 = vmatpush3.bf16.xpose.msra.mxu0 %v2322_v13 }
 0x3e5   : > { %5977 = vmatprep.subr.bf16.mxu0 %v7005_v25 }
 0x3eb   : > { %5974 = vmatmul.mubr.bf16.vlgmr.msra.gmra.mrb[0].mxu0 %v7821_v62 }
 0x3ec   : > { %5978 = vmatpush3.bf16.xpose.msra.mxu0 %v2323_v16  ;;  %5979 = vmatprep.mubr.msk.bf16.mxu0 %vm7006_vm0, %v7005_v25 }
 0x3f3   : > { %5980 = vmatmul.mubr.bf16.vlgmr.msra.gmra.mrb[4].mxu0 %v7823_v63 }
 0x40b   : > { %v1611_v17 = vpop.f32.mrb[8].mxu1 }
 0x40c   : > { %v2088_v18 = vcombine.high %v1611_v17, %v7005_v25  ;;  %v2095_v19 = vrot.slane %v1611_v17, %v7784_v50  ;;  %v1613_v20 = vpop.f32.mrb[9].mxu1 }
 0x40d   : > { %v2103_v21 = vcombine.high %v1613_v20, %v7005_v25  ;;  %v2110_v22 = vrot.slane %v1613_v20, %v7784_v50  ;;  %v1615_v23 = vpop.f32.mrb[10].mxu1 }
 0x40e   : > { %v2102_v24 = vrot.slane %v2088_v18, %v7784_v50  ;;  %v2154_v62 = vcombine.high %v1615_v23, %v7005_v25  ;;  %v2161_v26 = vrot.slane %v1615_v23, %v7784_v50  ;;  %v1617_v27 = vpop.f32.mrb[11].mxu1 }
 0x40f   : > { %v2117_v63 = vrot.slane %v2103_v21, %v7784_v50  ;;  %v2118_v28 = vcombine.low %v2095_v19, %v2110_v22  ;;  %v2119_v29 = vcombine.high %v2095_v19, %v2110_v22  ;;  %v2169_v30 = vcombine.high %v1617_v27, %v7005_v25 }
 0x410   : > { %v2168_v31 = vrot.slane %v2154_v62, %v7784_v50  ;;  %v2176_v32 = vrot.slane %v1617_v27, %v7784_v50 }
 0x411   : > { %v2126_v33 = vrot.slane %v2118_v28, %v7789_v60  ;;  %v2133_v34 = vrot.slane %v2119_v29, %v7789_v60  ;;  %v2134_v35 = vcombine.low %v2102_v24, %v2117_v63  ;;  %v2135_v36 = vcombine.high %v2102_v24, %v2117_v63 }
 0x412   : > { %v2183_v38 = vrot.slane %v2169_v30, %v7784_v50  ;;  %v2184_v39 = vcombine.low %v2161_v26, %v2176_v32  ;;  %v2185_v40 = vcombine.high %v2161_v26, %v2176_v32 }
 0x413   : > { %v2142_v41 = vrot.slane %v2134_v35, %v7789_v60  ;;  %v2149_v42 = vrot.slane %v2135_v36, %v7789_v60  ;;  %v2220_v43 = vcombine.low %v2126_v33, %v2133_v34  ;;  %v5651_v44 = vcombine.high %v2126_v33, %v2133_v34 }
 0x414   : > { %v2192_v45 = vrot.slane %v2184_v39, %v7789_v60  ;;  %v2199_v46 = vrot.slane %v2185_v40, %v7789_v60  ;;  %v2200_v47 = vcombine.low %v2168_v31, %v2183_v38  ;;  %v2201_v48 = vcombine.high %v2168_v31, %v2183_v38 }
 0x415   : > { %v2227_v49 = vrot.slane %v2220_v43, %v7784_v50  ;;  %v2235_v51 = vrot.slane %v5651_v44, %v7784_v50  ;;  %v2236_v52 = vcombine.low %v2142_v41, %v2149_v42  ;;  %v5652_v53 = vcombine.high %v2142_v41, %v2149_v42 }
 0x416   : > { %v2208_v54 = vrot.slane %v2200_v47, %v7789_v60  ;;  %v2215_v37 = vrot.slane %v2201_v48, %v7789_v60  ;;  %v2270_v55 = vcombine.low %v2192_v45, %v2199_v46  ;;  %v5653_v56 = vcombine.high %v2192_v45, %v2199_v46 }
 0x417   : > { %v2243_v57 = vrot.slane %v2236_v52, %v7784_v50  ;;  %v2251_v58 = vrot.slane %v5652_v53, %v7784_v50  ;;  %v2252_v59 = vcombine.low %v2227_v49, %v2235_v51 }
 0x418   : > { %v2277_v61 = vrot.slane %v2270_v55, %v7784_v50  ;;  %v2285_v0 = vrot.slane %v5653_v56, %v7784_v50  ;;  %v2286_v1 = vcombine.low %v2208_v54, %v2215_v37  ;;  %v5654_v2 = vcombine.high %v2208_v54, %v2215_v37 }
 0x419   : > { %v2260_v3 = vcombine.low %v2243_v57, %v2251_v58  ;;  %v2259_v7 = vrot.slane %v2252_v59, %v7789_v60 }
 0x41a   : > { %v2293_v4 = vrot.slane %v2286_v1, %v7784_v50  ;;  %v2301_v5 = vrot.slane %v5654_v2, %v7784_v50  ;;  %v2302_v6 = vcombine.low %v2277_v61, %v2285_v0 }
 0x41b   : > { %v2267_v13 = vrot.slane %v2260_v3, %v7789_v60 }
 0x41c   : > { %v2310_v16 = vcombine.low %v2293_v4, %v2301_v5  ;;  %v2309_v19 = vrot.slane %v2302_v6, %v7789_v60  ;;  %v6311_v5 = vld [vmem:[%s7574_s2 + $0x4] ss:$8 sps:$4 sm:$0xff]  }
 0x41d   : > { %v2268_v17 = vcombine.low %v2259_v7, %v2267_v13  ;;  %v2269_v18 = vcombine.high %v2259_v7, %v2267_v13 }
 0x41e   : > { %v2317_v20 = vrot.slane %v2310_v16, %v7789_v60 }
 0x420   : > { %v2318_v21 = vcombine.low %v2309_v19, %v2317_v20  ;;  %v2319_v22 = vcombine.high %v2309_v19, %v2317_v20  ;;  %v6314_v19 = vld [vmem:[%s7574_s2 + $0x14] ss:$8 sps:$4 sm:$0xff]   ;;  %v6312_v20 = vld [vmem:[%s7574_s2 + $0x10] ss:$8 sps:$4 sm:$0xff]  }
 0x422   : > { %v2453_v23 = vpack.c.bf16 %v2318_v21, %v2268_v17  ;;  %v7894_v24 = vpack.c.bf16 %v2319_v22, %v2269_v18  ;;  %v6309_v17 = vld [vmem:[%s7574_s2] ss:$8 sps:$4 sm:$0xff]   ;;  %v6317_v21 = vld [vmem:[%s7574_s2 + $0x24] ss:$8 sps:$4 sm:$0xff]  }
 0x423   : > { %v6315_v22 = vld [vmem:[%s7574_s2 + $0x20] ss:$8 sps:$4 sm:$0xff]  }
 0x424   : > { %5984 = vmatpush3.bf16.msra.mxu1 %v2453_v23  ;;  %v6320_v23 = vld [vmem:[%s7574_s2 + $0x34] ss:$8 sps:$4 sm:$0xff]  }
 0x425   : > { %5989 = vmatprep.subr.bf16.mxu1 %v7005_v25 }
 0x4be   : > { %v2358_v62 = vpop.f32.mrb[0].mxu0 }
 0x4bf   : > { %v5975_v26 = vpop.f32.mrb[1].mxu0  ;;  %v2407_v27 = vsel %vm2406_vm1, %v2358_v62, -inf }
 0x4c0   : > { %2408 = vmax.xlane.f32.xlu0 %v2407_v27  ;;  %v2361_v63 = vpop.f32.mrb[2].mxu0  ;;  %v6321_v26 = vld [vmem:[%s7574_s2 + $0x40] ss:$8 sps:$4 sm:$0xff]   ;;  %v6326_v27 = vld [vmem:[%s7574_s2 + $0x54] ss:$8 sps:$4 sm:$0xff]  }
 0x4c1   : > { %v5976_v28 = vpop.f32.mrb[3].mxu0  ;;  %v2410_v29 = vsel %vm2406_vm1, %v2361_v63, -inf }
 0x4c2   : > { %2411 = vmax.xlane.f32.xlu1 %v2410_v29  ;;  %v6329_v28 = vld [vmem:[%s7574_s2 + $0x64] ss:$8 sps:$4 sm:$0xff]   ;;  %v6327_v29 = vld [vmem:[%s7574_s2 + $0x60] ss:$8 sps:$4 sm:$0xff]  }
 0x4c6   : > { %v2399_v30 = vpop.f32.mrb[4].mxu0 }
 0x4c7   : > { %v5981_v31 = vpop.f32.mrb[5].mxu0  ;;  %v2413_v32 = vsel %vm2406_vm1, %v2399_v30, -inf }
 0x4c8   : > { %2414 = vmax.xlane.f32.xlu0 %v2413_v32  ;;  %v2402_v33 = vpop.f32.mrb[6].mxu0  ;;  %v6330_v31 = vld [vmem:[%s7574_s2 + $0x70] ss:$8 sps:$4 sm:$0xff]   ;;  %v6335_v32 = vld [vmem:[%s7574_s2 + $0x84] ss:$8 sps:$4 sm:$0xff]  }
 0x4c9   : > { %v5982_v34 = vpop.f32.mrb[7].mxu0  ;;  %v2416_v35 = vsel %vm2406_vm1, %v2402_v33, -inf }
 0x4ca   : > { %2417 = vmax.xlane.f32.xlu1 %v2416_v35  ;;  %v6338_v34 = vld [vmem:[%s7574_s2 + $0x94] ss:$8 sps:$4 sm:$0xff]   ;;  %v6336_v35 = vld [vmem:[%s7574_s2 + $0x90] ss:$8 sps:$4 sm:$0xff]  }
 0x54d   : > { %v2409_v36 = vpop.xlane.xlu0 %2408 }
 0x54e   : > { %v2419_v38 = vsub.f32 %v2358_v62, %v2409_v36  ;;  %v6323_v62 = vld [vmem:[%s7574_s2 + $0x44] ss:$8 sps:$4 sm:$0xff]  }
 0x54f   : > { %v2412_v39 = vpop.xlane.xlu1 %2411  ;;  %v6341_v36 = vld [vmem:[%s7574_s2 + $0xa4] ss:$8 sps:$4 sm:$0xff]  }
 0x550   : > { %v2423_v40 = vmul.f32 1.442695, %v2419_v38  ;;  %v2420_v41 = vsub.f32 %v2361_v63, %v2412_v39  ;;  %v6324_v63 = vld [vmem:[%s7574_s2 + $0x50] ss:$8 sps:$4 sm:$0xff]   ;;  %v6339_v38 = vld [vmem:[%s7574_s2 + $0xa0] ss:$8 sps:$4 sm:$0xff]  }
 0x551   : > { %v6344_v39 = vld [vmem:[%s7574_s2 + $0xb4] ss:$8 sps:$4 sm:$0xff]  }
 0x552   : > { %6553 = vpow2.f32 %v2423_v40  ;;  %v2425_v42 = vmul.f32 1.442695, %v2420_v41  ;;  %v6342_v40 = vld [vmem:[%s7574_s2 + $0xb0] ss:$8 sps:$4 sm:$0xff]   ;;  %v6347_v41 = vld [vmem:[%s7574_s2 + $0xc4] ss:$8 sps:$4 sm:$0xff]  }
 0x554   : > { %6555 = vpow2.f32 %v2425_v42  ;;  %v6345_v42 = vld [vmem:[%s7574_s2 + $0xc0] ss:$8 sps:$4 sm:$0xff]  }
 0x555   : > { %v2415_v43 = vpop.xlane.xlu0 %2414 }
 0x556   : > { %v2421_v44 = vsub.f32 %v2399_v30, %v2415_v43  ;;  %v6332_v30 = vld [vmem:[%s7574_s2 + $0x74] ss:$8 sps:$4 sm:$0xff]  }
 0x557   : > { %v2418_v45 = vpop.xlane.xlu1 %2417  ;;  %v6350_v43 = vld [vmem:[%s7574_s2 + $0xd4] ss:$8 sps:$4 sm:$0xff]  }
 0x558   : > { %v2427_v46 = vmul.f32 1.442695, %v2421_v44  ;;  %v2422_v47 = vsub.f32 %v2402_v33, %v2418_v45  ;;  %v6333_v33 = vld [vmem:[%s7574_s2 + $0x80] ss:$8 sps:$4 sm:$0xff]   ;;  %v6348_v44 = vld [vmem:[%s7574_s2 + $0xd0] ss:$8 sps:$4 sm:$0xff]  }
 0x559   : > { %v6351_v45 = vld [vmem:[%s7574_s2 + $0xe0] ss:$8 sps:$4 sm:$0xff]  }
 0x55a   : > { %6557 = vpow2.f32 %v2427_v46  ;;  %v2429_v48 = vmul.f32 1.442695, %v2422_v47  ;;  %v6353_v46 = vld [vmem:[%s7574_s2 + $0xe4] ss:$8 sps:$4 sm:$0xff]   ;;  %v6356_v47 = vld [vmem:[%s7574_s2 + $0xf4] ss:$8 sps:$4 sm:$0xff]  }
 0x55c   : > { %v6554_v49 = vpop.eup %6553  ;;  %6559 = vpow2.f32 %v2429_v48  ;;  %v6354_v48 = vld [vmem:[%s7574_s2 + $0xf0] ss:$8 sps:$4 sm:$0xff]  }
 0x55d   : > { %v2431_v51 = vsel %vm2406_vm1, %v6554_v49, 0.0 }
 0x55e   : > { %v6556_v52 = vpop.eup %6555  ;;  %2432 = vadd.xlane.f32.xlu0 %v2431_v51 }
 0x55f   : > { %v2434_v53 = vsel %vm2406_vm1, %v6556_v52, 0.0 }
 0x560   : > { %2435 = vadd.xlane.f32.xlu1 %v2434_v53 }
 0x564   : > { %v6558_v54 = vpop.eup %6557 }
 0x565   : > { %v2437_v37 = vsel %vm2406_vm1, %v6558_v54, 0.0 }
 0x566   : > { %v6560_v55 = vpop.eup %6559  ;;  %2438 = vadd.xlane.f32.xlu0 %v2437_v37 }
 0x567   : > { %v2440_v56 = vsel %vm2406_vm1, %v6560_v55, 0.0 }
 0x568   : > { %2441 = vadd.xlane.f32.xlu1 %v2440_v56 }
 0x5eb   : > { %v2433_v57 = vpop.xlane.xlu0 %2432 }
 0x5ec   : > { %6561 = vrcp.f32 %v2433_v57 }
 0x5ed   : > { %v2436_v58 = vpop.xlane.xlu1 %2435 }
 0x5ee   : > { %6563 = vrcp.f32 %v2436_v58 }
 0x5f3   : > { %v2439_v59 = vpop.xlane.xlu0 %2438 }
 0x5f4   : > { %6565 = vrcp.f32 %v2439_v59 }
 0x5f5   : > { %v2442_v61 = vpop.xlane.xlu1 %2441 }
 0x5f6   : > { %v6562_v0 = vpop.eup %6561  ;;  %6567 = vrcp.f32 %v2442_v61 }
 0x5f7   : > { %v2447_v2 = vmul.f32 %v6562_v0, %v6554_v49 }
 0x5f8   : > { %v6564_v1 = vpop.eup %6563 }
 0x5f9   : > { %v2448_v3 = vmul.f32 %v6564_v1, %v6556_v52 }
 0x5fb   : > { %v2451_v4 = vpack.c.bf16 %v2448_v3, %v2447_v2 }
 0x5fd   : > { %5986 = vmatmul.mubr.msk.bf16.vlgmr.msra.gmra.mrb[12].mxu1 %vm2406_vm1, %v2451_v4 }
 0x5fe   : > { %v6566_v6 = vpop.eup %6565  ;;  %5990 = vmatpush3.bf16.msra.mxu1 %v7894_v24  ;;  %5991 = vmatprep.mubr.msk.bf16.mxu1 %vm7006_vm0, %v7005_v25  ;;  %v6318_v24 = vld [vmem:[%s7574_s2 + $0x30] ss:$8 sps:$4 sm:$0xff]   ;;  %s8692_s2 = sld [smem:[#allocation30_spill]] }
 0x5ff   : > { %2981 = vmatprep.subr.bf16.mxu1 %v6311_v5  ;;  %v2449_v13 = vmul.f32 %v6566_v6, %v6558_v54 }
 0x600   : > { %v6568_v7 = vpop.eup %6567 }
 0x601   : > { %v2450_v16 = vmul.f32 %v6568_v7, %v6560_v55 }
 0x603   : > { %v2452_v18 = vpack.c.bf16 %v2450_v16, %v2449_v13 }
 0x604   : > { %p5949_p2 = scmp.ne.s32.totalorder %s8692_s2, 1 }
 0x605   : > { %5992 = vmatmul.mubr.msk.bf16.vlgmr.msra.gmra.mrb[16].mxu1 %vm2406_vm1, %v2452_v18 }
 0x606   : > { %2982 = vmatpush1.bf16.msra.mxu1 %v6309_v17 }
 0x607   : > { %2983 = vmatprep.subr.bf16.mxu1 %v6314_v19 }
 0x60a   : > { %2984 = vmatpush1.bf16.msra.mxu1 %v6312_v20 }
 0x60b   : > { %2985 = vmatprep.subr.bf16.mxu1 %v6317_v21 }
 0x60e   : > { %2986 = vmatpush1.bf16.msra.mxu1 %v6315_v22 }
 0x60f   : > { %2987 = vmatprep.subr.bf16.mxu1 %v6320_v23 }
 0x612   : > { %2988 = vmatpush1.bf16.msra.mxu1 %v6318_v24 }
 0x613   : > { %2989 = vmatprep.subr.bf16.mxu1 %v6323_v62 }
 0x616   : > { %2990 = vmatpush1.bf16.msra.mxu1 %v6321_v26 }
 0x617   : > { %2991 = vmatprep.subr.bf16.mxu1 %v6326_v27 }
 0x61a   : > { %2992 = vmatpush1.bf16.msra.mxu1 %v6324_v63 }
 0x61b   : > { %2993 = vmatprep.subr.bf16.mxu1 %v6329_v28 }
 0x61e   : > { %2994 = vmatpush1.bf16.msra.mxu1 %v6327_v29 }
 0x61f   : > { %2995 = vmatprep.subr.bf16.mxu1 %v6332_v30 }
 0x622   : > { %2996 = vmatpush1.bf16.msra.mxu1 %v6330_v31 }
 0x623   : > { %2997 = vmatprep.subr.bf16.mxu1 %v6335_v32 }
 0x626   : > { %2998 = vmatpush1.bf16.msra.mxu1 %v6333_v33 }
 0x627   : > { %2999 = vmatprep.subr.bf16.mxu1 %v6338_v34 }
 0x62a   : > { %3000 = vmatpush1.bf16.msra.mxu1 %v6336_v35 }
 0x62b   : > { %3001 = vmatprep.subr.bf16.mxu1 %v6341_v36 }
 0x62e   : > { %3002 = vmatpush1.bf16.msra.mxu1 %v6339_v38 }
 0x62f   : > { %3003 = vmatprep.subr.bf16.mxu1 %v6344_v39 }
 0x632   : > { %3004 = vmatpush1.bf16.msra.mxu1 %v6342_v40 }
 0x633   : > { %3005 = vmatprep.subr.bf16.mxu1 %v6347_v41 }
 0x636   : > { %3006 = vmatpush1.bf16.msra.mxu1 %v6345_v42 }
 0x637   : > { %3007 = vmatprep.subr.bf16.mxu1 %v6350_v43 }
 0x63a   : > { %3008 = vmatpush1.bf16.msra.mxu1 %v6348_v44 }
 0x63b   : > { %3009 = vmatprep.subr.bf16.mxu1 %v6353_v46 }
 0x63e   : > { %3010 = vmatpush1.bf16.msra.mxu1 %v6351_v45 }
 0x63f   : > { %3011 = vmatprep.subr.bf16.mxu1 %v6356_v47 }
 0x642   : > { %3012 = vmatpush1.bf16.msra.mxu1 %v6354_v48 }
 0x6d0   : > { %v2492_v49 = vpop.f32.mrb[12].mxu1 }
 0x6d1   : > { %v5987_v51 = vpop.f32.mrb[13].mxu1  ;;  %v2543_v54 = vcombine.high %v2492_v49, %v7005_v25  ;;  %v2550_v55 = vrot.slane %v2492_v49, %v7784_v50 }
 0x6d2   : > { %v2495_v52 = vpop.f32.mrb[14].mxu1 }
 0x6d3   : > { %v5988_v53 = vpop.f32.mrb[15].mxu1  ;;  %v2557_v59 = vrot.slane %v2543_v54, %v7784_v50  ;;  %v2609_v61 = vcombine.high %v2495_v52, %v7005_v25  ;;  %v2616_v6 = vrot.slane %v2495_v52, %v7784_v50 }
 0x6d5   : > { %v2623_v19 = vrot.slane %v2609_v61, %v7784_v50 }
 0x6d8   : > { %v2536_v37 = vpop.f32.mrb[16].mxu1 }
 0x6d9   : > { %v2558_v56 = vcombine.high %v2536_v37, %v7005_v25  ;;  %v2565_v57 = vrot.slane %v2536_v37, %v7784_v50  ;;  %v5993_v58 = vpop.f32.mrb[17].mxu1 }
 0x6da   : > { %v2539_v0 = vpop.f32.mrb[18].mxu1 }
 0x6db   : > { %v2572_v1 = vrot.slane %v2558_v56, %v7784_v50  ;;  %v2573_v2 = vcombine.low %v2550_v55, %v2565_v57  ;;  %v2574_v3 = vcombine.high %v2550_v55, %v2565_v57  ;;  %v2624_v4 = vcombine.high %v2539_v0, %v7005_v25  ;;  %v5994_v5 = vpop.f32.mrb[19].mxu1 }
 0x6dc   : > { %v2631_v7 = vrot.slane %v2539_v0, %v7784_v50 }
 0x6dd   : > { %v2581_v13 = vrot.slane %v2573_v2, %v7789_v60  ;;  %v2588_v16 = vrot.slane %v2574_v3, %v7789_v60  ;;  %v2589_v17 = vcombine.low %v2557_v59, %v2572_v1  ;;  %v2590_v18 = vcombine.high %v2557_v59, %v2572_v1 }
 0x6de   : > { %v2638_v20 = vrot.slane %v2624_v4, %v7784_v50  ;;  %v2639_v21 = vcombine.low %v2616_v6, %v2631_v7  ;;  %v2640_v22 = vcombine.high %v2616_v6, %v2631_v7 }
 0x6df   : > { %v2597_v23 = vrot.slane %v2589_v17, %v7789_v60  ;;  %v2604_v25 = vrot.slane %v2590_v18, %v7789_v60  ;;  %v2675_v24 = vcombine.low %v2581_v13, %v2588_v16  ;;  %v5657_v62 = vcombine.high %v2581_v13, %v2588_v16 }
 0x6e0   : > { %v2647_v26 = vrot.slane %v2639_v21, %v7789_v60  ;;  %v2654_v27 = vrot.slane %v2640_v22, %v7789_v60  ;;  %v2655_v63 = vcombine.low %v2623_v19, %v2638_v20  ;;  %v2656_v28 = vcombine.high %v2623_v19, %v2638_v20  ;;  %v3098_v20 = vld [vmem:[%s7588_s12 + $0x20] sm:$0xff]  ;;  %v3099_v22 = vld [vmem:[%s7588_s12 + $0x28] sm:$0xff] }
 0x6e1   : > { %v2682_v29 = vrot.slane %v2675_v24, %v7784_v50  ;;  %v2690_v30 = vrot.slane %v5657_v62, %v7784_v50  ;;  %v2691_v31 = vcombine.low %v2597_v23, %v2604_v25  ;;  %v5658_v32 = vcombine.high %v2597_v23, %v2604_v25  ;;  %v3102_v23 = vld [vmem:[%s7588_s12 + $0x40] sm:$0xff] }
 0x6e2   : > { %v2663_v33 = vrot.slane %v2655_v63, %v7789_v60  ;;  %v2670_v34 = vrot.slane %v2656_v28, %v7789_v60  ;;  %v2725_v35 = vcombine.low %v2647_v26, %v2654_v27  ;;  %v5659_v36 = vcombine.high %v2647_v26, %v2654_v27  ;;  %v3106_v25 = vld [vmem:[%s7588_s12 + $0x60] sm:$0xff]  ;;  %v3103_v27 = vld [vmem:[%s7588_s12 + $0x48] sm:$0xff] }
 0x6e3   : > { %v2698_v38 = vrot.slane %v2691_v31, %v7784_v50  ;;  %v2706_v39 = vrot.slane %v5658_v32, %v7784_v50  ;;  %v2707_v40 = vcombine.low %v2682_v29, %v2690_v30  ;;  %v5702_v26 = vcombine.high %v3102_v23, %v3106_v25  ;;  %v3107_v63 = vld [vmem:[%s7588_s12 + $0x68] sm:$0xff]  ;;  %v3110_v28 = vld [vmem:[%s7588_s12 + $0x80] sm:$0xff] }
 0x6e4   : > { %v2732_v41 = vrot.slane %v2725_v35, %v7784_v50  ;;  %v2740_v42 = vrot.slane %v5659_v36, %v7784_v50  ;;  %v2741_v43 = vcombine.low %v2663_v33, %v2670_v34  ;;  %v5660_v44 = vcombine.high %v2663_v33, %v2670_v34  ;;  %v3114_v30 = vld [vmem:[%s7588_s12 + $0xa0] sm:$0xff]  ;;  %v3111_v31 = vld [vmem:[%s7588_s12 + $0x88] sm:$0xff] }
 0x6e5   : > { %v2715_v45 = vcombine.low %v2698_v38, %v2706_v39  ;;  %v2714_v49 = vrot.slane %v2707_v40, %v7789_v60  ;;  %v5704_v29 = vcombine.high %v3103_v27, %v3107_v63  ;;  %v3115_v32 = vld [vmem:[%s7588_s12 + $0xa8] sm:$0xff]  ;;  %v5701_v33 = vcombine.low %v3102_v23, %v3106_v25  ;;  %v3118_v38 = vld [vmem:[%s7588_s12 + $0xc0] sm:$0xff] }
 0x6e6   : > { %v2748_v46 = vrot.slane %v2741_v43, %v7784_v50  ;;  %v2756_v47 = vrot.slane %v5660_v44, %v7784_v50  ;;  %v2757_v48 = vcombine.low %v2732_v41, %v2740_v42  ;;  %v2809_v50 = vld [vmem:[%s814_s8] sm:$0x3]  ;;  %v5703_v34 = vcombine.low %v3103_v27, %v3107_v63  ;;  %v3122_v39 = vld [vmem:[%s7588_s12 + $0xe0] sm:$0xff]  ;;  %v3119_v40 = vld [vmem:[%s7588_s12 + $0xc8] sm:$0xff]  ;;  %s8689_s8 = sld [smem:[#allocation45_spill]] }
 0x6e7   : > { %v2722_v51 = vrot.slane %v2715_v45, %v7789_v60  ;;  %v2814_v61 = vrot.slane %v2809_v50, %v7688_v12  ;;  %v2818_v0 = vrot.slane %v2809_v50, %v7685_v10  ;;  %v5710_v35 = vcombine.high %v3110_v28, %v3114_v30  ;;  %v3123_v41 = vld [vmem:[%s7588_s12 + $0xe8] sm:$0xff]  ;;  %v3162_v23 = vld [vmem:[%s7588_s12 + $0x220] sm:$0xff] }
 0x6e8   : > { %v2765_v52 = vcombine.low %v2748_v46, %v2756_v47  ;;  %v2764_v37 = vrot.slane %v2757_v48, %v7789_v60  ;;  %v5712_v36 = vcombine.high %v3111_v31, %v3115_v32  ;;  %v5709_v42 = vcombine.low %v3110_v28, %v3114_v30  ;;  %v3126_v46 = vld [vmem:[%s7588_s12 + $0x100] sm:$0xff]  ;;  %v3127_v48 = vld [vmem:[%s7588_s12 + $0x108] sm:$0xff] }
 0x6e9   : > { %v2724_v53 = vcombine.high %v2714_v49, %v2722_v51  ;;  %v2723_v54 = vcombine.low %v2714_v49, %v2722_v51  ;;  %v5711_v43 = vcombine.low %v3111_v31, %v3115_v32  ;;  %v5718_v44 = vcombine.high %v3118_v38, %v3122_v39  ;;  %v3130_v47 = vld [vmem:[%s7588_s12 + $0x120] sm:$0xff]  ;;  %v3131_v49 = vld [vmem:[%s7588_s12 + $0x128] sm:$0xff] }
 0x6ea   : > { %v2772_v55 = vrot.slane %v2765_v52, %v7789_v60  ;;  %v5720_v45 = vcombine.high %v3119_v40, %v3123_v41  ;;  %v5717_v51 = vcombine.low %v3118_v38, %v3122_v39  ;;  %v5719_v52 = vcombine.low %v3119_v40, %v3123_v41  ;;  %v3159_v25 = vld [vmem:[%s7588_s12 + $0x208] sm:$0xff]  ;;  %v3166_v28 = vld [vmem:[%s7588_s12 + $0x240] sm:$0xff] }
 0x6eb   : > { %v3167_v30 = vld [vmem:[%s7588_s12 + $0x248] sm:$0xff] }
 0x6ec   : > { %v2774_v56 = vcombine.high %v2764_v37, %v2772_v55  ;;  %v2773_v57 = vcombine.low %v2764_v37, %v2772_v55  ;;  %v3134_v37 = vld [vmem:[%s7588_s12 + $0x140] sm:$0xff]  ;;  %v3171_v31 = vld [vmem:[%s7588_s12 + $0x268] sm:$0xff] }
 0x6ed   : > { %v3138_v55 = vld [vmem:[%s7588_s12 + $0x160] sm:$0xff]  ;;  %v5767_v38 = vcombine.low %v3167_v30, %v3171_v31 }
 0x6ee   : > { %v2776_v58 = vpack.c.bf16 %v2774_v56, %v2724_v53  ;;  %v2775_v59 = vpack.c.bf16 %v2773_v57, %v2723_v54  ;;  %v5726_v53 = vcombine.high %v3126_v46, %v3130_v47  ;;  %v5728_v54 = vcombine.high %v3127_v48, %v3131_v49  ;;  %v3135_v56 = vld [vmem:[%s7588_s12 + $0x148] sm:$0xff] }
 0x6ef   : > { %v3139_v57 = vld [vmem:[%s7588_s12 + $0x168] sm:$0xff]  ;;  %v5734_v50 = vcombine.high %v3134_v37, %v3138_v55 }
 0x6f0   : > { %3013 = vmatprep.mubr.bf16.mxu1 %v2776_v58  ;;  %v5725_v58 = vcombine.low %v3126_v46, %v3130_v47 }
 0x6f1   : > { %3014 = vmatmul.mubr.bf16.vlgmr.msra.gmra.mrb[20].mxu1 %v2775_v59  ;;  %v5727_v59 = vcombine.low %v3127_v48, %v3131_v49 }
 0x7c4   : > { %v3015_v1 = vpop.f32.mrb[20].mxu1 }
 0x7c5   : > { %v3016_v2 = vadd.f32 %v3015_v1, %v2814_v61  ;;  %v3017_v60 = vpop.f32.mrb[21].mxu1  ;;  %v3146_v1 = vld [vmem:[%s7588_s12 + $0x1a0] sm:$0xff] }
 0x7c6   : > { %v3018_v3 = vadd.f32 %v3017_v60, %v2818_v0  ;;  %v3019_v4 = vpop.f32.mrb[22].mxu1  ;;  %v3147_v60 = vld [vmem:[%s7588_s12 + $0x1a8] sm:$0xff] }
 0x7c7   : > { %v7982_v5 = vadd.f32 %v3016_v2, %v7631_v8  ;;  %v3020_v6 = vadd.f32 %v3019_v4, %v2814_v61  ;;  %v3021_v7 = vpop.f32.mrb[23].mxu1  ;;  %v5736_v61 = vcombine.high %v3135_v56, %v3139_v57  ;;  %v3143_v2 = vld [vmem:[%s7588_s12 + $0x188] sm:$0xff]  ;;  %v5735_v4 = vcombine.low %v3135_v56, %v3139_v57 }
 0x7c8   : > { %v7985_v13 = vadd.f32 %v3018_v3, %v7633_v11  ;;  %v3022_v16 = vadd.f32 %v3021_v7, %v2818_v0  ;;  %v3094_v11 = vld [vmem:[%s7588_s12] sm:$0xff]  ;;  %v5733_v3 = vcombine.low %v3134_v37, %v3138_v55  ;;  %v5744_v7 = vcombine.high %v3143_v2, %v3147_v60  ;;  %v3175_v55 = vld [vmem:[%s7588_s12 + $0x288] sm:$0xff] }
 0x7c9   : > { %v7988_v17 = vadd.f32 %v3020_v6, %v7637_v14  ;;  %v3095_v14 = vld [vmem:[%s7588_s12 + $0x8] sm:$0xff]  ;;  %v5693_v21 = vcombine.low %v3094_v11, %v3098_v20  ;;  %v3142_v0 = vld [vmem:[%s7588_s12 + $0x180] sm:$0xff] }
 0x7ca   : > { %v7991_v18 = vadd.f32 %v3022_v16, %v7639_v15  ;;  %v3030_v8 = vadd.f32 %v7985_v13, %v7982_v5  ;;  %v5694_v15 = vcombine.high %v3094_v11, %v3098_v20  ;;  %v5695_v24 = vcombine.low %v3095_v14, %v3099_v22  ;;  %v3150_v16 = vld [vmem:[%s7588_s12 + $0x1c0] sm:$0xff]  ;;  %v3155_v11 = vld [vmem:[%s7588_s12 + $0x1e8] sm:$0xff] }
 0x7cb   : > { %v5696_v62 = vcombine.high %v3095_v14, %v3099_v22  ;;  %v5742_v6 = vcombine.high %v3142_v0, %v3146_v1  ;;  %v5741_v20 = vcombine.low %v3142_v0, %v3146_v1  ;;  %v5743_v14 = vcombine.low %v3143_v2, %v3147_v60  ;;  %v3158_v22 = vld [vmem:[%s7588_s12 + $0x200] sm:$0xff]  ;;  %v3179_v57 = vld [vmem:[%s7588_s12 + $0x2a8] sm:$0xff] }
 0x7cc   : > { %3031 = vadd.xlane.f32.xlu0 %v3030_v8  ;;  %v3033_v19 = vadd.f32 %v7991_v18, %v7988_v17  ;;  %3904 = vmatprep.subr.bf16.mxu0 %v5694_v15  ;;  %v3154_v8 = vld [vmem:[%s7588_s12 + $0x1e0] sm:$0xff]  ;;  %v5758_v27 = vcombine.high %v3158_v22, %v3162_v23  ;;  %v5757_v32 = vcombine.low %v3158_v22, %v3162_v23  ;;  %v3183_v1 = vld [vmem:[%s7588_s12 + $0x2c8] sm:$0xff] }
 0x7cd   : > { %3947 = vmatprep.subr.bf16.mxu1 %v5696_v62  ;;  %3905 = vmatpush1.bf16.msra.mxu0 %v5693_v21  ;;  %v5750_v21 = vcombine.high %v3150_v16, %v3154_v8  ;;  %v5749_v62 = vcombine.low %v3150_v16, %v3154_v8  ;;  %v3178_v37 = vld [vmem:[%s7588_s12 + $0x2a0] sm:$0xff]  ;;  %v3187_v60 = vld [vmem:[%s7588_s12 + $0x2e8] sm:$0xff] }
 0x7ce   : > { %3034 = vadd.xlane.f32.xlu1 %v3033_v19  ;;  %3948 = vmatpush1.bf16.msra.mxu1 %v5695_v24  ;;  %v3151_v19 = vld [vmem:[%s7588_s12 + $0x1c8] sm:$0xff]  ;;  %v3186_v0 = vld [vmem:[%s7588_s12 + $0x2e0] sm:$0xff] }
 0x7cf   : > { %3906 = vmatprep.subr.bf16.mxu0 %v5702_v26  ;;  %3949 = vmatprep.subr.bf16.mxu1 %v5704_v29  ;;  %v5752_v15 = vcombine.high %v3151_v19, %v3155_v11  ;;  %v3163_v24 = vld [vmem:[%s7588_s12 + $0x228] sm:$0xff]  ;;  %v5751_v26 = vcombine.low %v3151_v19, %v3155_v11  ;;  %v3170_v29 = vld [vmem:[%s7588_s12 + $0x260] sm:$0xff] }
 0x7d0   : > { %v5760_v63 = vcombine.high %v3159_v25, %v3163_v24  ;;  %v3194_v16 = vld [vmem:[%s7588_s12 + $0x320] sm:$0xff]  ;;  %v3191_v8 = vld [vmem:[%s7588_s12 + $0x308] sm:$0xff] }
 0x7d1   : > { %3907 = vmatpush1.bf16.msra.mxu0 %v5701_v33  ;;  %v5759_v33 = vcombine.low %v3159_v25, %v3163_v24  ;;  %v3195_v11 = vld [vmem:[%s7588_s12 + $0x328] sm:$0xff]  ;;  %v3202_v22 = vld [vmem:[%s7588_s12 + $0x360] sm:$0xff] }
 0x7d2   : > { %3950 = vmatpush1.bf16.msra.mxu1 %v5703_v34  ;;  %3908 = vmatprep.subr.bf16.mxu0 %v5710_v35  ;;  %v5766_v34 = vcombine.high %v3166_v28, %v3170_v29  ;;  %v5768_v35 = vcombine.high %v3167_v30, %v3171_v31  ;;  %v3199_v23 = vld [vmem:[%s7588_s12 + $0x348] sm:$0xff] }
 0x7d3   : > { %3951 = vmatprep.subr.bf16.mxu1 %v5712_v36  ;;  %v5765_v36 = vcombine.low %v3166_v28, %v3170_v29  ;;  %v3203_v24 = vld [vmem:[%s7588_s12 + $0x368] sm:$0xff]  ;;  %v3210_v28 = vld [vmem:[%s7588_s12 + $0x3a0] sm:$0xff] }
 0x7d4   : > { %v3207_v29 = vld [vmem:[%s7588_s12 + $0x388] sm:$0xff] }
 0x7d5   : > { %3909 = vmatpush1.bf16.msra.mxu0 %v5709_v42  ;;  %v3211_v31 = vld [vmem:[%s7588_s12 + $0x3a8] sm:$0xff] }
 0x7d6   : > { %3952 = vmatpush1.bf16.msra.mxu1 %v5711_v43  ;;  %3910 = vmatprep.subr.bf16.mxu0 %v5718_v44 }
 0x7d7   : > { %3953 = vmatprep.subr.bf16.mxu1 %v5720_v45 }
 0x7d9   : > { %3911 = vmatpush1.bf16.msra.mxu0 %v5717_v51 }
 0x7da   : > { %3954 = vmatpush1.bf16.msra.mxu1 %v5719_v52  ;;  %3912 = vmatprep.subr.bf16.mxu0 %v5726_v53 }
 0x7db   : > { %3955 = vmatprep.subr.bf16.mxu1 %v5728_v54  ;;  %v3174_v54 = vld [vmem:[%s7588_s12 + $0x280] sm:$0xff] }
 0x7dc   : > { %v5774_v56 = vcombine.high %v3174_v54, %v3178_v37 }
 0x7dd   : > { %3913 = vmatpush1.bf16.msra.mxu0 %v5725_v58  ;;  %v5773_v58 = vcombine.low %v3174_v54, %v3178_v37 }
 0x7de   : > { %3956 = vmatpush1.bf16.msra.mxu1 %v5727_v59  ;;  %3914 = vmatprep.subr.bf16.mxu0 %v5734_v50  ;;  %v5775_v59 = vcombine.low %v3175_v55, %v3179_v57  ;;  %v5776_v50 = vcombine.high %v3175_v55, %v3179_v57 }
 0x7df   : > { %3957 = vmatprep.subr.bf16.mxu1 %v5736_v61  ;;  %v3182_v61 = vld [vmem:[%s7588_s12 + $0x2c0] sm:$0xff] }
 0x7e0   : > { %v5782_v2 = vcombine.high %v3182_v61, %v3186_v0 }
 0x7e1   : > { %3915 = vmatpush1.bf16.msra.mxu0 %v5733_v3  ;;  %v5781_v3 = vcombine.low %v3182_v61, %v3186_v0  ;;  %v3028_v0 = vld [vmem:[%s7580_s24] sm:$0x3] }
 0x7e2   : > { %3958 = vmatpush1.bf16.msra.mxu1 %v5735_v4  ;;  %3916 = vmatprep.subr.bf16.mxu0 %v5742_v6  ;;  %v5783_v4 = vcombine.low %v3183_v1, %v3187_v60  ;;  %v5784_v6 = vcombine.high %v3183_v1, %v3187_v60  ;;  %v3029_v1 = vld [vmem:[%s8689_s8] sm:$0x3]  ;;  %v3066_v60 = vrot.slane %v3028_v0, %v7688_v12 }
 0x7e3   : > { %3959 = vmatprep.subr.bf16.mxu1 %v5744_v7  ;;  %v3190_v7 = vld [vmem:[%s7588_s12 + $0x300] sm:$0xff] }
 0x7e4   : > { %v5790_v19 = vcombine.high %v3190_v7, %v3194_v16 }
 0x7e5   : > { %3917 = vmatpush1.bf16.msra.mxu0 %v5741_v20  ;;  %v5789_v20 = vcombine.low %v3190_v7, %v3194_v16  ;;  %v3085_v16 = vrot.slane %v3029_v1, %v7685_v10 }
 0x7e6   : > { %3960 = vmatpush1.bf16.msra.mxu1 %v5743_v14  ;;  %3918 = vmatprep.subr.bf16.mxu0 %v5750_v21  ;;  %v5791_v14 = vcombine.low %v3191_v8, %v3195_v11  ;;  %v5792_v21 = vcombine.high %v3191_v8, %v3195_v11  ;;  %v3081_v8 = vrot.slane %v3029_v1, %v7688_v12 }
 0x7e7   : > { %3961 = vmatprep.subr.bf16.mxu1 %v5752_v15  ;;  %v3198_v15 = vld [vmem:[%s7588_s12 + $0x340] sm:$0xff] }
 0x7e8   : > { %v5798_v25 = vcombine.high %v3198_v15, %v3202_v22 }
 0x7e9   : > { %3919 = vmatpush1.bf16.msra.mxu0 %v5749_v62  ;;  %v5797_v62 = vcombine.low %v3198_v15, %v3202_v22 }
 0x7ea   : > { %3962 = vmatpush1.bf16.msra.mxu1 %v5751_v26  ;;  %3920 = vmatprep.subr.bf16.mxu0 %v5758_v27  ;;  %v5799_v26 = vcombine.low %v3199_v23, %v3203_v24  ;;  %v5800_v27 = vcombine.high %v3199_v23, %v3203_v24  ;;  %v3108_v24 = vld [vmem:[%s7588_s12 + $0x70] sm:$0xff] }
 0x7eb   : > { %3963 = vmatprep.subr.bf16.mxu1 %v5760_v63  ;;  %v3206_v63 = vld [vmem:[%s7588_s12 + $0x380] sm:$0xff] }
 0x7ec   : > { %v5806_v30 = vcombine.high %v3206_v63, %v3210_v28 }
 0x7ed   : > { %3921 = vmatpush1.bf16.msra.mxu0 %v5757_v32  ;;  %v5805_v32 = vcombine.low %v3206_v63, %v3210_v28  ;;  %v3112_v63 = vld [vmem:[%s7588_s12 + $0x90] sm:$0xff] }
 0x7ee   : > { %3964 = vmatpush1.bf16.msra.mxu1 %v5759_v33  ;;  %3922 = vmatprep.subr.bf16.mxu0 %v5766_v34  ;;  %v5807_v33 = vcombine.low %v3207_v29, %v3211_v31  ;;  %v5808_v34 = vcombine.high %v3207_v29, %v3211_v31  ;;  %v3116_v29 = vld [vmem:[%s7588_s12 + $0xb0] sm:$0xff]  ;;  %v3117_v31 = vld [vmem:[%s7588_s12 + $0xb8] sm:$0xff] }
 0x7ef   : > { %3965 = vmatprep.subr.bf16.mxu1 %v5768_v35  ;;  %v3214_v35 = vld [vmem:[%s7588_s12 + $0x3c0] sm:$0xff] }
 0x7f1   : > { %3923 = vmatpush1.bf16.msra.mxu0 %v5765_v36  ;;  %v3218_v36 = vld [vmem:[%s7588_s12 + $0x3e0] sm:$0xff] }
 0x7f2   : > { %3966 = vmatpush1.bf16.msra.mxu1 %v5767_v38  ;;  %3924 = vmatprep.subr.bf16.mxu0 %v5774_v56  ;;  %v3215_v38 = vld [vmem:[%s7588_s12 + $0x3c8] sm:$0xff] }
 0x7f3   : > { %3967 = vmatprep.subr.bf16.mxu1 %v5776_v50 }
 0x7f5   : > { %3925 = vmatpush1.bf16.msra.mxu0 %v5773_v58 }
 0x7f6   : > { %3968 = vmatpush1.bf16.msra.mxu1 %v5775_v59  ;;  %3926 = vmatprep.subr.bf16.mxu0 %v5782_v2  ;;  %v3070_v2 = vrot.slane %v3028_v0, %v7685_v10 }
 0x7f7   : > { %3969 = vmatprep.subr.bf16.mxu1 %v5784_v6 }
 0x7f9   : > { %3927 = vmatpush1.bf16.msra.mxu0 %v5781_v3 }
 0x7fa   : > { %3970 = vmatpush1.bf16.msra.mxu1 %v5783_v4  ;;  %3928 = vmatprep.subr.bf16.mxu0 %v5790_v19 }
 0x7fb   : > { %3971 = vmatprep.subr.bf16.mxu1 %v5792_v21 }
 0x7fd   : > { %3929 = vmatpush1.bf16.msra.mxu0 %v5789_v20 }
 0x7fe   : > { %3972 = vmatpush1.bf16.msra.mxu1 %v5791_v14  ;;  %3930 = vmatprep.subr.bf16.mxu0 %v5798_v25  ;;  %v3104_v25 = vld [vmem:[%s7588_s12 + $0x50] sm:$0xff] }
 0x7ff   : > { %3973 = vmatprep.subr.bf16.mxu1 %v5800_v27 }
 0x801   : > { %3931 = vmatpush1.bf16.msra.mxu0 %v5797_v62  ;;  %v3105_v62 = vld [vmem:[%s7588_s12 + $0x58] sm:$0xff] }
 0x802   : > { %3974 = vmatpush1.bf16.msra.mxu1 %v5799_v26  ;;  %3932 = vmatprep.subr.bf16.mxu0 %v5806_v30  ;;  %v3109_v26 = vld [vmem:[%s7588_s12 + $0x78] sm:$0xff] }
 0x803   : > { %3975 = vmatprep.subr.bf16.mxu1 %v5808_v34  ;;  %v5708_v28 = vcombine.high %v3105_v62, %v3109_v26  ;;  %v3113_v30 = vld [vmem:[%s7588_s12 + $0x98] sm:$0xff]  ;;  %v5714_v34 = vcombine.high %v3112_v63, %v3116_v29 }
 0x805   : > { %3933 = vmatpush1.bf16.msra.mxu0 %v5805_v32  ;;  %v5705_v32 = vcombine.low %v3104_v25, %v3108_v24 }
 0x806   : > { %3976 = vmatpush1.bf16.msra.mxu1 %v5807_v33  ;;  %v5707_v33 = vcombine.low %v3105_v62, %v3109_v26  ;;  %v3165_v62 = vld [vmem:[%s7588_s12 + $0x238] sm:$0xff] }
 0x859   : > { %v3032_v39 = vpop.xlane.xlu0 %3031 }
 0x85a   : > { %v3036_v40 = vmul.f32 0.00390625, %v3032_v39  ;;  %v5813_v39 = vcombine.low %v3214_v35, %v3218_v36 }
 0x85b   : > { %v3035_v41 = vpop.xlane.xlu1 %3034 }
 0x85c   : > { %v8038_v42 = vsub.f32 %v7982_v5, %v3036_v40  ;;  %v8041_v43 = vsub.f32 %v7985_v13, %v3036_v40  ;;  %v3037_v44 = vmul.f32 0.00390625, %v3035_v41  ;;  %v5814_v40 = vcombine.high %v3214_v35, %v3218_v36  ;;  %v3219_v41 = vld [vmem:[%s7588_s12 + $0x3e8] sm:$0xff]  ;;  %v3120_v36 = vld [vmem:[%s7588_s12 + $0xd0] sm:$0xff] }
 0x85d   : > { %v5716_v35 = vcombine.high %v3113_v30, %v3117_v31 }
 0x85e   : > { %v8044_v45 = vsub.f32 %v7988_v17, %v3037_v44  ;;  %v8047_v46 = vsub.f32 %v7991_v18, %v3037_v44  ;;  %v3042_v47 = vmul.f32 %v8038_v42, %v8038_v42  ;;  %v3043_v48 = vmul.f32 %v8041_v43, %v8041_v43  ;;  %3934 = vmatprep.subr.bf16.mxu0 %v5814_v40  ;;  %v3125_v40 = vld [vmem:[%s7588_s12 + $0xf8] sm:$0xff] }
 0x85f   : > { %v5815_v44 = vcombine.low %v3215_v38, %v3219_v41  ;;  %3935 = vmatpush1.bf16.msra.mxu0 %v5813_v39  ;;  %v3121_v39 = vld [vmem:[%s7588_s12 + $0xd8] sm:$0xff] }
 0x860   : > { %v3046_v49 = vadd.f32 %v3043_v48, %v3042_v47  ;;  %v3044_v51 = vmul.f32 %v8044_v45, %v8044_v45  ;;  %v3045_v52 = vmul.f32 %v8047_v46, %v8047_v46  ;;  %v5816_v47 = vcombine.high %v3215_v38, %v3219_v41  ;;  %v3096_v48 = vld [vmem:[%s7588_s12 + $0x10] sm:$0xff] }
 0x861   : > { %v3124_v38 = vld [vmem:[%s7588_s12 + $0xf0] sm:$0xff]  ;;  %v5713_v41 = vcombine.low %v3112_v63, %v3116_v29 }
 0x862   : > { %3047 = vadd.xlane.f32.xlu0 %v3046_v49  ;;  %v3049_v53 = vadd.f32 %v3045_v52, %v3044_v51  ;;  %3977 = vmatprep.subr.bf16.mxu1 %v5816_v47  ;;  %v3100_v49 = vld [vmem:[%s7588_s12 + $0x30] sm:$0xff]  ;;  %v3097_v51 = vld [vmem:[%s7588_s12 + $0x18] sm:$0xff]  ;;  %v5722_v47 = vcombine.high %v3120_v36, %v3124_v38 }
 0x863   : > { %3978 = vmatpush1.bf16.msra.mxu1 %v5815_v44  ;;  %v5698_v52 = vcombine.high %v3096_v48, %v3100_v49  ;;  %v5697_v54 = vcombine.low %v3096_v48, %v3100_v49  ;;  %v5715_v44 = vcombine.low %v3113_v30, %v3117_v31  ;;  %v5724_v48 = vcombine.high %v3121_v39, %v3125_v40  ;;  %v3128_v49 = vld [vmem:[%s7588_s12 + $0x110] sm:$0xff]  ;;  %v3169_v30 = vld [vmem:[%s7588_s12 + $0x258] sm:$0xff] }
 0x864   : > { %3050 = vadd.xlane.f32.xlu1 %v3049_v53  ;;  %v3101_v53 = vld [vmem:[%s7588_s12 + $0x38] sm:$0xff]  ;;  %v3172_v29 = vld [vmem:[%s7588_s12 + $0x270] sm:$0xff] }
 0x865   : > { %v5699_v37 = vcombine.low %v3097_v51, %v3101_v53  ;;  %v5700_v55 = vcombine.high %v3097_v51, %v3101_v53  ;;  %3990 = vmatprep.subr.bf16.mxu0 %v5698_v52  ;;  %v3132_v51 = vld [vmem:[%s7588_s12 + $0x130] sm:$0xff]  ;;  %v3129_v52 = vld [vmem:[%s7588_s12 + $0x118] sm:$0xff] }
 0x866   : > { %v3133_v53 = vld [vmem:[%s7588_s12 + $0x138] sm:$0xff] }
 0x867   : > { %4033 = vmatprep.subr.bf16.mxu1 %v5700_v55  ;;  %v5730_v55 = vcombine.high %v3128_v49, %v3132_v51  ;;  %v5731_v0 = vcombine.low %v3129_v52, %v3133_v53  ;;  %v3173_v31 = vld [vmem:[%s7588_s12 + $0x278] sm:$0xff] }
 0x8ef   : > { %v3048_v56 = vpop.xlane.xlu0 %3047 }
 0x8f0   : > { %v3052_v57 = vmul.f32 0.00390625, %v3048_v56  ;;  %v5732_v56 = vcombine.high %v3129_v52, %v3133_v53  ;;  %v3185_v52 = vld [vmem:[%s7588_s12 + $0x2d8] sm:$0xff] }
 0x8f1   : > { %v3051_v58 = vpop.xlane.xlu1 %3050  ;;  %v3189_v53 = vld [vmem:[%s7588_s12 + $0x2f8] sm:$0xff] }
 0x8f2   : > { %v3054_v59 = vadd.f32 1e-05, %v3052_v57  ;;  %v3053_v50 = vmul.f32 0.00390625, %v3051_v58  ;;  %v3136_v57 = vld [vmem:[%s7588_s12 + $0x150] sm:$0xff] }
 0x8f3   : > { %v3140_v58 = vld [vmem:[%s7588_s12 + $0x170] sm:$0xff] }
 0x8f4   : > { %6569 = vrsqrt.f32 %v3054_v59  ;;  %v3055_v61 = vadd.f32 1e-05, %v3053_v50  ;;  %v3137_v59 = vld [vmem:[%s7588_s12 + $0x158] sm:$0xff]  ;;  %v5738_v1 = vcombine.high %v3136_v57, %v3140_v58 }
 0x8f5   : > { %v3141_v50 = vld [vmem:[%s7588_s12 + $0x178] sm:$0xff] }
 0x8f6   : > { %6571 = vrsqrt.f32 %v3055_v61  ;;  %v5729_v61 = vcombine.low %v3128_v49, %v3132_v51  ;;  %v3184_v49 = vld [vmem:[%s7588_s12 + $0x2d0] sm:$0xff] }
 0x8f7   : > { %v3188_v51 = vld [vmem:[%s7588_s12 + $0x2f0] sm:$0xff] }
 0x8fe   : > { %v6570_v3 = vpop.eup %6569 }
 0x8ff   : > { %v3058_v4 = vmul.f32 %v6570_v3, %v8038_v42  ;;  %v3059_v6 = vmul.f32 %v6570_v3, %v8041_v43  ;;  %v3148_v3 = vld [vmem:[%s7588_s12 + $0x1b0] sm:$0xff] }
 0x900   : > { %v6572_v7 = vpop.eup %6571 }
 0x901   : > { %v3060_v19 = vmul.f32 %v6572_v7, %v8044_v45  ;;  %v3061_v11 = vmul.f32 %v6572_v7, %v8047_v46  ;;  %v3074_v20 = vmul.f32 %v3070_v2, %v3059_v6  ;;  %v3073_v14 = vmul.f32 %v3066_v60, %v3058_v4  ;;  %v3145_v4 = vld [vmem:[%s7588_s12 + $0x198] sm:$0xff] }
 0x902   : > { %v5706_v46 = vcombine.high %v3104_v25, %v3108_v24  ;;  %v3149_v6 = vld [vmem:[%s7588_s12 + $0x1b8] sm:$0xff]  ;;  %v5737_v7 = vcombine.low %v3136_v57, %v3140_v58  ;;  %v3164_v25 = vld [vmem:[%s7588_s12 + $0x230] sm:$0xff] }
 0x903   : > { %v3076_v21 = vmul.f32 %v3070_v2, %v3061_v11  ;;  %v3075_v15 = vmul.f32 %v3066_v60, %v3060_v19  ;;  %v3089_v42 = vadd.f32 %v3085_v16, %v3074_v20  ;;  %v3088_v22 = vadd.f32 %v3081_v8, %v3073_v14  ;;  %v3144_v60 = vld [vmem:[%s7588_s12 + $0x190] sm:$0xff]  ;;  %v3153_v14 = vld [vmem:[%s7588_s12 + $0x1d8] sm:$0xff] }
 0x904   : > { %v5740_v2 = vcombine.high %v3137_v59, %v3141_v50  ;;  %v5748_v19 = vcombine.high %v3145_v4, %v3149_v6  ;;  %v3152_v11 = vld [vmem:[%s7588_s12 + $0x1d0] sm:$0xff]  ;;  %v3161_v24 = vld [vmem:[%s7588_s12 + $0x218] sm:$0xff] }
 0x905   : > { %v3091_v43 = vadd.f32 %v3085_v16, %v3076_v21  ;;  %v3090_v23 = vadd.f32 %v3081_v8, %v3075_v15  ;;  %v5739_v16 = vcombine.low %v3137_v59, %v3141_v50  ;;  %v5746_v8 = vcombine.high %v3144_v60, %v3148_v3  ;;  %v3156_v20 = vld [vmem:[%s7588_s12 + $0x1f0] sm:$0xff]  ;;  %v3157_v21 = vld [vmem:[%s7588_s12 + $0x1f8] sm:$0xff] }
 0x906   : > { %v5745_v15 = vcombine.low %v3144_v60, %v3148_v3  ;;  %v5753_v26 = vcombine.low %v3152_v11, %v3156_v20  ;;  %v3192_v57 = vld [vmem:[%s7588_s12 + $0x310] sm:$0xff]  ;;  %v3193_v59 = vld [vmem:[%s7588_s12 + $0x318] sm:$0xff] }
 0x907   : > { %v3093_v27 = vpack.c.bf16 %v3091_v43, %v3089_v42  ;;  %v8099_v45 = vpack.c.bf16 %v3090_v23, %v3088_v22  ;;  %v5747_v42 = vcombine.low %v3145_v4, %v3149_v6  ;;  %v5754_v43 = vcombine.high %v3152_v11, %v3156_v20  ;;  %v3160_v23 = vld [vmem:[%s7588_s12 + $0x210] sm:$0xff]  ;;  %v3197_v50 = vld [vmem:[%s7588_s12 + $0x338] sm:$0xff] }
 0x908   : > { %v5756_v22 = vcombine.high %v3153_v14, %v3157_v21  ;;  %v5762_v63 = vcombine.high %v3160_v23, %v3164_v25  ;;  %v3196_v58 = vld [vmem:[%s7588_s12 + $0x330] sm:$0xff]  ;;  %v3201_v4 = vld [vmem:[%s7588_s12 + $0x358] sm:$0xff] }
 0x909   : > { %3936 = vmatprep.mubr.bf16.mxu0 %v3093_v27  ;;  %3979 = vmatprep.mubr.bf16.mxu1 %v3093_v27  ;;  %v3200_v60 = vld [vmem:[%s7588_s12 + $0x350] sm:$0xff]  ;;  %v3205_v6 = vld [vmem:[%s7588_s12 + $0x378] sm:$0xff] }
 0x90a   : > { %3937 = vmatmul.mubr.bf16.vlgmr.msra.gmra.mrb[8].mxu0 %v8099_v45  ;;  %3980 = vmatmul.mubr.bf16.vlgmr.msra.gmra.mrb[24].mxu1 %v8099_v45  ;;  %v3204_v3 = vld [vmem:[%s7588_s12 + $0x370] sm:$0xff] }
 0x90b   : > { %3991 = vmatpush1.bf16.msra.mxu0 %v5697_v54  ;;  %4034 = vmatpush1.bf16.msra.mxu1 %v5699_v37  ;;  %v5721_v54 = vcombine.low %v3120_v36, %v3124_v38  ;;  %v5723_v37 = vcombine.low %v3121_v39, %v3125_v40  ;;  %v3176_v36 = vld [vmem:[%s7588_s12 + $0x290] sm:$0xff]  ;;  %v3177_v39 = vld [vmem:[%s7588_s12 + $0x298] sm:$0xff] }
 0x90c   : > { %4022 = vmatprep.mubr.bf16.mxu0 %v3093_v27  ;;  %4065 = vmatprep.mubr.bf16.mxu1 %v3093_v27  ;;  %v5755_v27 = vcombine.low %v3153_v14, %v3157_v21  ;;  %v3180_v38 = vld [vmem:[%s7588_s12 + $0x2b0] sm:$0xff]  ;;  %v3181_v40 = vld [vmem:[%s7588_s12 + $0x2b8] sm:$0xff] }
 0x90d   : > { %3992 = vmatprep.subr.bf16.mxu0 %v5706_v46  ;;  %4035 = vmatprep.subr.bf16.mxu1 %v5708_v28  ;;  %v5764_v46 = vcombine.high %v3161_v24, %v3165_v62  ;;  %v3168_v28 = vld [vmem:[%s7588_s12 + $0x250] sm:$0xff]  ;;  %v3209_v14 = vld [vmem:[%s7588_s12 + $0x398] sm:$0xff] }
 0x90e   : > { %v3208_v11 = vld [vmem:[%s7588_s12 + $0x390] sm:$0xff]  ;;  %v3213_v21 = vld [vmem:[%s7588_s12 + $0x3b8] sm:$0xff] }
 0x90f   : > { %3993 = vmatpush1.bf16.msra.mxu0 %v5705_v32  ;;  %4036 = vmatpush1.bf16.msra.mxu1 %v5707_v33  ;;  %v5761_v32 = vcombine.low %v3160_v23, %v3164_v25  ;;  %v5763_v33 = vcombine.low %v3161_v24, %v3165_v62  ;;  %v3212_v20 = vld [vmem:[%s7588_s12 + $0x3b0] sm:$0xff]  ;;  %v3217_v24 = vld [vmem:[%s7588_s12 + $0x3d8] sm:$0xff] }
 0x910   : > { %3994 = vmatprep.subr.bf16.mxu0 %v5714_v34  ;;  %4037 = vmatprep.subr.bf16.mxu1 %v5716_v35  ;;  %v5770_v34 = vcombine.high %v3168_v28, %v3172_v29  ;;  %v5772_v35 = vcombine.high %v3169_v30, %v3173_v31  ;;  %v3216_v23 = vld [vmem:[%s7588_s12 + $0x3d0] sm:$0xff]  ;;  %v3221_v62 = vld [vmem:[%s7588_s12 + $0x3f8] sm:$0xff] }
 0x911   : > { %v3220_v25 = vld [vmem:[%s7588_s12 + $0x3f0] sm:$0xff] }
 0x913   : > { %3995 = vmatpush1.bf16.msra.mxu0 %v5713_v41  ;;  %4038 = vmatpush1.bf16.msra.mxu1 %v5715_v44  ;;  %v5769_v41 = vcombine.low %v3168_v28, %v3172_v29  ;;  %v5771_v44 = vcombine.low %v3169_v30, %v3173_v31  ;;  %v5817_v28 = vcombine.low %v3216_v23, %v3220_v25  ;;  %v6359_v30 = vld [vmem:[%s8690_s28 + $0x4] ss:$8 sps:$4 sm:$0xff]   ;;  %v6357_v31 = vld [vmem:[%s8690_s28] ss:$8 sps:$4 sm:$0xff]  }
 0x914   : > { %3996 = vmatprep.subr.bf16.mxu0 %v5722_v47  ;;  %4039 = vmatprep.subr.bf16.mxu1 %v5724_v48  ;;  %v5778_v47 = vcombine.high %v3176_v36, %v3180_v38  ;;  %v5780_v48 = vcombine.high %v3177_v39, %v3181_v40  ;;  %v5819_v29 = vcombine.low %v3217_v24, %v3221_v62 }
 0x917   : > { %3997 = vmatpush1.bf16.msra.mxu0 %v5721_v54  ;;  %4040 = vmatpush1.bf16.msra.mxu1 %v5723_v37  ;;  %v5777_v54 = vcombine.low %v3176_v36, %v3180_v38  ;;  %v5779_v37 = vcombine.low %v3177_v39, %v3181_v40  ;;  %v6368_v36 = vld [vmem:[%s8690_s28 + $0x34] ss:$8 sps:$4 sm:$0xff]   ;;  %v6366_v38 = vld [vmem:[%s8690_s28 + $0x30] ss:$8 sps:$4 sm:$0xff]   ;;  %v6371_v39 = vld [vmem:[%s8690_s28 + $0x44] ss:$8 sps:$4 sm:$0xff]  }
 0x918   : > { %3998 = vmatprep.subr.bf16.mxu0 %v5730_v55  ;;  %4041 = vmatprep.subr.bf16.mxu1 %v5732_v56  ;;  %v5786_v55 = vcombine.high %v3184_v49, %v3188_v51  ;;  %v5788_v56 = vcombine.high %v3185_v52, %v3189_v53  ;;  %v6374_v40 = vld [vmem:[%s8690_s28 + $0x54] ss:$8 sps:$4 sm:$0xff]  }
 0x91b   : > { %3999 = vmatpush1.bf16.msra.mxu0 %v5729_v61  ;;  %4042 = vmatpush1.bf16.msra.mxu1 %v5731_v0  ;;  %v5785_v61 = vcombine.low %v3184_v49, %v3188_v51  ;;  %v5787_v0 = vcombine.low %v3185_v52, %v3189_v53  ;;  %v6378_v49 = vld [vmem:[%s8690_s28 + $0x70] ss:$8 sps:$4 sm:$0xff]   ;;  %v6383_v51 = vld [vmem:[%s8690_s28 + $0x84] ss:$8 sps:$4 sm:$0xff]   ;;  %v6381_v52 = vld [vmem:[%s8690_s28 + $0x80] ss:$8 sps:$4 sm:$0xff]  }
 0x91c   : > { %4000 = vmatprep.subr.bf16.mxu0 %v5738_v1  ;;  %4043 = vmatprep.subr.bf16.mxu1 %v5740_v2  ;;  %v5794_v1 = vcombine.high %v3192_v57, %v3196_v58  ;;  %v5796_v2 = vcombine.high %v3193_v59, %v3197_v50  ;;  %v6386_v53 = vld [vmem:[%s8690_s28 + $0x94] ss:$8 sps:$4 sm:$0xff]  }
 0x91f   : > { %4001 = vmatpush1.bf16.msra.mxu0 %v5737_v7  ;;  %4044 = vmatpush1.bf16.msra.mxu1 %v5739_v16  ;;  %v5793_v7 = vcombine.low %v3192_v57, %v3196_v58  ;;  %v5795_v16 = vcombine.low %v3193_v59, %v3197_v50  ;;  %v6390_v57 = vld [vmem:[%s8690_s28 + $0xb0] ss:$8 sps:$4 sm:$0xff]   ;;  %v6395_v58 = vld [vmem:[%s8690_s28 + $0xc4] ss:$8 sps:$4 sm:$0xff]   ;;  %v6393_v59 = vld [vmem:[%s8690_s28 + $0xc0] ss:$8 sps:$4 sm:$0xff]  }
 0x920   : > { %4002 = vmatprep.subr.bf16.mxu0 %v5746_v8  ;;  %4045 = vmatprep.subr.bf16.mxu1 %v5748_v19  ;;  %v5802_v8 = vcombine.high %v3200_v60, %v3204_v3  ;;  %v5804_v19 = vcombine.high %v3201_v4, %v3205_v6  ;;  %v6398_v50 = vld [vmem:[%s8690_s28 + $0xd4] ss:$8 sps:$4 sm:$0xff]  }
 0x923   : > { %4003 = vmatpush1.bf16.msra.mxu0 %v5745_v15  ;;  %4046 = vmatpush1.bf16.msra.mxu1 %v5747_v42  ;;  %v5801_v15 = vcombine.low %v3200_v60, %v3204_v3  ;;  %v5803_v42 = vcombine.low %v3201_v4, %v3205_v6  ;;  %v6402_v60 = vld [vmem:[%s8690_s28 + $0xf0] ss:$8 sps:$4 sm:$0xff]   ;;  %v6407_v3 = vld [vmem:[%s8690_s28 + $0x104] ss:$8 sps:$4 sm:$0xff]   ;;  %v3234_v4 = vsub.s32 2, %v7682_v9 }
 0x924   : > { %4004 = vmatprep.subr.bf16.mxu0 %v5754_v43  ;;  %4047 = vmatprep.subr.bf16.mxu1 %v5756_v22  ;;  %v5810_v43 = vcombine.high %v3208_v11, %v3212_v20  ;;  %v5812_v22 = vcombine.high %v3209_v14, %v3213_v21  ;;  %v8196_v6 = vld [vmem:[%s7615_s16] sm:$0xff] }
 0x927   : > { %4005 = vmatpush1.bf16.msra.mxu0 %v5753_v26  ;;  %4048 = vmatpush1.bf16.msra.mxu1 %v5755_v27  ;;  %v5809_v26 = vcombine.low %v3208_v11, %v3212_v20  ;;  %v5811_v27 = vcombine.low %v3209_v14, %v3213_v21 }
 0x928   : > { %4006 = vmatprep.subr.bf16.mxu0 %v5762_v63  ;;  %4049 = vmatprep.subr.bf16.mxu1 %v5764_v46  ;;  %v5818_v63 = vcombine.high %v3216_v23, %v3220_v25  ;;  %v5820_v46 = vcombine.high %v3217_v24, %v3221_v62 }
 0x92b   : > { %4007 = vmatpush1.bf16.msra.mxu0 %v5761_v32  ;;  %4050 = vmatpush1.bf16.msra.mxu1 %v5763_v33  ;;  %v6362_v32 = vld [vmem:[%s8690_s28 + $0x14] ss:$8 sps:$4 sm:$0xff]   ;;  %v6360_v33 = vld [vmem:[%s8690_s28 + $0x10] ss:$8 sps:$4 sm:$0xff]  }
 0x92c   : > { %4008 = vmatprep.subr.bf16.mxu0 %v5770_v34  ;;  %4051 = vmatprep.subr.bf16.mxu1 %v5772_v35  ;;  %v6365_v34 = vld [vmem:[%s8690_s28 + $0x24] ss:$8 sps:$4 sm:$0xff]   ;;  %v6363_v35 = vld [vmem:[%s8690_s28 + $0x20] ss:$8 sps:$4 sm:$0xff]  }
 0x92f   : > { %4009 = vmatpush1.bf16.msra.mxu0 %v5769_v41  ;;  %4052 = vmatpush1.bf16.msra.mxu1 %v5771_v44  ;;  %v6372_v41 = vld [vmem:[%s8690_s28 + $0x50] ss:$8 sps:$4 sm:$0xff]   ;;  %v6377_v44 = vld [vmem:[%s8690_s28 + $0x64] ss:$8 sps:$4 sm:$0xff]  }
 0x930   : > { %4010 = vmatprep.subr.bf16.mxu0 %v5778_v47  ;;  %4053 = vmatprep.subr.bf16.mxu1 %v5780_v48  ;;  %v6375_v47 = vld [vmem:[%s8690_s28 + $0x60] ss:$8 sps:$4 sm:$0xff]   ;;  %v6380_v48 = vld [vmem:[%s8690_s28 + $0x74] ss:$8 sps:$4 sm:$0xff]  }
 0x933   : > { %4011 = vmatpush1.bf16.msra.mxu0 %v5777_v54  ;;  %4054 = vmatpush1.bf16.msra.mxu1 %v5779_v37  ;;  %v6384_v54 = vld [vmem:[%s8690_s28 + $0x90] ss:$8 sps:$4 sm:$0xff]   ;;  %v6389_v37 = vld [vmem:[%s8690_s28 + $0xa4] ss:$8 sps:$4 sm:$0xff]  }
 0x934   : > { %4012 = vmatprep.subr.bf16.mxu0 %v5786_v55  ;;  %4055 = vmatprep.subr.bf16.mxu1 %v5788_v56  ;;  %v6387_v55 = vld [vmem:[%s8690_s28 + $0xa0] ss:$8 sps:$4 sm:$0xff]   ;;  %v6392_v56 = vld [vmem:[%s8690_s28 + $0xb4] ss:$8 sps:$4 sm:$0xff]  }
 0x937   : > { %4013 = vmatpush1.bf16.msra.mxu0 %v5785_v61  ;;  %4056 = vmatpush1.bf16.msra.mxu1 %v5787_v0  ;;  %v6396_v61 = vld [vmem:[%s8690_s28 + $0xd0] ss:$8 sps:$4 sm:$0xff]   ;;  %v6401_v0 = vld [vmem:[%s8690_s28 + $0xe4] ss:$8 sps:$4 sm:$0xff]  }
 0x938   : > { %4014 = vmatprep.subr.bf16.mxu0 %v5794_v1  ;;  %4057 = vmatprep.subr.bf16.mxu1 %v5796_v2  ;;  %v6399_v1 = vld [vmem:[%s8690_s28 + $0xe0] ss:$8 sps:$4 sm:$0xff]   ;;  %v6404_v2 = vld [vmem:[%s8690_s28 + $0xf4] ss:$8 sps:$4 sm:$0xff]  }
 0x93b   : > { %4015 = vmatpush1.bf16.msra.mxu0 %v5793_v7  ;;  %4058 = vmatpush1.bf16.msra.mxu1 %v5795_v16  ;;  %v3238_v7 = vsub.s32 3, %v7682_v9  ;;  %v3227_v16 = vrot.slane %v8196_v6, %v7688_v12 }
 0x93c   : > { %4016 = vmatprep.subr.bf16.mxu0 %v5802_v8  ;;  %4059 = vmatprep.subr.bf16.mxu1 %v5804_v19  ;;  %v3235_v8 = vrot.slane %v8196_v6, %v3234_v4  ;;  %v3231_v19 = vrot.slane %v8196_v6, %v7685_v10 }
 0x93d   : > { %v3239_v11 = vrot.slane %v8196_v6, %v3238_v7 }
 0x93f   : > { %4017 = vmatpush1.bf16.msra.mxu0 %v5801_v15  ;;  %4060 = vmatpush1.bf16.msra.mxu1 %v5803_v42 }
 0x940   : > { %4018 = vmatprep.subr.bf16.mxu0 %v5810_v43  ;;  %4061 = vmatprep.subr.bf16.mxu1 %v5812_v22 }
 0x943   : > { %4019 = vmatpush1.bf16.msra.mxu0 %v5809_v26  ;;  %4062 = vmatpush1.bf16.msra.mxu1 %v5811_v27 }
 0x944   : > { %4020 = vmatprep.subr.bf16.mxu0 %v5818_v63  ;;  %4063 = vmatprep.subr.bf16.mxu1 %v5820_v46 }
 0x947   : > { %4021 = vmatpush1.bf16.msra.mxu0 %v5817_v28  ;;  %4064 = vmatpush1.bf16.msra.mxu1 %v5819_v29 }
 0x948   : > { %5008 = vmatprep.subr.bf16.mxu0 %v6359_v30 }
 0x94a   : > { %4023 = vmatmul.mubr.bf16.vlgmr.msra.gmra.mrb[12].mxu0 %v8099_v45  ;;  %4066 = vmatmul.mubr.bf16.vlgmr.msra.gmra.mrb[28].mxu1 %v8099_v45  ;;  %v6369_v45 = vld [vmem:[%s8690_s28 + $0x40] ss:$8 sps:$4 sm:$0xff]  }
 0x94b   : > { %5009 = vmatpush1.bf16.msra.mxu0 %v6357_v31 }
 0x94c   : > { %5010 = vmatprep.subr.bf16.mxu0 %v6362_v32 }
 0x94f   : > { %5011 = vmatpush1.bf16.msra.mxu0 %v6360_v33 }
 0x950   : > { %5012 = vmatprep.subr.bf16.mxu0 %v6365_v34 }
 0x953   : > { %5013 = vmatpush1.bf16.msra.mxu0 %v6363_v35 }
 0x954   : > { %5014 = vmatprep.subr.bf16.mxu0 %v6368_v36 }
 0x957   : > { %5015 = vmatpush1.bf16.msra.mxu0 %v6366_v38 }
 0x958   : > { %5016 = vmatprep.subr.bf16.mxu0 %v6371_v39 }
 0x95b   : > { %5017 = vmatpush1.bf16.msra.mxu0 %v6369_v45 }
 0x95c   : > { %5018 = vmatprep.subr.bf16.mxu0 %v6374_v40 }
 0x95f   : > { %5019 = vmatpush1.bf16.msra.mxu0 %v6372_v41 }
 0x960   : > { %5020 = vmatprep.subr.bf16.mxu0 %v6377_v44 }
 0x963   : > { %5021 = vmatpush1.bf16.msra.mxu0 %v6375_v47 }
 0x964   : > { %5022 = vmatprep.subr.bf16.mxu0 %v6380_v48 }
 0x967   : > { %5023 = vmatpush1.bf16.msra.mxu0 %v6378_v49 }
 0x968   : > { %5024 = vmatprep.subr.bf16.mxu0 %v6383_v51 }
 0x96b   : > { %5025 = vmatpush1.bf16.msra.mxu0 %v6381_v52 }
 0x96c   : > { %5026 = vmatprep.subr.bf16.mxu0 %v6386_v53 }
 0x96f   : > { %5027 = vmatpush1.bf16.msra.mxu0 %v6384_v54 }
 0x970   : > { %5028 = vmatprep.subr.bf16.mxu0 %v6389_v37 }
 0x973   : > { %5029 = vmatpush1.bf16.msra.mxu0 %v6387_v55 }
 0x974   : > { %5030 = vmatprep.subr.bf16.mxu0 %v6392_v56 }
 0x977   : > { %5031 = vmatpush1.bf16.msra.mxu0 %v6390_v57 }
 0x978   : > { %5032 = vmatprep.subr.bf16.mxu0 %v6395_v58 }
 0x97b   : > { %5033 = vmatpush1.bf16.msra.mxu0 %v6393_v59 }
 0x97c   : > { %5034 = vmatprep.subr.bf16.mxu0 %v6398_v50 }
 0x97f   : > { %5035 = vmatpush1.bf16.msra.mxu0 %v6396_v61 }
 0x980   : > { %5036 = vmatprep.subr.bf16.mxu0 %v6401_v0 }
 0x983   : > { %5037 = vmatpush1.bf16.msra.mxu0 %v6399_v1 }
 0x984   : > { %5038 = vmatprep.subr.bf16.mxu0 %v6404_v2 }
 0x987   : > { %5039 = vmatpush1.bf16.msra.mxu0 %v6402_v60 }
 0x988   : > { %5051 = vmatprep.subr.bf16.mxu0 %v6407_v3 }
 0x9dd   : > { %v3938_v20 = vpop.f32.mrb[8].mxu0  ;;  %v3981_v14 = vpop.f32.mrb[24].mxu1 }
 0x9de   : > { %v8205_v21 = vadd.f32 %v3938_v20, %v3227_v16  ;;  %v8207_v15 = vadd.f32 %v3981_v14, %v3235_v8  ;;  %v3940_v42 = vpop.f32.mrb[9].mxu0  ;;  %v3983_v43 = vpop.f32.mrb[25].mxu1 }
 0x9df   : > { %v8209_v22 = vadd.f32 %v3940_v42, %v3231_v19  ;;  %v8211_v23 = vadd.f32 %v3983_v43, %v3239_v11  ;;  %v3942_v25 = vpop.f32.mrb[10].mxu0  ;;  %v3985_v24 = vpop.f32.mrb[26].mxu1 }
 0x9e0   : > { %v4076_v62 = vmul.f32 %v8205_v21, %v8205_v21  ;;  %v4078_v26 = vmul.f32 %v8207_v15, %v8207_v15  ;;  %v8217_v27 = vadd.f32 %v3942_v25, %v3227_v16  ;;  %v8219_v63 = vadd.f32 %v3985_v24, %v3235_v8  ;;  %v3944_v46 = vpop.f32.mrb[11].mxu0  ;;  %v3987_v28 = vpop.f32.mrb[27].mxu1 }
 0x9e1   : > { %v4077_v29 = vmul.f32 %v8209_v22, %v8209_v22  ;;  %v4079_v30 = vmul.f32 %v8211_v23, %v8211_v23  ;;  %v8225_v31 = vadd.f32 %v3944_v46, %v3231_v19  ;;  %v8227_v32 = vadd.f32 %v3987_v28, %v3239_v11 }
 0x9e2   : > { %v4092_v33 = vmul.f32 %v4076_v62, %v8205_v21  ;;  %v4094_v34 = vmul.f32 %v4078_v26, %v8207_v15  ;;  %v4084_v35 = vmul.f32 %v8217_v27, %v8217_v27  ;;  %v4086_v36 = vmul.f32 %v8219_v63, %v8219_v63 }
 0x9e3   : > { %v4093_v38 = vmul.f32 %v4077_v29, %v8209_v22  ;;  %v4095_v39 = vmul.f32 %v4079_v30, %v8211_v23  ;;  %v4085_v45 = vmul.f32 %v8225_v31, %v8225_v31  ;;  %v4087_v40 = vmul.f32 %v8227_v32, %v8227_v32 }
 0x9e4   : > { %v4108_v41 = vmul.f32 0.044715, %v4092_v33  ;;  %v4110_v44 = vmul.f32 0.044715, %v4094_v34  ;;  %v4100_v47 = vmul.f32 %v4084_v35, %v8217_v27  ;;  %v4102_v48 = vmul.f32 %v4086_v36, %v8219_v63 }
 0x9e5   : > { %v4109_v49 = vmul.f32 0.044715, %v4093_v38  ;;  %v4111_v51 = vmul.f32 0.044715, %v4095_v39  ;;  %v4101_v52 = vmul.f32 %v4085_v45, %v8225_v31  ;;  %v4103_v53 = vmul.f32 %v4087_v40, %v8227_v32 }
 0x9e6   : > { %v4124_v54 = vadd.f32 %v4108_v41, %v8205_v21  ;;  %v4126_v37 = vadd.f32 %v4110_v44, %v8207_v15  ;;  %v4116_v55 = vmul.f32 0.044715, %v4100_v47  ;;  %v4118_v56 = vmul.f32 0.044715, %v4102_v48 }
 0x9e7   : > { %v4125_v57 = vadd.f32 %v4109_v49, %v8209_v22  ;;  %v4127_v58 = vadd.f32 %v4111_v51, %v8211_v23  ;;  %v4117_v59 = vmul.f32 0.044715, %v4101_v52  ;;  %v4119_v50 = vmul.f32 0.044715, %v4103_v53 }
 0x9e8   : > { %v4140_v61 = vmul.f32 0.7978846, %v4124_v54  ;;  %v4142_v0 = vmul.f32 0.7978846, %v4126_v37  ;;  %v4132_v1 = vadd.f32 %v4116_v55, %v8217_v27  ;;  %v4134_v2 = vadd.f32 %v4118_v56, %v8219_v63 }
 0x9e9   : > { %v4141_v60 = vmul.f32 0.7978846, %v4125_v57  ;;  %v4143_v3 = vmul.f32 0.7978846, %v4127_v58  ;;  %v4133_v4 = vadd.f32 %v4117_v59, %v8225_v31  ;;  %v4135_v7 = vadd.f32 %v4119_v50, %v8227_v32  ;;  %v6410_v58 = vld [vmem:[%s8690_s28 + $0x114] ss:$8 sps:$4 sm:$0xff]  }
 0x9ea   : > { %6573 = vtanh.f32 %v4140_v61  ;;  %v4148_v16 = vmul.f32 0.7978846, %v4132_v1  ;;  %v4150_v8 = vmul.f32 0.7978846, %v4134_v2  ;;  %v6414_v59 = vld [vmem:[%s8690_s28 + $0x130] ss:$8 sps:$4 sm:$0xff]  }
 0x9eb   : > { %6575 = vtanh.f32 %v4142_v0  ;;  %v4149_v19 = vmul.f32 0.7978846, %v4133_v4  ;;  %v4151_v11 = vmul.f32 0.7978846, %v4135_v7  ;;  %v6419_v50 = vld [vmem:[%s8690_s28 + $0x144] ss:$8 sps:$4 sm:$0xff]  }
 0x9ec   : > { %6577 = vtanh.f32 %v4141_v60  ;;  %v6417_v61 = vld [vmem:[%s8690_s28 + $0x140] ss:$8 sps:$4 sm:$0xff]   ;;  %v6422_v0 = vld [vmem:[%s8690_s28 + $0x154] ss:$8 sps:$4 sm:$0xff]   ;;  %v6420_v1 = vld [vmem:[%s8690_s28 + $0x150] ss:$8 sps:$4 sm:$0xff]  }
 0x9ed   : > { %6579 = vtanh.f32 %v4143_v3  ;;  %v6425_v2 = vld [vmem:[%s8690_s28 + $0x164] ss:$8 sps:$4 sm:$0xff]   ;;  %v3242_v60 = vsub.s32 4, %v7682_v9  ;;  %v3250_v3 = vsub.s32 6, %v7682_v9  ;;  %v3246_v4 = vsub.s32 5, %v7682_v9 }
 0x9ee   : > { %6581 = vtanh.f32 %v4148_v16  ;;  %v3254_v7 = vsub.s32 7, %v7682_v9  ;;  %v6423_v16 = vld [vmem:[%s8690_s28 + $0x160] ss:$8 sps:$4 sm:$0xff]  }
 0x9ef   : > { %6583 = vtanh.f32 %v4150_v8  ;;  %v3243_v8 = vrot.slane %v8196_v6, %v3242_v60  ;;  %v6437_v60 = vld [vmem:[%s8690_s28 + $0x1a4] ss:$8 sps:$4 sm:$0xff]  }
 0x9f0   : > { %6585 = vtanh.f32 %v4149_v19  ;;  %v3251_v19 = vrot.slane %v8196_v6, %v3250_v3 }
 0x9f1   : > { %6587 = vtanh.f32 %v4151_v11  ;;  %v6428_v11 = vld [vmem:[%s8690_s28 + $0x174] ss:$8 sps:$4 sm:$0xff]  }
 0x9f4   : > { %v6574_v20 = vpop.eup %6573 }
 0x9f5   : > { %v6576_v14 = vpop.eup %6575  ;;  %v4172_v42 = vadd.f32 1.0, %v6574_v20  ;;  %v3247_v20 = vrot.slane %v8196_v6, %v3246_v4 }
 0x9f6   : > { %v6578_v43 = vpop.eup %6577  ;;  %v4174_v25 = vadd.f32 1.0, %v6576_v14  ;;  %v3255_v14 = vrot.slane %v8196_v6, %v3254_v7 }
 0x9f7   : > { %v6580_v24 = vpop.eup %6579  ;;  %v4173_v62 = vadd.f32 1.0, %v6578_v43  ;;  %v4188_v29 = vmul.f32 0.5, %v4172_v42 }
 0x9f8   : > { %v6582_v26 = vpop.eup %6581  ;;  %v4175_v46 = vadd.f32 1.0, %v6580_v24  ;;  %v4190_v34 = vmul.f32 0.5, %v4174_v25  ;;  %v6426_v25 = vld [vmem:[%s8690_s28 + $0x170] ss:$8 sps:$4 sm:$0xff]  }
 0x9f9   : > { %v6584_v28 = vpop.eup %6583  ;;  %v4180_v30 = vadd.f32 1.0, %v6582_v26  ;;  %v4189_v45 = vmul.f32 0.5, %v4173_v62  ;;  %v4204_v47 = vmul.f32 %v4188_v29, %v8205_v21 }
 0x9fa   : > { %v6586_v33 = vpop.eup %6585  ;;  %v4182_v35 = vadd.f32 1.0, %v6584_v28  ;;  %v4191_v44 = vmul.f32 0.5, %v4175_v46  ;;  %v8256_v51 = vmul.f32 %v4190_v34, %v8207_v15  ;;  %v6431_v46 = vld [vmem:[%s8690_s28 + $0x184] ss:$8 sps:$4 sm:$0xff]  }
 0x9fb   : > { %v6588_v36 = vpop.eup %6587  ;;  %v4196_v38 = vmul.f32 0.5, %v4180_v30  ;;  %v4181_v39 = vadd.f32 1.0, %v6586_v33  ;;  %v4205_v54 = vmul.f32 %v4189_v45, %v8209_v22  ;;  %v6408_v22 = vld [vmem:[%s8690_s28 + $0x110] ss:$8 sps:$4 sm:$0xff]  }
 0x9fc   : > { %v4198_v40 = vmul.f32 0.5, %v4182_v35  ;;  %v4183_v41 = vadd.f32 1.0, %v6588_v36  ;;  %v4207_v21 = vmul.f32 %v4191_v44, %v8211_v23  ;;  %v6413_v23 = vld [vmem:[%s8690_s28 + $0x124] ss:$8 sps:$4 sm:$0xff]  }
 0x9fd   : > { %v4212_v48 = vmul.f32 %v4196_v38, %v8217_v27  ;;  %v4197_v49 = vmul.f32 0.5, %v4181_v39 }
 0x9fe   : > { %v8259_v52 = vmul.f32 %v4198_v40, %v8219_v63  ;;  %v4199_v53 = vmul.f32 0.5, %v4183_v41  ;;  %v6405_v63 = vld [vmem:[%s8690_s28 + $0x100] ss:$8 sps:$4 sm:$0xff]  }
 0x9ff   : > { %v4213_v37 = vmul.f32 %v4197_v49, %v8225_v31  ;;  %v4220_v55 = vpack.c.bf16 %v4212_v48, %v4204_v47  ;;  %v6411_v31 = vld [vmem:[%s8690_s28 + $0x120] ss:$8 sps:$4 sm:$0xff]  }
 0xa00   : > { %v4215_v27 = vmul.f32 %v4199_v53, %v8227_v32  ;;  %v4222_v15 = vpack.c.bf16 %v8259_v52, %v8256_v51  ;;  %v6416_v32 = vld [vmem:[%s8690_s28 + $0x134] ss:$8 sps:$4 sm:$0xff]   ;;  %v6429_v47 = vld [vmem:[%s8690_s28 + $0x180] ss:$8 sps:$4 sm:$0xff]   ;;  %v6467_v51 = vld [vmem:[%s8690_s28 + $0x244] ss:$8 sps:$4 sm:$0xff]  }
 0xa01   : > { %v4221_v56 = vpack.c.bf16 %v4213_v37, %v4205_v54  ;;  %v6434_v37 = vld [vmem:[%s8690_s28 + $0x194] ss:$8 sps:$4 sm:$0xff]   ;;  %v6465_v52 = vld [vmem:[%s8690_s28 + $0x240] ss:$8 sps:$4 sm:$0xff]  }
 0xa02   : > { %v4223_v57 = vpack.c.bf16 %v4215_v27, %v4207_v21 }
 0xa03   : > { %5040 = vmatprep.mubr.bf16.mxu0 %v4221_v56 }
 0xa04   : > { %5041 = vmatmul.mubr.bf16.vlgmr.msra.gmra.mrb[16].mxu0 %v4220_v55 }
 0xa05   : > { %5052 = vmatpush1.bf16.msra.mxu0 %v6405_v63  ;;  %5083 = vmatprep.mubr.bf16.mxu0 %v4223_v57 }
 0xa06   : > { %5053 = vmatprep.subr.bf16.mxu0 %v6410_v58 }
 0xa09   : > { %5054 = vmatpush1.bf16.msra.mxu0 %v6408_v22 }
 0xa0a   : > { %5055 = vmatprep.subr.bf16.mxu0 %v6413_v23 }
 0xa0d   : > { %5056 = vmatpush1.bf16.msra.mxu0 %v6411_v31 }
 0xa0e   : > { %5057 = vmatprep.subr.bf16.mxu0 %v6416_v32 }
 0xa11   : > { %5058 = vmatpush1.bf16.msra.mxu0 %v6414_v59 }
 0xa12   : > { %5059 = vmatprep.subr.bf16.mxu0 %v6419_v50  ;;  %v6432_v50 = vld [vmem:[%s8690_s28 + $0x190] ss:$8 sps:$4 sm:$0xff]  }
 0xa15   : > { %5060 = vmatpush1.bf16.msra.mxu0 %v6417_v61 }
 0xa16   : > { %5061 = vmatprep.subr.bf16.mxu0 %v6422_v0 }
 0xa19   : > { %5062 = vmatpush1.bf16.msra.mxu0 %v6420_v1 }
 0xa1a   : > { %5063 = vmatprep.subr.bf16.mxu0 %v6425_v2 }
 0xa1d   : > { %5064 = vmatpush1.bf16.msra.mxu0 %v6423_v16  ;;  %v4024_v42 = vpop.f32.mrb[12].mxu0  ;;  %v4067_v43 = vpop.f32.mrb[28].mxu1 }
 0xa1e   : > { %v8290_v24 = vadd.f32 %v4024_v42, %v3243_v8  ;;  %v8292_v9 = vadd.f32 %v4067_v43, %v3251_v19  ;;  %5065 = vmatprep.subr.bf16.mxu0 %v6428_v11  ;;  %v4026_v62 = vpop.f32.mrb[13].mxu0  ;;  %v4069_v26 = vpop.f32.mrb[29].mxu1 }
 0xa1f   : > { %v8295_v28 = vadd.f32 %v4026_v62, %v3247_v20  ;;  %v8297_v29 = vadd.f32 %v4069_v26, %v3255_v14  ;;  %v4028_v30 = vpop.f32.mrb[14].mxu0  ;;  %v4071_v33 = vpop.f32.mrb[30].mxu1  ;;  %v6435_v62 = vld [vmem:[%s8690_s28 + $0x1a0] ss:$8 sps:$4 sm:$0xff]  }
 0xa20   : > { %v4080_v6 = vmul.f32 %v8290_v24, %v8290_v24  ;;  %v4082_v34 = vmul.f32 %v8292_v9, %v8292_v9  ;;  %v8303_v35 = vadd.f32 %v4028_v30, %v3243_v8  ;;  %v8305_v36 = vadd.f32 %v4071_v33, %v3251_v19  ;;  %v4030_v38 = vpop.f32.mrb[15].mxu0  ;;  %v4073_v39 = vpop.f32.mrb[31].mxu1 }
 0xa21   : > { %v4081_v45 = vmul.f32 %v8295_v28, %v8295_v28  ;;  %v4083_v40 = vmul.f32 %v8297_v29, %v8297_v29  ;;  %5066 = vmatpush1.bf16.msra.mxu0 %v6426_v25  ;;  %v8311_v41 = vadd.f32 %v4030_v38, %v3247_v20  ;;  %v8313_v44 = vadd.f32 %v4073_v39, %v3255_v14  ;;  %v6443_v38 = vld [vmem:[%s8690_s28 + $0x1c4] ss:$8 sps:$4 sm:$0xff]   ;;  %v6441_v39 = vld [vmem:[%s8690_s28 + $0x1c0] ss:$8 sps:$4 sm:$0xff]  }
 0xa22   : > { %v4096_v48 = vmul.f32 %v4080_v6, %v8290_v24  ;;  %v4098_v49 = vmul.f32 %v4082_v34, %v8292_v9  ;;  %v4088_v53 = vmul.f32 %v8303_v35, %v8303_v35  ;;  %v4090_v54 = vmul.f32 %v8305_v36, %v8305_v36  ;;  %5067 = vmatprep.subr.bf16.mxu0 %v6431_v46  ;;  %v6440_v46 = vld [vmem:[%s8690_s28 + $0x1b4] ss:$8 sps:$4 sm:$0xff]   ;;  %v6438_v34 = vld [vmem:[%s8690_s28 + $0x1b0] ss:$8 sps:$4 sm:$0xff]  }
 0xa23   : > { %v4097_v55 = vmul.f32 %v4081_v45, %v8295_v28  ;;  %v4099_v21 = vmul.f32 %v4083_v40, %v8297_v29  ;;  %v4089_v27 = vmul.f32 %v8311_v41, %v8311_v41  ;;  %v4091_v56 = vmul.f32 %v8313_v44, %v8313_v44  ;;  %v6446_v45 = vld [vmem:[%s8690_s28 + $0x1d4] ss:$8 sps:$4 sm:$0xff]  }
 0xa24   : > { %v4112_v63 = vmul.f32 0.044715, %v4096_v48  ;;  %v4114_v57 = vmul.f32 0.044715, %v4098_v49  ;;  %v4104_v58 = vmul.f32 %v4088_v53, %v8303_v35  ;;  %v4106_v22 = vmul.f32 %v4090_v54, %v8305_v36  ;;  %v6444_v49 = vld [vmem:[%s8690_s28 + $0x1d0] ss:$8 sps:$4 sm:$0xff]  }
 0xa25   : > { %v4113_v23 = vmul.f32 0.044715, %v4097_v55  ;;  %v4115_v31 = vmul.f32 0.044715, %v4099_v21  ;;  %v4105_v32 = vmul.f32 %v4089_v27, %v8311_v41  ;;  %v4107_v59 = vmul.f32 %v4091_v56, %v8313_v44  ;;  %5068 = vmatpush1.bf16.msra.mxu0 %v6429_v47 }
 0xa26   : > { %v4128_v61 = vadd.f32 %v4112_v63, %v8290_v24  ;;  %v4130_v0 = vadd.f32 %v4114_v57, %v8292_v9  ;;  %v4120_v1 = vmul.f32 0.044715, %v4104_v58  ;;  %v4122_v2 = vmul.f32 0.044715, %v4106_v22  ;;  %5069 = vmatprep.subr.bf16.mxu0 %v6434_v37  ;;  %v6449_v37 = vld [vmem:[%s8690_s28 + $0x1e4] ss:$8 sps:$4 sm:$0xff]  }
 0xa27   : > { %v4129_v3 = vadd.f32 %v4113_v23, %v8295_v28  ;;  %v4131_v4 = vadd.f32 %v4115_v31, %v8297_v29  ;;  %v4121_v7 = vmul.f32 0.044715, %v4105_v32  ;;  %v4123_v16 = vmul.f32 0.044715, %v4107_v59  ;;  %v6447_v22 = vld [vmem:[%s8690_s28 + $0x1e0] ss:$8 sps:$4 sm:$0xff]  }
 0xa28   : > { %v4144_v8 = vmul.f32 0.7978846, %v4128_v61  ;;  %v4146_v19 = vmul.f32 0.7978846, %v4130_v0  ;;  %v4136_v11 = vadd.f32 %v4120_v1, %v8303_v35  ;;  %v4138_v20 = vadd.f32 %v4122_v2, %v8305_v36  ;;  %v6452_v59 = vld [vmem:[%s8690_s28 + $0x1f4] ss:$8 sps:$4 sm:$0xff]  }
 0xa29   : > { %v4145_v14 = vmul.f32 0.7978846, %v4129_v3  ;;  %v4147_v42 = vmul.f32 0.7978846, %v4131_v4  ;;  %v4137_v43 = vadd.f32 %v4121_v7, %v8311_v41  ;;  %v4139_v25 = vadd.f32 %v4123_v16, %v8313_v44  ;;  %5070 = vmatpush1.bf16.msra.mxu0 %v6432_v50  ;;  %v6450_v16 = vld [vmem:[%s8690_s28 + $0x1f0] ss:$8 sps:$4 sm:$0xff]  }
 0xa2a   : > { %6589 = vtanh.f32 %v4144_v8  ;;  %v4152_v26 = vmul.f32 0.7978846, %v4136_v11  ;;  %5071 = vmatprep.subr.bf16.mxu0 %v6437_v60  ;;  %v4154_v30 = vmul.f32 0.7978846, %v4138_v20  ;;  %v6455_v20 = vld [vmem:[%s8690_s28 + $0x204] ss:$8 sps:$4 sm:$0xff]  }
 0xa2b   : > { %6591 = vtanh.f32 %v4146_v19  ;;  %v4153_v33 = vmul.f32 0.7978846, %v4137_v43  ;;  %v4155_v6 = vmul.f32 0.7978846, %v4139_v25  ;;  %v6453_v25 = vld [vmem:[%s8690_s28 + $0x200] ss:$8 sps:$4 sm:$0xff]  }
 0xa2c   : > { %6593 = vtanh.f32 %v4145_v14 }
 0xa2d   : > { %6595 = vtanh.f32 %v4147_v42  ;;  %5072 = vmatpush1.bf16.msra.mxu0 %v6435_v62 }
 0xa2e   : > { %6597 = vtanh.f32 %v4152_v26  ;;  %5073 = vmatprep.subr.bf16.mxu0 %v6440_v46  ;;  %v6459_v26 = vld [vmem:[%s8690_s28 + $0x220] ss:$8 sps:$4 sm:$0xff]   ;;  %v6464_v46 = vld [vmem:[%s8690_s28 + $0x234] ss:$8 sps:$4 sm:$0xff]  }
 0xa2f   : > { %6599 = vtanh.f32 %v4154_v30  ;;  %v6462_v30 = vld [vmem:[%s8690_s28 + $0x230] ss:$8 sps:$4 sm:$0xff]  }
 0xa30   : > { %6601 = vtanh.f32 %v4153_v33  ;;  %v6468_v33 = vld [vmem:[%s8690_s28 + $0x250] ss:$8 sps:$4 sm:$0xff]  }
 0xa31   : > { %6603 = vtanh.f32 %v4155_v6  ;;  %5074 = vmatpush1.bf16.msra.mxu0 %v6438_v34  ;;  %v6473_v6 = vld [vmem:[%s8690_s28 + $0x264] ss:$8 sps:$4 sm:$0xff]   ;;  %v6471_v34 = vld [vmem:[%s8690_s28 + $0x260] ss:$8 sps:$4 sm:$0xff]  }
 0xa32   : > { %5075 = vmatprep.subr.bf16.mxu0 %v6443_v38  ;;  %v6476_v38 = vld [vmem:[%s8690_s28 + $0x274] ss:$8 sps:$4 sm:$0xff]  }
 0xa34   : > { %v6590_v40 = vpop.eup %6589 }
 0xa35   : > { %v6592_v47 = vpop.eup %6591  ;;  %v4176_v48 = vadd.f32 1.0, %v6590_v40  ;;  %5076 = vmatpush1.bf16.msra.mxu0 %v6441_v39  ;;  %v6474_v39 = vld [vmem:[%s8690_s28 + $0x270] ss:$8 sps:$4 sm:$0xff]   ;;  %v6477_v40 = vld [vmem:[%s8690_s28 + $0x280] ss:$8 sps:$4 sm:$0xff]  }
 0xa36   : > { %v6594_v53 = vpop.eup %6593  ;;  %v4178_v54 = vadd.f32 1.0, %v6592_v47  ;;  %5077 = vmatprep.subr.bf16.mxu0 %v6446_v45  ;;  %v6479_v45 = vld [vmem:[%s8690_s28 + $0x284] ss:$8 sps:$4 sm:$0xff]   ;;  %v6482_v47 = vld [vmem:[%s8690_s28 + $0x294] ss:$8 sps:$4 sm:$0xff]  }
 0xa37   : > { %v6596_v55 = vpop.eup %6595  ;;  %v4177_v21 = vadd.f32 1.0, %v6594_v53  ;;  %v4192_v57 = vmul.f32 0.5, %v4176_v48  ;;  %v6480_v48 = vld [vmem:[%s8690_s28 + $0x290] ss:$8 sps:$4 sm:$0xff]   ;;  %v6483_v53 = vld [vmem:[%s8690_s28 + $0x2a0] ss:$8 sps:$4 sm:$0xff]  }
 0xa38   : > { %v6598_v27 = vpop.eup %6597  ;;  %v4179_v56 = vadd.f32 1.0, %v6596_v55  ;;  %v4194_v31 = vmul.f32 0.5, %v4178_v54  ;;  %v6488_v54 = vld [vmem:[%s8690_s28 + $0x2b4] ss:$8 sps:$4 sm:$0xff]   ;;  %v6491_v55 = vld [vmem:[%s8690_s28 + $0x2c4] ss:$8 sps:$4 sm:$0xff]  }
 0xa39   : > { %v6600_v63 = vpop.eup %6599  ;;  %v4184_v58 = vadd.f32 1.0, %v6598_v27  ;;  %5078 = vmatpush1.bf16.msra.mxu0 %v6444_v49  ;;  %v4193_v1 = vmul.f32 0.5, %v4177_v21  ;;  %v8354_v4 = vmul.f32 %v4192_v57, %v8290_v24  ;;  %v6485_v49 = vld [vmem:[%s8690_s28 + $0x2a4] ss:$8 sps:$4 sm:$0xff]   ;;  %v6489_v21 = vld [vmem:[%s8690_s28 + $0x2c0] ss:$8 sps:$4 sm:$0xff]  }
 0xa3a   : > { %v6602_v23 = vpop.eup %6601  ;;  %v4186_v32 = vadd.f32 1.0, %v6600_v63  ;;  %5079 = vmatprep.subr.bf16.mxu0 %v6449_v37  ;;  %v4195_v3 = vmul.f32 0.5, %v4179_v56  ;;  %v8361_v19 = vmul.f32 %v4194_v31, %v8292_v9  ;;  %v6486_v37 = vld [vmem:[%s8690_s28 + $0x2b0] ss:$8 sps:$4 sm:$0xff]   ;;  %v6494_v27 = vld [vmem:[%s8690_s28 + $0x2d4] ss:$8 sps:$4 sm:$0xff]  }
 0xa3b   : > { %v6604_v50 = vpop.eup %6603  ;;  %v4200_v61 = vmul.f32 0.5, %v4184_v58  ;;  %v4185_v0 = vadd.f32 1.0, %v6602_v23  ;;  %v4209_v24 = vmul.f32 %v4193_v1, %v8295_v28  ;;  %v6492_v56 = vld [vmem:[%s8690_s28 + $0x2d0] ss:$8 sps:$4 sm:$0xff]   ;;  %v6497_v63 = vld [vmem:[%s8690_s28 + $0x2e4] ss:$8 sps:$4 sm:$0xff]  }
 0xa3c   : > { %v4202_v2 = vmul.f32 0.5, %v4186_v32  ;;  %v4187_v60 = vadd.f32 1.0, %v6604_v50  ;;  %v8372_v43 = vmul.f32 %v4195_v3, %v8297_v29  ;;  %v6456_v29 = vld [vmem:[%s8690_s28 + $0x210] ss:$8 sps:$4 sm:$0xff]   ;;  %v6495_v57 = vld [vmem:[%s8690_s28 + $0x2e0] ss:$8 sps:$4 sm:$0xff]  }
 0xa3d   : > { %v8357_v7 = vmul.f32 %v4200_v61, %v8303_v35  ;;  %5080 = vmatpush1.bf16.msra.mxu0 %v6447_v22  ;;  %v4201_v8 = vmul.f32 0.5, %v4185_v0  ;;  %v6500_v58 = vld [vmem:[%s8690_s28 + $0x2f4] ss:$8 sps:$4 sm:$0xff]   ;;  %v6498_v22 = vld [vmem:[%s8690_s28 + $0x2f0] ss:$8 sps:$4 sm:$0xff]  }
 0xa3e   : > { %v8364_v11 = vmul.f32 %v4202_v2, %v8305_v36  ;;  %5081 = vmatprep.subr.bf16.mxu0 %v6452_v59  ;;  %v4203_v14 = vmul.f32 0.5, %v4187_v60  ;;  %v6503_v23 = vld [vmem:[%s8690_s28 + $0x304] ss:$8 sps:$4 sm:$0xff]   ;;  %v6501_v31 = vld [vmem:[%s8690_s28 + $0x300] ss:$8 sps:$4 sm:$0xff]  }
 0xa3f   : > { %v4217_v35 = vmul.f32 %v4201_v8, %v8311_v41  ;;  %v4224_v42 = vpack.c.bf16 %v8357_v7, %v8354_v4  ;;  %v6458_v41 = vld [vmem:[%s8690_s28 + $0x214] ss:$8 sps:$4 sm:$0xff]   ;;  %v6504_v59 = vld [vmem:[%s8690_s28 + $0x310] ss:$8 sps:$4 sm:$0xff]   ;;  %v6509_v50 = vld [vmem:[%s8690_s28 + $0x324] ss:$8 sps:$4 sm:$0xff]  }
 0xa40   : > { %v8375_v9 = vmul.f32 %v4203_v14, %v8313_v44  ;;  %v4226_v36 = vpack.c.bf16 %v8364_v11, %v8361_v19  ;;  %v6461_v44 = vld [vmem:[%s8690_s28 + $0x224] ss:$8 sps:$4 sm:$0xff]   ;;  %v6506_v32 = vld [vmem:[%s8690_s28 + $0x314] ss:$8 sps:$4 sm:$0xff]   ;;  %v6507_v61 = vld [vmem:[%s8690_s28 + $0x320] ss:$8 sps:$4 sm:$0xff]  }
 0xa41   : > { %5082 = vmatpush1.bf16.msra.mxu0 %v6450_v16  ;;  %v4225_v28 = vpack.c.bf16 %v4217_v35, %v4209_v24  ;;  %v6512_v0 = vld [vmem:[%s8690_s28 + $0x334] ss:$8 sps:$4 sm:$0xff]   ;;  %v6510_v1 = vld [vmem:[%s8690_s28 + $0x330] ss:$8 sps:$4 sm:$0xff]   ;;  %v6515_v2 = vld [vmem:[%s8690_s28 + $0x344] ss:$8 sps:$4 sm:$0xff]  }
 0xa42   : > { %5094 = vmatprep.subr.bf16.mxu0 %v6455_v20  ;;  %v4227_v62 = vpack.c.bf16 %v8375_v9, %v8372_v43  ;;  %v6513_v60 = vld [vmem:[%s8690_s28 + $0x340] ss:$8 sps:$4 sm:$0xff]   ;;  %v6518_v3 = vld [vmem:[%s8690_s28 + $0x354] ss:$8 sps:$4 sm:$0xff]   ;;  %v6516_v4 = vld [vmem:[%s8690_s28 + $0x350] ss:$8 sps:$4 sm:$0xff]  }
 0xa43   : > { %v6521_v7 = vld [vmem:[%s8690_s28 + $0x364] ss:$8 sps:$4 sm:$0xff]   ;;  %v6519_v16 = vld [vmem:[%s8690_s28 + $0x360] ss:$8 sps:$4 sm:$0xff]   ;;  %v6524_v8 = vld [vmem:[%s8690_s28 + $0x374] ss:$8 sps:$4 sm:$0xff]  }
 0xa44   : > { %5084 = vmatmul.mubr.bf16.vlgmr.msra.gmra.mrb[16].mxu0 %v4222_v15  ;;  %v6470_v15 = vld [vmem:[%s8690_s28 + $0x254] ss:$8 sps:$4 sm:$0xff]   ;;  %v6522_v20 = vld [vmem:[%s8690_s28 + $0x370] ss:$8 sps:$4 sm:$0xff]   ;;  %v6527_v14 = vld [vmem:[%s8690_s28 + $0x384] ss:$8 sps:$4 sm:$0xff]  }
 0xa45   : > { %5095 = vmatpush1.bf16.msra.mxu0 %v6453_v25  ;;  %5126 = vmatprep.mubr.bf16.mxu0 %v4225_v28  ;;  %v6525_v24 = vld [vmem:[%s8690_s28 + $0x380] ss:$8 sps:$4 sm:$0xff]   ;;  %v6530_v35 = vld [vmem:[%s8690_s28 + $0x394] ss:$8 sps:$4 sm:$0xff]   ;;  %v6533_v43 = vld [vmem:[%s8690_s28 + $0x3a4] ss:$8 sps:$4 sm:$0xff]  }
 0xa46   : > { %5096 = vmatprep.subr.bf16.mxu0 %v6458_v41  ;;  %v6531_v9 = vld [vmem:[%s8690_s28 + $0x3a0] ss:$8 sps:$4 sm:$0xff]   ;;  %v6536_v25 = vld [vmem:[%s8690_s28 + $0x3b4] ss:$8 sps:$4 sm:$0xff]   ;;  %v6534_v28 = vld [vmem:[%s8690_s28 + $0x3b0] ss:$8 sps:$4 sm:$0xff]  }
 0xa47   : > { %v6539_v41 = vld [vmem:[%s8690_s28 + $0x3c4] ss:$8 sps:$4 sm:$0xff]  }
 0xa49   : > { %5097 = vmatpush1.bf16.msra.mxu0 %v6456_v29  ;;  %v6542_v29 = vld [vmem:[%s8690_s28 + $0x3d4] ss:$8 sps:$4 sm:$0xff]  }
 0xa4a   : > { %5098 = vmatprep.subr.bf16.mxu0 %v6461_v44  ;;  %v6540_v44 = vld [vmem:[%s8690_s28 + $0x3d0] ss:$8 sps:$4 sm:$0xff]  }
 0xa4d   : > { %5099 = vmatpush1.bf16.msra.mxu0 %v6459_v26  ;;  %v6545_v26 = vld [vmem:[%s8690_s28 + $0x3e4] ss:$8 sps:$4 sm:$0xff]  }
 0xa4e   : > { %5100 = vmatprep.subr.bf16.mxu0 %v6464_v46  ;;  %v6543_v46 = vld [vmem:[%s8690_s28 + $0x3e0] ss:$8 sps:$4 sm:$0xff]  }
 0xa51   : > { %5101 = vmatpush1.bf16.msra.mxu0 %v6462_v30  ;;  %v6548_v30 = vld [vmem:[%s8690_s28 + $0x3f4] ss:$8 sps:$4 sm:$0xff]  }
 0xa52   : > { %5102 = vmatprep.subr.bf16.mxu0 %v6467_v51  ;;  %v6546_v51 = vld [vmem:[%s8690_s28 + $0x3f0] ss:$8 sps:$4 sm:$0xff]  }
 0xa55   : > { %5103 = vmatpush1.bf16.msra.mxu0 %v6465_v52  ;;  %v4356_v52 = vld [vmem:[%s822_s23] sm:$0x3] }
 0xa56   : > { %5104 = vmatprep.subr.bf16.mxu0 %v6470_v15  ;;  %v4361_v15 = vrot.slane %v4356_v52, %v7688_v12 }
 0xa59   : > { %5105 = vmatpush1.bf16.msra.mxu0 %v6468_v33  ;;  %v4365_v33 = vrot.slane %v4356_v52, %v7685_v10 }
 0xa5a   : > { %5106 = vmatprep.subr.bf16.mxu0 %v6473_v6 }
 0xa5d   : > { %5107 = vmatpush1.bf16.msra.mxu0 %v6471_v34 }
 0xa5e   : > { %5108 = vmatprep.subr.bf16.mxu0 %v6476_v38 }
 0xa61   : > { %5109 = vmatpush1.bf16.msra.mxu0 %v6474_v39 }
 0xa62   : > { %5110 = vmatprep.subr.bf16.mxu0 %v6479_v45 }
 0xa65   : > { %5111 = vmatpush1.bf16.msra.mxu0 %v6477_v40 }
 0xa66   : > { %5112 = vmatprep.subr.bf16.mxu0 %v6482_v47 }
 0xa69   : > { %5113 = vmatpush1.bf16.msra.mxu0 %v6480_v48 }
 0xa6a   : > { %5114 = vmatprep.subr.bf16.mxu0 %v6485_v49 }
 0xa6d   : > { %5115 = vmatpush1.bf16.msra.mxu0 %v6483_v53 }
 0xa6e   : > { %5116 = vmatprep.subr.bf16.mxu0 %v6488_v54 }
 0xa71   : > { %5117 = vmatpush1.bf16.msra.mxu0 %v6486_v37 }
 0xa72   : > { %5118 = vmatprep.subr.bf16.mxu0 %v6491_v55 }
 0xa75   : > { %5119 = vmatpush1.bf16.msra.mxu0 %v6489_v21 }
 0xa76   : > { %5120 = vmatprep.subr.bf16.mxu0 %v6494_v27 }
 0xa79   : > { %5121 = vmatpush1.bf16.msra.mxu0 %v6492_v56 }
 0xa7a   : > { %5122 = vmatprep.subr.bf16.mxu0 %v6497_v63 }
 0xa7d   : > { %5123 = vmatpush1.bf16.msra.mxu0 %v6495_v57 }
 0xa7e   : > { %5124 = vmatprep.subr.bf16.mxu0 %v6500_v58 }
 0xa81   : > { %5125 = vmatpush1.bf16.msra.mxu0 %v6498_v22 }
 0xa82   : > { %5137 = vmatprep.subr.bf16.mxu0 %v6503_v23 }
 0xa84   : > { %5127 = vmatmul.mubr.bf16.vlgmr.msra.gmra.mrb[16].mxu0 %v4224_v42  ;;  %v6528_v42 = vld [vmem:[%s8690_s28 + $0x390] ss:$8 sps:$4 sm:$0xff]  }
 0xa85   : > { %5138 = vmatpush1.bf16.msra.mxu0 %v6501_v31  ;;  %5169 = vmatprep.mubr.bf16.mxu0 %v4227_v62  ;;  %v6537_v62 = vld [vmem:[%s8690_s28 + $0x3c0] ss:$8 sps:$4 sm:$0xff]  }
 0xa86   : > { %5139 = vmatprep.subr.bf16.mxu0 %v6506_v32 }
 0xa89   : > { %5140 = vmatpush1.bf16.msra.mxu0 %v6504_v59 }
 0xa8a   : > { %5141 = vmatprep.subr.bf16.mxu0 %v6509_v50 }
 0xa8d   : > { %5142 = vmatpush1.bf16.msra.mxu0 %v6507_v61 }
 0xa8e   : > { %5143 = vmatprep.subr.bf16.mxu0 %v6512_v0 }
 0xa91   : > { %5144 = vmatpush1.bf16.msra.mxu0 %v6510_v1 }
 0xa92   : > { %5145 = vmatprep.subr.bf16.mxu0 %v6515_v2 }
 0xa95   : > { %5146 = vmatpush1.bf16.msra.mxu0 %v6513_v60 }
 0xa96   : > { %5147 = vmatprep.subr.bf16.mxu0 %v6518_v3 }
 0xa99   : > { %5148 = vmatpush1.bf16.msra.mxu0 %v6516_v4 }
 0xa9a   : > { %5149 = vmatprep.subr.bf16.mxu0 %v6521_v7 }
 0xa9d   : > { %5150 = vmatpush1.bf16.msra.mxu0 %v6519_v16 }
 0xa9e   : > { %5151 = vmatprep.subr.bf16.mxu0 %v6524_v8 }
 0xaa1   : > { %5152 = vmatpush1.bf16.msra.mxu0 %v6522_v20 }
 0xaa2   : > { %5153 = vmatprep.subr.bf16.mxu0 %v6527_v14 }
 0xaa5   : > { %5154 = vmatpush1.bf16.msra.mxu0 %v6525_v24 }
 0xaa6   : > { %5155 = vmatprep.subr.bf16.mxu0 %v6530_v35 }
 0xaa9   : > { %5156 = vmatpush1.bf16.msra.mxu0 %v6528_v42 }
 0xaaa   : > { %5157 = vmatprep.subr.bf16.mxu0 %v6533_v43 }
 0xaad   : > { %5158 = vmatpush1.bf16.msra.mxu0 %v6531_v9 }
 0xaae   : > { %5159 = vmatprep.subr.bf16.mxu0 %v6536_v25 }
 0xab1   : > { %5160 = vmatpush1.bf16.msra.mxu0 %v6534_v28 }
 0xab2   : > { %5161 = vmatprep.subr.bf16.mxu0 %v6539_v41 }
 0xab5   : > { %5162 = vmatpush1.bf16.msra.mxu0 %v6537_v62 }
 0xab6   : > { %5163 = vmatprep.subr.bf16.mxu0 %v6542_v29 }
 0xab9   : > { %5164 = vmatpush1.bf16.msra.mxu0 %v6540_v44 }
 0xaba   : > { %5165 = vmatprep.subr.bf16.mxu0 %v6545_v26 }
 0xabd   : > { %5166 = vmatpush1.bf16.msra.mxu0 %v6543_v46 }
 0xabe   : > { %5167 = vmatprep.subr.bf16.mxu0 %v6548_v30 }
 0xac1   : > { %5168 = vmatpush1.bf16.msra.mxu0 %v6546_v51 }
 0xac4   : > { %5170 = vmatmul.mubr.bf16.vlgmr.msra.gmra.mrb[16].mxu0 %v4226_v36 }
 0xb97   : > { %v5171_v6 = vpop.f32.mrb[16].mxu0 }
 0xb98   : > { %v5995_v34 = vadd.f32 %v5171_v6, %v4361_v15  ;;  %v5173_v38 = vpop.f32.mrb[17].mxu0 }
 0xb99   : > { %v5996_v39 = vadd.f32 %v5173_v38, %v4365_v33  ;;  %v5175_v45 = vpop.f32.mrb[18].mxu0  ;;  %5191 = sbr.rel (%p5949_p2) target bundleno = 2976 (0xba0), region = 112 }
 0xb9a   : > { %v5180_v40 = vadd.f32 %v5995_v34, %v7982_v5  ;;  %v5997_v47 = vadd.f32 %v5175_v45, %v4361_v15  ;;  %v5177_v48 = vpop.f32.mrb[19].mxu0 }
 0xb9b   : > { %v5181_v19 = vadd.f32 %v5996_v39, %v7985_v13  ;;  %v5998_v11 = vadd.f32 %v5177_v48, %v4365_v33 }
 0xb9c   : > { %5184 = vst [vmem:[#allocation2] sm:$0xff] %v5180_v40  ;;  %v5182_v36 = vadd.f32 %v5997_v47, %v7988_v17  ;;  %5192 = vst [vmem:[%s7622_s19] sm:$0xff] (!%p5949_p2), %v5180_v40 }
 0xb9d   : > { %5185 = vst [vmem:[#allocation2 + $0x8] sm:$0xff] %v5181_v19  ;;  %v5183_v12 = vadd.f32 %v5998_v11, %v7991_v18  ;;  %5193 = vst [vmem:[%s7622_s19 + $0x8] sm:$0xff] (!%p5949_p2), %v5181_v19 }
 0xb9e   : > { %5186 = vst [vmem:[#allocation2 + $0x10] sm:$0xff] %v5182_v36  ;;  %5194 = vst [vmem:[%s7622_s19 + $0x10] sm:$0xff] (!%p5949_p2), %v5182_v36 }
 0xb9f   : > { %5187 = vst [vmem:[#allocation2 + $0x18] sm:$0xff] %v5183_v12  ;;  %5195 = vst [vmem:[%s7622_s19 + $0x18] sm:$0xff] (!%p5949_p2), %v5183_v12 }
 0xba0 PF: > { %s8693_s24 = sld [smem:[#allocation31_spill]]  ;;  %s8694_s12 = sld [smem:[#allocation44_spill]] }
 0xba1   : > { %s8695_s23 = sld [smem:[#allocation39_spill]]  ;;  %s8696_s15 = sld [smem:[#allocation60_spill]] }
 0xba2   : > { %s5210_s14 = sshll.u32 %s7622_s19, 4  ;;  %s7009_s10 = smov [#allocation17]   ;;  %s8479_s14 = int_to_ptr.vmem [resolvable:$true] %s5210_s14 }
 0xba3   : > { %s6845_s27 = scalar_lea.vmem %s8479_s14, 512  ;;  %s6849_s3 = sshll.u32 %s7009_s10, 4  ;;  %s6850_s3 = int_to_ptr.vmem [resolvable:$false] %s6849_s3 }
 0xba4   : > { %p6846_p0 = scmp.ne.s32.totalorder %s8479_s14, %s6845_s27  ;;  %s6851_s20 = scalar_lea.vmem %s6850_s3, 1024 }
 0xba5   : > { %p6852_p11 = scmp.lt.s32.totalorder %s8479_s14, %s6850_s3  ;;  %p6853_p4 = scmp.lt.s32.totalorder %s6851_s20, %s6845_s27 }
 0xba6   : > { %s5962_s22 = sshll.u32 %s8693_s24, 9  ;;  %s5197_s25 = scalar_lea.sflag [#allocation5], %s8694_s12 }
 0xba7   : > { %s8697_s21 = smov %s8696_s15  ;;  %s8476_s26 = scalar_lea.hbm %s8696_s15, %s5962_s22 }
 0xba8   : > { %p8698_p3 = scmp.ne.s32.totalorder %s8695_s23, 0  ;;  %p6854_p13 = por %p6853_p4, %p6852_p11 }
 0xbaa   : > { %p6847_p9 = pnand %p6846_p0, %p8698_p3 }
 0xbac   : > { %p6848_p10 = pneg %p6847_p9 }
 0xbae   : > { %p6855_p12 = pnand %p6854_p13, %p6848_p10 }
 0xbb0   : > { %6858 = shalt.err (!%p6855_p12)
}
 0xbb1   : > { %s6859_s19 = scalar_lea.hbm %s8476_s26, 512  ;;  %s6863_s7 = scalar_lea.hbm %s8697_s21, 1024 }
 0xbb2   : > { %p6860_p8 = scmp.ne.s32.totalorder %s8476_s26, %s6859_s19  ;;  %p6864_p1 = scmp.lt.u32.totalorder %s8476_s26, %s8697_s21 }
 0xbb3   : > { %p6865_p7 = scmp.lt.u32.totalorder %s6863_s7, %s6859_s19  ;;  %p6867_p0 = scmp.lt.u32.totalorder %s6859_s19, %s8476_s26 }
 0xbb4   : > { %p6861_p6 = pnand %p6860_p8, %p8698_p3 }
 0xbb5   : > { %p6866_p2 = por %p6865_p7, %p6864_p1 }
 0xbb6   : > { %p6862_p5 = pneg %p6861_p6 }
 0xbb7   : > { %p6868_p9 = por %p6867_p0, %p6866_p2 }
 0xbb9   : > { %p6869_p10 = pnand %p6868_p9, %p6862_p5 }
 0xbbb   : > { %6872 = shalt.err (!%p6869_p10)
}
 0xbbc   : > { %s7010_s30 = smov 256   ;;  %s7011_s17 = smov 16  }
 0xbbd   : > { %6030 = dma.vmem_to_hbm [thread:$0]  (%p8698_p3), %s8479_s14, 512, %s8476_s26, %s5197_s25, %s7010_s30, %s7010_s30, %s7011_s17  }
 0xbbe PF: > { %s8699_s5 = sld [smem:[#allocation34_spill]]  ;;  %s8700_s18 = sld [smem:[#allocation27_spill]] }
 0xbbf   : > { %s8701_s8 = sld [smem:[#allocation41_spill]] }
 0xbc4   : > { %p6062_p11 = scmp.ge.s32.totalorder %s8699_s5, 2  ;;  %s5225_s28 = sand.u32 1, %s8700_s18  }
 0xbc5   : > { %p8702_p4 = scmp.ne.s32.totalorder %s8701_s8, 0  ;;  %s5226_s16 = scalar_lea.sflag [#allocation5], %s5225_s28 }
 0xbc7   : > { %p6058_p13 = pnand %p6062_p11, %p8702_p4 }
 0xbc9   : > { %6942 = dma.done.wait (!%p6058_p13), %s5226_s16, 512  }
 0xbca   : > { %6944 = vsyncadd (!%p6058_p13), %s5226_s16, 4294966784  ;;  %s41_s18 = sadd.s32 1, %s8699_s5   ;;  %s8703_s25 = sld [smem:[#allocation25_spill]] }
 0xbcb   : > { %p38_p12 = scmp.ge.s32.totalorder %s41_s18, 6   ;;  %s8704_s26 = sld [smem:[#allocation26_spill]] }
 0xbcc   : > { %s8705_s27 = sld [smem:[#allocation42_spill]]  ;;  %s8706_s28 = sld [smem:[#allocation28_spill]] }
 0xbcd   : > { %s8707_s29 = sld [smem:[#allocation29_spill]]  ;;  %s8708_s30 = sld [smem:[#allocation40_spill]] }
 0xbce   : > { %s8709_s14 = sld [smem:[#allocation32_spill]]  ;;  %s8710_s15 = sld [smem:[#allocation33_spill]] }
 0xbcf   : > { %s8711_s16 = sld [smem:[#allocation36_spill]]  ;;  %s8712_s17 = sld [smem:[#allocation37_spill]] }
 0xbd0   :  { %40 = sbr.rel (!%p38_p12) target bundleno = 32 (0x20), region = 225 }
 0xbd7   :  { %5231 = vsyncpa [#allocation4], 1 }
 0xbd8   :  { %5233 = vsyncpa [#allocation4 + $0x1], 1 }
 0xbd9   :  { %5234 = vsyncpa [#allocation7], 1 }
 0xbda   :  { %5236 = vsyncpa [#allocation7 + $0x1], 1 }
 0xbdb   :  { %5237 = vsyncpa [#allocation10], 1 }
 0xbdc   :  { %5239 = vsyncpa [#allocation10 + $0x1], 1 }
 0xbdd   :  { %5240 = vsyncpa [#allocation13], 1 }
 0xbde   :  { %5242 = vsyncpa [#allocation13 + $0x1], 1 }
 0xbdf   :  { %5243 = vsyncpa [#allocation16], 1 }
 0xbe0   :  { %5245 = vsyncpa [#allocation16 + $0x1], 1 }
 0xbe1   :  { %5246 = vsyncpa [#allocation5], 1 }
 0xbe2   :  { %5248 = vsyncpa [#allocation5 + $0x1], 1 }

</bundles_post_ra>
